<compile_context>
chip_gen: v7x
topology: tpu7x:2x2x1
jax: 0.10.0
libtpu: 0.0.40
codegen_flags: <defaults>
</compile_context>

<pallas_src>
import functools

import jax
import jax.numpy as jnp
from jax.experimental import pallas as pl
from jax.experimental.pallas import tpu as pltpu

# ----------------------------- model hyperparams -----------------------------
IMG = 16            # image spatial size
CHANNELS = 3        # CLIP pixel_values are RGB
PATCH = 4           # patch size -> 16 patches
HIDDEN = 32         # vision hidden size
NUM_HEADS = 2
HEAD_DIM = HIDDEN // NUM_HEADS
INTERMEDIATE = 4 * HIDDEN
NUM_LAYERS = 2
PROJ_DIM = 16       # CLIP visual projection dim (image_embeds dim)
ADAPTER_HIDDEN = 32
ADAPTER_OUT = 8
LN_EPS = 1e-5

NUM_PATCHES = (IMG // PATCH) ** 2      # 16
NUM_TOKENS = NUM_PATCHES + 1           # 17 = CLS + patches
S_PAD = 24                             # token dim padded to a multiple of 8
PATCH_DIM = CHANNELS * PATCH * PATCH   # 48
LANES = 128                            # slab width (max needed = INTERMEDIATE)

# ----- matrix slab layout (row offsets; every block start is a multiple of 16
#       so bf16 (16,128) sublane tiles are never split) -----
MAT_PATCH = 0                                       # [PATCH_DIM, HIDDEN]
MAT_LAYER0 = PATCH_DIM                              # 48
MAT_QKV = 0                                         # [HIDDEN, 3*HIDDEN]
MAT_O = HIDDEN                                      # [HIDDEN, HIDDEN]
MAT_FC1 = 2 * HIDDEN                                # [HIDDEN, INTERMEDIATE]
MAT_FC2 = 3 * HIDDEN                                # [INTERMEDIATE, HIDDEN]
MAT_LAYER_STRIDE = 3 * HIDDEN + INTERMEDIATE        # 224
MAT_PROJ = MAT_LAYER0 + NUM_LAYERS * MAT_LAYER_STRIDE   # 496  [HIDDEN, PROJ_DIM]
MAT_AD1 = MAT_PROJ + HIDDEN                             # 528  [PROJ_DIM, ADAPTER_HIDDEN]
MAT_AD2 = MAT_AD1 + PROJ_DIM                            # 544  [ADAPTER_HIDDEN, ADAPTER_OUT]
MAT_ROWS = MAT_AD2 + ADAPTER_HIDDEN                     # 576

# ----- vector slab layout (one row per LN gain/bias or bias vector) -----
VEC_PRE_G, VEC_PRE_B = 0, 1
VEC_LAYER0 = 2
(VEC_LN1_G, VEC_LN1_B, VEC_QKV_B, VEC_O_B,
 VEC_LN2_G, VEC_LN2_B, VEC_FC1_B, VEC_FC2_B) = range(8)
VEC_LAYER_STRIDE = 8
VEC_POST_G = VEC_LAYER0 + NUM_LAYERS * VEC_LAYER_STRIDE   # 18
VEC_POST_B = VEC_POST_G + 1                                # 19
VEC_AD1_B = VEC_POST_B + 1                                 # 20
VEC_AD2_B = VEC_AD1_B + 1                                  # 21
VEC_ROWS = 24                                              # padded to multiple of 8

VMEM_SPEC = pl.BlockSpec(memory_space=pltpu.MemorySpace.VMEM)


# ------------------------------- fused kernel --------------------------------
def _clip_adapter_kernel(patches_ref, cls_pos_ref, vecs_ref, mats_ref, out_ref, *, batch):
    """Full CLIP vision tower + adapter forward, fused and VMEM-resident."""
    BS = batch * S_PAD

    def vec(row, width):
        return vecs_ref[row:row + 1, 0:width]                     # [1, width] f32

    def ln(x, g_row, b_row):
        g = vec(g_row, x.shape[-1])
        b = vec(b_row, x.shape[-1])
        mean = jnp.mean(x, axis=-1, keepdims=True)
        var = jnp.mean((x - mean) ** 2, axis=-1, keepdims=True)
        return (x - mean) * jax.lax.rsqrt(var + LN_EPS) * g + b

    def mm(a, w):
        # bf16 MXU operands, f32 accumulation (w is already bf16 from the slab)
        return jnp.dot(a.astype(jnp.bfloat16), w.astype(jnp.bfloat16),
                       preferred_element_type=jnp.float32)

    # --- patch embedding: Conv2d(C, HIDDEN, k=P, s=P, bias=False) as a matmul.
    #     Padded token rows hold all-zero patches -> zero embeddings.
    x = mm(patches_ref[...], mats_ref[MAT_PATCH:MAT_PATCH + PATCH_DIM, 0:HIDDEN])

    # --- class token + position embeddings (pre-tiled to [B*S_PAD, HIDDEN] host-side)
    x = x + cls_pos_ref[...]

    # --- pre layernorm
    x = ln(x, VEC_PRE_G, VEC_PRE_B)

    # --- additive attention bias over the whole padded batch:
    #     0 where (query row and key col belong to the same image) AND
    #     (key col is a real token), else -1e30.  Computed once per call.
    row = jax.lax.broadcasted_iota(jnp.int32, (BS, BS), 0)
    col = jax.lax.broadcasted_iota(jnp.int32, (BS, BS), 1)
    attn_bias = jnp.full((BS, BS), -1e30, jnp.float32)
    for b in range(batch):
        in_block = ((row >= b * S_PAD) & (row < (b + 1) * S_PAD) &
                    (col >= b * S_PAD) & (col < b * S_PAD + NUM_TOKENS))
        attn_bias = jnp.where(in_block, jnp.float32(0.0), attn_bias)

    for l in range(NUM_LAYERS):
        mbase = MAT_LAYER0 + l * MAT_LAYER_STRIDE
        vbase = VEC_LAYER0 + l * VEC_LAYER_STRIDE

        # ---- self-attention (fused QKV, attention scale folded into Q weights)
        residual = x
        h = ln(x, vbase + VEC_LN1_G, vbase + VEC_LN1_B)
        qkv = mm(h, mats_ref[mbase + MAT_QKV:mbase + MAT_QKV + HIDDEN, 0:3 * HIDDEN])
        qkv = qkv + vec(vbase + VEC_QKV_B, 3 * HIDDEN)             # [BS, 3*HIDDEN]

        attn = jnp.zeros((BS, HIDDEN), jnp.float32)
        for hh in range(NUM_HEADS):
            c0 = hh * HEAD_DIM
            qh = qkv[:, 0 * HIDDEN + c0:0 * HIDDEN + c0 + HEAD_DIM].astype(jnp.bfloat16)
            kh = qkv[:, 1 * HIDDEN + c0:1 * HIDDEN + c0 + HEAD_DIM].astype(jnp.bfloat16)
            vh = qkv[:, 2 * HIDDEN + c0:2 * HIDDEN + c0 + HEAD_DIM].astype(jnp.bfloat16)
            sc = jax.lax.dot_general(                              # q @ k^T over whole batch
                qh, kh, (((1,), (1,)), ((), ())),
                preferred_element_type=jnp.float32)                # [BS, BS] f32
            sc = sc + attn_bias
            sc = sc - jnp.max(sc, axis=-1, keepdims=True)
            p = jnp.exp(sc)
            p = p * pl.reciprocal(jnp.sum(p, axis=-1, keepdims=True), approx=True)
            ho = jnp.dot(p.astype(jnp.bfloat16), vh,
                         preferred_element_type=jnp.float32)       # [BS, HEAD_DIM]
            # fold the head-concat into the output projection: accumulate on MXU
            ow = mats_ref[mbase + MAT_O + c0:mbase + MAT_O + c0 + HEAD_DIM, 0:HIDDEN]
            attn = attn + mm(ho, ow)
        attn = attn + vec(vbase + VEC_O_B, HIDDEN)
        x = residual + attn

        # ---- MLP block (QuickGELU)
        residual = x
        h = ln(x, vbase + VEC_LN2_G, vbase + VEC_LN2_B)
        h = mm(h, mats_ref[mbase + MAT_FC1:mbase + MAT_FC1 + HIDDEN, 0:INTERMEDIATE])
        h = h + vec(vbase + VEC_FC1_B, INTERMEDIATE)
        h = h * jax.nn.sigmoid(1.702 * h)
        h = mm(h, mats_ref[mbase + MAT_FC2:mbase + MAT_FC2 + INTERMEDIATE, 0:HIDDEN])
        h = h + vec(vbase + VEC_FC2_B, HIDDEN)
        x = residual + h

    # ---- pooled = CLS token per image, via exact one-hot selection matmul (f32)
    rsel = jax.lax.broadcasted_iota(jnp.int32, (batch, BS), 0)
    csel = jax.lax.broadcasted_iota(jnp.int32, (batch, BS), 1)
    sel = (csel == rsel * S_PAD).astype(jnp.float32)               # [B, BS]
    pooled = jnp.dot(sel, x, preferred_element_type=jnp.float32)   # [B, HIDDEN]

    # ---- post layernorm, visual projection (no bias)
    pooled = ln(pooled, VEC_POST_G, VEC_POST_B)
    image_embeds = mm(pooled, mats_ref[MAT_PROJ:MAT_PROJ + HIDDEN, 0:PROJ_DIM])

    # ---- trainable adapter: Linear -> ReLU -> Linear
    a = mm(image_embeds, mats_ref[MAT_AD1:MAT_AD1 + PROJ_DIM, 0:ADAPTER_HIDDEN])
    a = a + vec(VEC_AD1_B, ADAPTER_HIDDEN)
    a = jnp.maximum(a, 0.0)
    a = mm(a, mats_ref[MAT_AD2:MAT_AD2 + ADAPTER_HIDDEN, 0:ADAPTER_OUT])
    a = a + vec(VEC_AD2_B, ADAPTER_OUT)
    out_ref[...] = a.astype(out_ref.dtype)


# ------------------------------ parameter init --------------------------------
def init_params(key):
    """Deterministic synthetic weights (the module's CLIP weights are frozen anyway),
    packed host-side into:
      * mats [MAT_ROWS, 128] bf16 : every weight matrix, [in, out] layout, zero-padded
        to 128 lanes; attention scale folded into the Q slice of the fused QKV weight.
      * vecs [VEC_ROWS, 128] f32  : every LN gain/bias and bias vector, one per row.
      * cls_pos [S_PAD, HIDDEN] f32 : class + position embeddings (pad rows zero).
    """
    ks = iter(jax.random.split(key, 64))
    scale = HEAD_DIM ** -0.5

    def dense(fan_in, fan_out, s=0.02):
        return (s * jax.random.normal(next(ks), (fan_in, fan_out))).astype(jnp.float32)

    class_emb = (0.02 * jax.random.normal(next(ks), (HIDDEN,))).astype(jnp.float32)
    pos_emb = (0.02 * jax.random.normal(next(ks), (NUM_TOKENS, HIDDEN))).astype(jnp.float32)
    cls_pos = jnp.zeros((S_PAD, HIDDEN), jnp.float32)
    cls_pos = cls_pos.at[0].set(class_emb + pos_emb[0])
    cls_pos = cls_pos.at[1:NUM_TOKENS].set(pos_emb[1:])

    ones_h = jnp.ones((HIDDEN,), jnp.float32)
    zeros = lambda n: jnp.zeros((n,), jnp.float32)

    vecs = jnp.zeros((VEC_ROWS, LANES), jnp.float32)
    mats = jnp.zeros((MAT_ROWS, LANES), jnp.float32)

    def put_vec(slab, r, v):
        return slab.at[r, :v.shape[0]].set(v)

    def put_mat(slab, r, m):
        return slab.at[r:r + m.shape[0], :m.shape[1]].set(m)

    vecs = put_vec(vecs, VEC_PRE_G, ones_h)
    vecs = put_vec(vecs, VEC_PRE_B, zeros(HIDDEN))
    mats = put_mat(mats, MAT_PATCH, dense(PATCH_DIM, HIDDEN))          # patch conv, no bias

    for l in range(NUM_LAYERS):
        mbase = MAT_LAYER0 + l * MAT_LAYER_STRIDE
        vbase = VEC_LAYER0 + l * VEC_LAYER_STRIDE
        vecs = put_vec(vecs, vbase + VEC_LN1_G, ones_h)
        vecs = put_vec(vecs, vbase + VEC_LN1_B, zeros(HIDDEN))
        q_w, k_w, v_w = dense(HIDDEN, HIDDEN), dense(HIDDEN, HIDDEN), dense(HIDDEN, HIDDEN)
        q_b, k_b, v_b = zeros(HIDDEN), zeros(HIDDEN), zeros(HIDDEN)
        # fold HEAD_DIM**-0.5 into the Q slice: (h@qw+qb)*scale == h@(qw*scale)+(qb*scale)
        mats = put_mat(mats, mbase + MAT_QKV,
                       jnp.concatenate([q_w * scale, k_w, v_w], axis=1))      # [H, 3H]
        vecs = put_vec(vecs, vbase + VEC_QKV_B,
                       jnp.concatenate([q_b * scale, k_b, v_b]))              # [3H]
        mats = put_mat(mats, mbase + MAT_O, dense(HIDDEN, HIDDEN))
        vecs = put_vec(vecs, vbase + VEC_O_B, zeros(HIDDEN))
        vecs = put_vec(vecs, vbase + VEC_LN2_G, ones_h)
        vecs = put_vec(vecs, vbase + VEC_LN2_B, zeros(HIDDEN))
        mats = put_mat(mats, mbase + MAT_FC1, dense(HIDDEN, INTERMEDIATE))
        vecs = put_vec(vecs, vbase + VEC_FC1_B, zeros(INTERMEDIATE))
        mats = put_mat(mats, mbase + MAT_FC2, dense(INTERMEDIATE, HIDDEN))
        vecs = put_vec(vecs, vbase + VEC_FC2_B, zeros(HIDDEN))

    vecs = put_vec(vecs, VEC_POST_G, ones_h)
    vecs = put_vec(vecs, VEC_POST_B, zeros(HIDDEN))
    mats = put_mat(mats, MAT_PROJ, dense(HIDDEN, PROJ_DIM))            # visual_projection, no bias
    mats = put_mat(mats, MAT_AD1, dense(PROJ_DIM, ADAPTER_HIDDEN))
    vecs = put_vec(vecs, VEC_AD1_B, zeros(ADAPTER_HIDDEN))
    mats = put_mat(mats, MAT_AD2, dense(ADAPTER_HIDDEN, ADAPTER_OUT))
    vecs = put_vec(vecs, VEC_AD2_B, zeros(ADAPTER_OUT))

    return {"cls_pos": cls_pos, "vecs": vecs, "mats": mats.astype(jnp.bfloat16)}


# --------------------------------- forward ------------------------------------
def _extract_patches(pixel_values):
    """NCHW -> [B*S_PAD, C*P*P] flattened patches in (c, ph, pw) order
    (matches torch Conv2d weight.view(out, -1)); CLS slot and pad rows are zeros."""
    B, C, H, W = pixel_values.shape
    Hp, Wp = H // PATCH, W // PATCH
    p = pixel_values.reshape(B, C, Hp, PATCH, Wp, PATCH)
    p = p.transpose(0, 2, 4, 1, 3, 5).reshape(B, Hp * Wp, PATCH_DIM)
    cls_slot = jnp.zeros((B, 1, PATCH_DIM), p.dtype)
    tail = jnp.zeros((B, S_PAD - 1 - Hp * Wp, PATCH_DIM), p.dtype)
    p = jnp.concatenate([cls_slot, p, tail], axis=1)
    return p.reshape(B * S_PAD, PATCH_DIM)


def clip_adapter_forward(params, pixel_values):
    """image_embeds = clip.get_image_features(pixel_values); return adapter(image_embeds)."""
    B = pixel_values.shape[0]
    patches = _extract_patches(pixel_values.astype(jnp.float32))       # [B*S_PAD, PATCH_DIM]
    cls_pos_tiled = jnp.tile(params["cls_pos"], (B, 1))                # [B*S_PAD, HIDDEN]
    # TODO(synk): for large batches on v7x, add a leading "parallel" grid axis over
    # batch blocks (rows a multiple of 8) to shard across both TensorCores.
    return pl.pallas_call(
        functools.partial(_clip_adapter_kernel, batch=B),
        out_shape=jax.ShapeDtypeStruct((B, ADAPTER_OUT), jnp.float32),
        in_specs=[VMEM_SPEC] * 4,
        out_specs=VMEM_SPEC,
    )(patches, cls_pos_tiled, params["vecs"], params["mats"])


if __name__ == "__main__":
    key = jax.random.PRNGKey(0)
    pixel_values = jax.random.normal(key, (2, CHANNELS, IMG, IMG), dtype=jnp.float32)
    params = init_params(jax.random.PRNGKey(42))

    fwd = jax.jit(clip_adapter_forward)
    out = fwd(params, pixel_values)
    jax.block_until_ready(out)
    assert out.shape == (2, ADAPTER_OUT) and out.dtype == jnp.float32
    print("KERNEL_OK")
</pallas_src>

<mosaic_0001>
module attributes {stable_mosaic.version = 11 : i64} {
  func.func @_clip_adapter_kernel(%arg0: memref<48x48xf32, #tpu.memory_space<vmem>>, %arg1: memref<48x32xf32, #tpu.memory_space<vmem>>, %arg2: memref<24x128xf32, #tpu.memory_space<vmem>>, %arg3: memref<576x128xbf16, #tpu.memory_space<vmem>>, %arg4: memref<2x8xf32, #tpu.memory_space<vmem>>) attributes {dimension_semantics = [], scalar_prefetch = 0 : i64, scratch_operands = 0 : i64, tpu.core_type = #tpu.core_type<tc>} {
    %c0 = arith.constant 0 : index
    %c0_0 = arith.constant 0 : index
    %0 = vector.load %arg0[%c0, %c0_0] : memref<48x48xf32, #tpu.memory_space<vmem>>, vector<48x48xf32>
    %c0_1 = arith.constant 0 : index
    %c0_2 = arith.constant 0 : index
    %1 = vector.load %arg3[%c0_1, %c0_2] : memref<576x128xbf16, #tpu.memory_space<vmem>>, vector<48x32xbf16>
    %2 = arith.truncf %0 : vector<48x48xf32> to vector<48x48xbf16>
    %cst = arith.constant dense<0.000000e+00> : vector<48x32xf32>
    %3 = tpu.matmul %2, %1, %cst {dimension_numbers = #tpu.dot_dimension_numbers<[1], [0], [0], [1], [0, 0, 1, 1], [], []>} : vector<48x48xbf16>, vector<48x32xbf16>, vector<48x32xf32> -> vector<48x32xf32>
    %c0_3 = arith.constant 0 : index
    %c0_4 = arith.constant 0 : index
    %4 = vector.load %arg1[%c0_3, %c0_4] : memref<48x32xf32, #tpu.memory_space<vmem>>, vector<48x32xf32>
    %5 = arith.addf %3, %4 : vector<48x32xf32>
    %c0_5 = arith.constant 0 : index
    %c0_6 = arith.constant 0 : index
    %6 = vector.load %arg2[%c0_5, %c0_6] : memref<24x128xf32, #tpu.memory_space<vmem>>, vector<1x32xf32>
    %c1 = arith.constant 1 : index
    %c0_7 = arith.constant 0 : index
    %7 = vector.load %arg2[%c1, %c0_7] : memref<24x128xf32, #tpu.memory_space<vmem>>, vector<1x32xf32>
    %cst_8 = arith.constant dense<0.000000e+00> : vector<48xf32>
    %8 = vector.multi_reduction <add>, %5, %cst_8 [1] : vector<48x32xf32> to vector<48xf32>
    %9 = vector.shape_cast %8 : vector<48xf32> to vector<48x1xf32>
    %cst_9 = arith.constant 3.200000e+01 : f32
    %10 = vector.broadcast %cst_9 : f32 to vector<48x1xf32>
    %11 = arith.divf %9, %10 : vector<48x1xf32>
    %12 = vector.broadcast %11 : vector<48x1xf32> to vector<48x32xf32>
    %13 = arith.subf %5, %12 : vector<48x32xf32>
    %14 = arith.mulf %13, %13 : vector<48x32xf32>
    %cst_10 = arith.constant dense<0.000000e+00> : vector<48xf32>
    %15 = vector.multi_reduction <add>, %14, %cst_10 [1] : vector<48x32xf32> to vector<48xf32>
    %16 = vector.shape_cast %15 : vector<48xf32> to vector<48x1xf32>
    %cst_11 = arith.constant 3.200000e+01 : f32
    %17 = vector.broadcast %cst_11 : f32 to vector<48x1xf32>
    %18 = arith.divf %16, %17 : vector<48x1xf32>
    %19 = vector.broadcast %11 : vector<48x1xf32> to vector<48x32xf32>
    %20 = arith.subf %5, %19 : vector<48x32xf32>
    %cst_12 = arith.constant 9.99999974E-6 : f32
    %21 = vector.broadcast %cst_12 : f32 to vector<48x1xf32>
    %22 = arith.addf %18, %21 : vector<48x1xf32>
    %23 = math.rsqrt %22 : vector<48x1xf32>
    %24 = vector.broadcast %23 : vector<48x1xf32> to vector<48x32xf32>
    %25 = arith.mulf %20, %24 : vector<48x32xf32>
    %26 = vector.broadcast %6 : vector<1x32xf32> to vector<48x32xf32>
    %27 = arith.mulf %25, %26 : vector<48x32xf32>
    %28 = vector.broadcast %7 : vector<1x32xf32> to vector<48x32xf32>
    %29 = arith.addf %27, %28 : vector<48x32xf32>
    %30 = tpu.iota {dimensions = array<i32: 0>} : vector<48x48xi32>
    %31 = tpu.iota {dimensions = array<i32: 1>} : vector<48x48xi32>
    %cst_13 = arith.constant -1.000000e+30 : f32
    %32 = vector.broadcast %cst_13 : f32 to vector<48x48xf32>
    %c0_i32 = arith.constant 0 : i32
    %33 = vector.broadcast %c0_i32 : i32 to vector<48x48xi32>
    %34 = arith.cmpi sge, %30, %33 : vector<48x48xi32>
    %c24_i32 = arith.constant 24 : i32
    %35 = vector.broadcast %c24_i32 : i32 to vector<48x48xi32>
    %36 = arith.cmpi slt, %30, %35 : vector<48x48xi32>
    %37 = arith.andi %34, %36 : vector<48x48xi1>
    %c0_i32_14 = arith.constant 0 : i32
    %38 = vector.broadcast %c0_i32_14 : i32 to vector<48x48xi32>
    %39 = arith.cmpi sge, %31, %38 : vector<48x48xi32>
    %40 = arith.andi %37, %39 : vector<48x48xi1>
    %c17_i32 = arith.constant 17 : i32
    %41 = vector.broadcast %c17_i32 : i32 to vector<48x48xi32>
    %42 = arith.cmpi slt, %31, %41 : vector<48x48xi32>
    %43 = arith.andi %40, %42 : vector<48x48xi1>
    %cst_15 = arith.constant 0.000000e+00 : f32
    %44 = vector.broadcast %cst_15 : f32 to vector<48x48xf32>
    %45 = arith.select %43, %44, %32 : vector<48x48xi1>, vector<48x48xf32>
    %c24_i32_16 = arith.constant 24 : i32
    %46 = vector.broadcast %c24_i32_16 : i32 to vector<48x48xi32>
    %47 = arith.cmpi sge, %30, %46 : vector<48x48xi32>
    %c48_i32 = arith.constant 48 : i32
    %48 = vector.broadcast %c48_i32 : i32 to vector<48x48xi32>
    %49 = arith.cmpi slt, %30, %48 : vector<48x48xi32>
    %50 = arith.andi %47, %49 : vector<48x48xi1>
    %c24_i32_17 = arith.constant 24 : i32
    %51 = vector.broadcast %c24_i32_17 : i32 to vector<48x48xi32>
    %52 = arith.cmpi sge, %31, %51 : vector<48x48xi32>
    %53 = arith.andi %50, %52 : vector<48x48xi1>
    %c41_i32 = arith.constant 41 : i32
    %54 = vector.broadcast %c41_i32 : i32 to vector<48x48xi32>
    %55 = arith.cmpi slt, %31, %54 : vector<48x48xi32>
    %56 = arith.andi %53, %55 : vector<48x48xi1>
    %cst_18 = arith.constant 0.000000e+00 : f32
    %57 = vector.broadcast %cst_18 : f32 to vector<48x48xf32>
    %58 = arith.select %56, %57, %45 : vector<48x48xi1>, vector<48x48xf32>
    %c2 = arith.constant 2 : index
    %c0_19 = arith.constant 0 : index
    %59 = vector.load %arg2[%c2, %c0_19] : memref<24x128xf32, #tpu.memory_space<vmem>>, vector<1x32xf32>
    %c3 = arith.constant 3 : index
    %c0_20 = arith.constant 0 : index
    %60 = vector.load %arg2[%c3, %c0_20] : memref<24x128xf32, #tpu.memory_space<vmem>>, vector<1x32xf32>
    %cst_21 = arith.constant dense<0.000000e+00> : vector<48xf32>
    %61 = vector.multi_reduction <add>, %29, %cst_21 [1] : vector<48x32xf32> to vector<48xf32>
    %62 = vector.shape_cast %61 : vector<48xf32> to vector<48x1xf32>
    %cst_22 = arith.constant 3.200000e+01 : f32
    %63 = vector.broadcast %cst_22 : f32 to vector<48x1xf32>
    %64 = arith.divf %62, %63 : vector<48x1xf32>
    %65 = vector.broadcast %64 : vector<48x1xf32> to vector<48x32xf32>
    %66 = arith.subf %29, %65 : vector<48x32xf32>
    %67 = arith.mulf %66, %66 : vector<48x32xf32>
    %cst_23 = arith.constant dense<0.000000e+00> : vector<48xf32>
    %68 = vector.multi_reduction <add>, %67, %cst_23 [1] : vector<48x32xf32> to vector<48xf32>
    %69 = vector.shape_cast %68 : vector<48xf32> to vector<48x1xf32>
    %cst_24 = arith.constant 3.200000e+01 : f32
    %70 = vector.broadcast %cst_24 : f32 to vector<48x1xf32>
    %71 = arith.divf %69, %70 : vector<48x1xf32>
    %72 = vector.broadcast %64 : vector<48x1xf32> to vector<48x32xf32>
    %73 = arith.subf %29, %72 : vector<48x32xf32>
    %cst_25 = arith.constant 9.99999974E-6 : f32
    %74 = vector.broadcast %cst_25 : f32 to vector<48x1xf32>
    %75 = arith.addf %71, %74 : vector<48x1xf32>
    %76 = math.rsqrt %75 : vector<48x1xf32>
    %77 = vector.broadcast %76 : vector<48x1xf32> to vector<48x32xf32>
    %78 = arith.mulf %73, %77 : vector<48x32xf32>
    %79 = vector.broadcast %59 : vector<1x32xf32> to vector<48x32xf32>
    %80 = arith.mulf %78, %79 : vector<48x32xf32>
    %81 = vector.broadcast %60 : vector<1x32xf32> to vector<48x32xf32>
    %82 = arith.addf %80, %81 : vector<48x32xf32>
    %c48 = arith.constant 48 : index
    %c0_26 = arith.constant 0 : index
    %83 = vector.load %arg3[%c48, %c0_26] : memref<576x128xbf16, #tpu.memory_space<vmem>>, vector<32x96xbf16>
    %84 = arith.truncf %82 : vector<48x32xf32> to vector<48x32xbf16>
    %cst_27 = arith.constant dense<0.000000e+00> : vector<48x96xf32>
    %85 = tpu.matmul %84, %83, %cst_27 {dimension_numbers = #tpu.dot_dimension_numbers<[1], [0], [0], [1], [0, 0, 1, 1], [], []>} : vector<48x32xbf16>, vector<32x96xbf16>, vector<48x96xf32> -> vector<48x96xf32>
    %c4 = arith.constant 4 : index
    %c0_28 = arith.constant 0 : index
    %86 = vector.load %arg2[%c4, %c0_28] : memref<24x128xf32, #tpu.memory_space<vmem>>, vector<1x96xf32>
    %87 = vector.broadcast %86 : vector<1x96xf32> to vector<48x96xf32>
    %88 = arith.addf %85, %87 : vector<48x96xf32>
    %cst_29 = arith.constant 0.000000e+00 : f32
    %89 = vector.broadcast %cst_29 : f32 to vector<48x32xf32>
    %90 = vector.extract_strided_slice %88 {offsets = [0, 0], sizes = [48, 16], strides = [1, 1]} : vector<48x96xf32> to vector<48x16xf32>
    %91 = arith.truncf %90 : vector<48x16xf32> to vector<48x16xbf16>
    %92 = vector.extract_strided_slice %88 {offsets = [0, 32], sizes = [48, 16], strides = [1, 1]} : vector<48x96xf32> to vector<48x16xf32>
    %93 = arith.truncf %92 : vector<48x16xf32> to vector<48x16xbf16>
    %94 = vector.extract_strided_slice %88 {offsets = [0, 64], sizes = [48, 16], strides = [1, 1]} : vector<48x96xf32> to vector<48x16xf32>
    %95 = arith.truncf %94 : vector<48x16xf32> to vector<48x16xbf16>
    %cst_30 = arith.constant dense<0.000000e+00> : vector<48x48xf32>
    %96 = tpu.matmul %91, %93, %cst_30 {dimension_numbers = #tpu.dot_dimension_numbers<[1], [1], [0], [0], [0, 0, 1, 0], [], []>} : vector<48x16xbf16>, vector<48x16xbf16>, vector<48x48xf32> -> vector<48x48xf32>
    %97 = arith.addf %96, %58 : vector<48x48xf32>
    %cst_31 = arith.constant dense<0xFF800000> : vector<48xf32>
    %98 = vector.multi_reduction <maximumf>, %97, %cst_31 [1] : vector<48x48xf32> to vector<48xf32>
    %99 = vector.shape_cast %98 : vector<48xf32> to vector<48x1xf32>
    %100 = vector.broadcast %99 : vector<48x1xf32> to vector<48x48xf32>
    %101 = arith.subf %97, %100 : vector<48x48xf32>
    %102 = math.exp %101 : vector<48x48xf32>
    %cst_32 = arith.constant dense<0.000000e+00> : vector<48xf32>
    %103 = vector.multi_reduction <add>, %102, %cst_32 [1] : vector<48x48xf32> to vector<48xf32>
    %104 = vector.shape_cast %103 : vector<48xf32> to vector<48x1xf32>
    %105 = tpu.reciprocal %104 {approx = true} : vector<48x1xf32> -> vector<48x1xf32>
    %106 = vector.broadcast %105 : vector<48x1xf32> to vector<48x48xf32>
    %107 = arith.mulf %102, %106 : vector<48x48xf32>
    %108 = arith.truncf %107 : vector<48x48xf32> to vector<48x48xbf16>
    %cst_33 = arith.constant dense<0.000000e+00> : vector<48x16xf32>
    %109 = tpu.matmul %108, %95, %cst_33 {dimension_numbers = #tpu.dot_dimension_numbers<[1], [0], [0], [1], [0, 0, 1, 1], [], []>} : vector<48x48xbf16>, vector<48x16xbf16>, vector<48x16xf32> -> vector<48x16xf32>
    %c80 = arith.constant 80 : index
    %c0_34 = arith.constant 0 : index
    %110 = vector.load %arg3[%c80, %c0_34] : memref<576x128xbf16, #tpu.memory_space<vmem>>, vector<16x32xbf16>
    %111 = arith.truncf %109 : vector<48x16xf32> to vector<48x16xbf16>
    %cst_35 = arith.constant dense<0.000000e+00> : vector<48x32xf32>
    %112 = tpu.matmul %111, %110, %cst_35 {dimension_numbers = #tpu.dot_dimension_numbers<[1], [0], [0], [1], [0, 0, 1, 1], [], []>} : vector<48x16xbf16>, vector<16x32xbf16>, vector<48x32xf32> -> vector<48x32xf32>
    %113 = arith.addf %89, %112 : vector<48x32xf32>
    %114 = vector.extract_strided_slice %88 {offsets = [0, 16], sizes = [48, 16], strides = [1, 1]} : vector<48x96xf32> to vector<48x16xf32>
    %115 = arith.truncf %114 : vector<48x16xf32> to vector<48x16xbf16>
    %116 = vector.extract_strided_slice %88 {offsets = [0, 48], sizes = [48, 16], strides = [1, 1]} : vector<48x96xf32> to vector<48x16xf32>
    %117 = arith.truncf %116 : vector<48x16xf32> to vector<48x16xbf16>
    %118 = vector.extract_strided_slice %88 {offsets = [0, 80], sizes = [48, 16], strides = [1, 1]} : vector<48x96xf32> to vector<48x16xf32>
    %119 = arith.truncf %118 : vector<48x16xf32> to vector<48x16xbf16>
    %cst_36 = arith.constant dense<0.000000e+00> : vector<48x48xf32>
    %120 = tpu.matmul %115, %117, %cst_36 {dimension_numbers = #tpu.dot_dimension_numbers<[1], [1], [0], [0], [0, 0, 1, 0], [], []>} : vector<48x16xbf16>, vector<48x16xbf16>, vector<48x48xf32> -> vector<48x48xf32>
    %121 = arith.addf %120, %58 : vector<48x48xf32>
    %cst_37 = arith.constant dense<0xFF800000> : vector<48xf32>
    %122 = vector.multi_reduction <maximumf>, %121, %cst_37 [1] : vector<48x48xf32> to vector<48xf32>
    %123 = vector.shape_cast %122 : vector<48xf32> to vector<48x1xf32>
    %124 = vector.broadcast %123 : vector<48x1xf32> to vector<48x48xf32>
    %125 = arith.subf %121, %124 : vector<48x48xf32>
    %126 = math.exp %125 : vector<48x48xf32>
    %cst_38 = arith.constant dense<0.000000e+00> : vector<48xf32>
    %127 = vector.multi_reduction <add>, %126, %cst_38 [1] : vector<48x48xf32> to vector<48xf32>
    %128 = vector.shape_cast %127 : vector<48xf32> to vector<48x1xf32>
    %129 = tpu.reciprocal %128 {approx = true} : vector<48x1xf32> -> vector<48x1xf32>
    %130 = vector.broadcast %129 : vector<48x1xf32> to vector<48x48xf32>
    %131 = arith.mulf %126, %130 : vector<48x48xf32>
    %132 = arith.truncf %131 : vector<48x48xf32> to vector<48x48xbf16>
    %cst_39 = arith.constant dense<0.000000e+00> : vector<48x16xf32>
    %133 = tpu.matmul %132, %119, %cst_39 {dimension_numbers = #tpu.dot_dimension_numbers<[1], [0], [0], [1], [0, 0, 1, 1], [], []>} : vector<48x48xbf16>, vector<48x16xbf16>, vector<48x16xf32> -> vector<48x16xf32>
    %c96 = arith.constant 96 : index
    %c0_40 = arith.constant 0 : index
    %134 = vector.load %arg3[%c96, %c0_40] : memref<576x128xbf16, #tpu.memory_space<vmem>>, vector<16x32xbf16>
    %135 = arith.truncf %133 : vector<48x16xf32> to vector<48x16xbf16>
    %cst_41 = arith.constant dense<0.000000e+00> : vector<48x32xf32>
    %136 = tpu.matmul %135, %134, %cst_41 {dimension_numbers = #tpu.dot_dimension_numbers<[1], [0], [0], [1], [0, 0, 1, 1], [], []>} : vector<48x16xbf16>, vector<16x32xbf16>, vector<48x32xf32> -> vector<48x32xf32>
    %137 = arith.addf %113, %136 : vector<48x32xf32>
    %c5 = arith.constant 5 : index
    %c0_42 = arith.constant 0 : index
    %138 = vector.load %arg2[%c5, %c0_42] : memref<24x128xf32, #tpu.memory_space<vmem>>, vector<1x32xf32>
    %139 = vector.broadcast %138 : vector<1x32xf32> to vector<48x32xf32>
    %140 = arith.addf %137, %139 : vector<48x32xf32>
    %141 = arith.addf %29, %140 : vector<48x32xf32>
    %c6 = arith.constant 6 : index
    %c0_43 = arith.constant 0 : index
    %142 = vector.load %arg2[%c6, %c0_43] : memref<24x128xf32, #tpu.memory_space<vmem>>, vector<1x32xf32>
    %c7 = arith.constant 7 : index
    %c0_44 = arith.constant 0 : index
    %143 = vector.load %arg2[%c7, %c0_44] : memref<24x128xf32, #tpu.memory_space<vmem>>, vector<1x32xf32>
    %cst_45 = arith.constant dense<0.000000e+00> : vector<48xf32>
    %144 = vector.multi_reduction <add>, %141, %cst_45 [1] : vector<48x32xf32> to vector<48xf32>
    %145 = vector.shape_cast %144 : vector<48xf32> to vector<48x1xf32>
    %cst_46 = arith.constant 3.200000e+01 : f32
    %146 = vector.broadcast %cst_46 : f32 to vector<48x1xf32>
    %147 = arith.divf %145, %146 : vector<48x1xf32>
    %148 = vector.broadcast %147 : vector<48x1xf32> to vector<48x32xf32>
    %149 = arith.subf %141, %148 : vector<48x32xf32>
    %150 = arith.mulf %149, %149 : vector<48x32xf32>
    %cst_47 = arith.constant dense<0.000000e+00> : vector<48xf32>
    %151 = vector.multi_reduction <add>, %150, %cst_47 [1] : vector<48x32xf32> to vector<48xf32>
    %152 = vector.shape_cast %151 : vector<48xf32> to vector<48x1xf32>
    %cst_48 = arith.constant 3.200000e+01 : f32
    %153 = vector.broadcast %cst_48 : f32 to vector<48x1xf32>
    %154 = arith.divf %152, %153 : vector<48x1xf32>
    %155 = vector.broadcast %147 : vector<48x1xf32> to vector<48x32xf32>
    %156 = arith.subf %141, %155 : vector<48x32xf32>
    %cst_49 = arith.constant 9.99999974E-6 : f32
    %157 = vector.broadcast %cst_49 : f32 to vector<48x1xf32>
    %158 = arith.addf %154, %157 : vector<48x1xf32>
    %159 = math.rsqrt %158 : vector<48x1xf32>
    %160 = vector.broadcast %159 : vector<48x1xf32> to vector<48x32xf32>
    %161 = arith.mulf %156, %160 : vector<48x32xf32>
    %162 = vector.broadcast %142 : vector<1x32xf32> to vector<48x32xf32>
    %163 = arith.mulf %161, %162 : vector<48x32xf32>
    %164 = vector.broadcast %143 : vector<1x32xf32> to vector<48x32xf32>
    %165 = arith.addf %163, %164 : vector<48x32xf32>
    %c112 = arith.constant 112 : index
    %c0_50 = arith.constant 0 : index
    %166 = vector.load %arg3[%c112, %c0_50] : memref<576x128xbf16, #tpu.memory_space<vmem>>, vector<32x128xbf16>
    %167 = arith.truncf %165 : vector<48x32xf32> to vector<48x32xbf16>
    %cst_51 = arith.constant dense<0.000000e+00> : vector<48x128xf32>
    %168 = tpu.matmul %167, %166, %cst_51 {dimension_numbers = #tpu.dot_dimension_numbers<[1], [0], [0], [1], [0, 0, 1, 1], [], []>} : vector<48x32xbf16>, vector<32x128xbf16>, vector<48x128xf32> -> vector<48x128xf32>
    %c8 = arith.constant 8 : index
    %c0_52 = arith.constant 0 : index
    %169 = vector.load %arg2[%c8, %c0_52] : memref<24x128xf32, #tpu.memory_space<vmem>>, vector<1x128xf32>
    %170 = vector.broadcast %169 : vector<1x128xf32> to vector<48x128xf32>
    %171 = arith.addf %168, %170 : vector<48x128xf32>
    %cst_53 = arith.constant 1.702000e+00 : f32
    %172 = vector.broadcast %cst_53 : f32 to vector<48x128xf32>
    %173 = arith.mulf %172, %171 : vector<48x128xf32>
    %174 = arith.negf %173 : vector<48x128xf32>
    %175 = math.exp %174 : vector<48x128xf32>
    %cst_54 = arith.constant 1.000000e+00 : f32
    %176 = vector.broadcast %cst_54 : f32 to vector<48x128xf32>
    %177 = arith.addf %176, %175 : vector<48x128xf32>
    %178 = arith.divf %176, %177 : vector<48x128xf32>
    %179 = arith.mulf %171, %178 : vector<48x128xf32>
    %c144 = arith.constant 144 : index
    %c0_55 = arith.constant 0 : index
    %180 = vector.load %arg3[%c144, %c0_55] : memref<576x128xbf16, #tpu.memory_space<vmem>>, vector<128x32xbf16>
    %181 = arith.truncf %179 : vector<48x128xf32> to vector<48x128xbf16>
    %cst_56 = arith.constant dense<0.000000e+00> : vector<48x32xf32>
    %182 = tpu.matmul %181, %180, %cst_56 {dimension_numbers = #tpu.dot_dimension_numbers<[1], [0], [0], [1], [0, 0, 1, 1], [], []>} : vector<48x128xbf16>, vector<128x32xbf16>, vector<48x32xf32> -> vector<48x32xf32>
    %c9 = arith.constant 9 : index
    %c0_57 = arith.constant 0 : index
    %183 = vector.load %arg2[%c9, %c0_57] : memref<24x128xf32, #tpu.memory_space<vmem>>, vector<1x32xf32>
    %184 = vector.broadcast %183 : vector<1x32xf32> to vector<48x32xf32>
    %185 = arith.addf %182, %184 : vector<48x32xf32>
    %186 = arith.addf %141, %185 : vector<48x32xf32>
    %c10 = arith.constant 10 : index
    %c0_58 = arith.constant 0 : index
    %187 = vector.load %arg2[%c10, %c0_58] : memref<24x128xf32, #tpu.memory_space<vmem>>, vector<1x32xf32>
    %c11 = arith.constant 11 : index
    %c0_59 = arith.constant 0 : index
    %188 = vector.load %arg2[%c11, %c0_59] : memref<24x128xf32, #tpu.memory_space<vmem>>, vector<1x32xf32>
    %cst_60 = arith.constant dense<0.000000e+00> : vector<48xf32>
    %189 = vector.multi_reduction <add>, %186, %cst_60 [1] : vector<48x32xf32> to vector<48xf32>
    %190 = vector.shape_cast %189 : vector<48xf32> to vector<48x1xf32>
    %cst_61 = arith.constant 3.200000e+01 : f32
    %191 = vector.broadcast %cst_61 : f32 to vector<48x1xf32>
    %192 = arith.divf %190, %191 : vector<48x1xf32>
    %193 = vector.broadcast %192 : vector<48x1xf32> to vector<48x32xf32>
    %194 = arith.subf %186, %193 : vector<48x32xf32>
    %195 = arith.mulf %194, %194 : vector<48x32xf32>
    %cst_62 = arith.constant dense<0.000000e+00> : vector<48xf32>
    %196 = vector.multi_reduction <add>, %195, %cst_62 [1] : vector<48x32xf32> to vector<48xf32>
    %197 = vector.shape_cast %196 : vector<48xf32> to vector<48x1xf32>
    %cst_63 = arith.constant 3.200000e+01 : f32
    %198 = vector.broadcast %cst_63 : f32 to vector<48x1xf32>
    %199 = arith.divf %197, %198 : vector<48x1xf32>
    %200 = vector.broadcast %192 : vector<48x1xf32> to vector<48x32xf32>
    %201 = arith.subf %186, %200 : vector<48x32xf32>
    %cst_64 = arith.constant 9.99999974E-6 : f32
    %202 = vector.broadcast %cst_64 : f32 to vector<48x1xf32>
    %203 = arith.addf %199, %202 : vector<48x1xf32>
    %204 = math.rsqrt %203 : vector<48x1xf32>
    %205 = vector.broadcast %204 : vector<48x1xf32> to vector<48x32xf32>
    %206 = arith.mulf %201, %205 : vector<48x32xf32>
    %207 = vector.broadcast %187 : vector<1x32xf32> to vector<48x32xf32>
    %208 = arith.mulf %206, %207 : vector<48x32xf32>
    %209 = vector.broadcast %188 : vector<1x32xf32> to vector<48x32xf32>
    %210 = arith.addf %208, %209 : vector<48x32xf32>
    %c272 = arith.constant 272 : index
    %c0_65 = arith.constant 0 : index
    %211 = vector.load %arg3[%c272, %c0_65] : memref<576x128xbf16, #tpu.memory_space<vmem>>, vector<32x96xbf16>
    %212 = arith.truncf %210 : vector<48x32xf32> to vector<48x32xbf16>
    %cst_66 = arith.constant dense<0.000000e+00> : vector<48x96xf32>
    %213 = tpu.matmul %212, %211, %cst_66 {dimension_numbers = #tpu.dot_dimension_numbers<[1], [0], [0], [1], [0, 0, 1, 1], [], []>} : vector<48x32xbf16>, vector<32x96xbf16>, vector<48x96xf32> -> vector<48x96xf32>
    %c12 = arith.constant 12 : index
    %c0_67 = arith.constant 0 : index
    %214 = vector.load %arg2[%c12, %c0_67] : memref<24x128xf32, #tpu.memory_space<vmem>>, vector<1x96xf32>
    %215 = vector.broadcast %214 : vector<1x96xf32> to vector<48x96xf32>
    %216 = arith.addf %213, %215 : vector<48x96xf32>
    %cst_68 = arith.constant 0.000000e+00 : f32
    %217 = vector.broadcast %cst_68 : f32 to vector<48x32xf32>
    %218 = vector.extract_strided_slice %216 {offsets = [0, 0], sizes = [48, 16], strides = [1, 1]} : vector<48x96xf32> to vector<48x16xf32>
    %219 = arith.truncf %218 : vector<48x16xf32> to vector<48x16xbf16>
    %220 = vector.extract_strided_slice %216 {offsets = [0, 32], sizes = [48, 16], strides = [1, 1]} : vector<48x96xf32> to vector<48x16xf32>
    %221 = arith.truncf %220 : vector<48x16xf32> to vector<48x16xbf16>
    %222 = vector.extract_strided_slice %216 {offsets = [0, 64], sizes = [48, 16], strides = [1, 1]} : vector<48x96xf32> to vector<48x16xf32>
    %223 = arith.truncf %222 : vector<48x16xf32> to vector<48x16xbf16>
    %cst_69 = arith.constant dense<0.000000e+00> : vector<48x48xf32>
    %224 = tpu.matmul %219, %221, %cst_69 {dimension_numbers = #tpu.dot_dimension_numbers<[1], [1], [0], [0], [0, 0, 1, 0], [], []>} : vector<48x16xbf16>, vector<48x16xbf16>, vector<48x48xf32> -> vector<48x48xf32>
    %225 = arith.addf %224, %58 : vector<48x48xf32>
    %cst_70 = arith.constant dense<0xFF800000> : vector<48xf32>
    %226 = vector.multi_reduction <maximumf>, %225, %cst_70 [1] : vector<48x48xf32> to vector<48xf32>
    %227 = vector.shape_cast %226 : vector<48xf32> to vector<48x1xf32>
    %228 = vector.broadcast %227 : vector<48x1xf32> to vector<48x48xf32>
    %229 = arith.subf %225, %228 : vector<48x48xf32>
    %230 = math.exp %229 : vector<48x48xf32>
    %cst_71 = arith.constant dense<0.000000e+00> : vector<48xf32>
    %231 = vector.multi_reduction <add>, %230, %cst_71 [1] : vector<48x48xf32> to vector<48xf32>
    %232 = vector.shape_cast %231 : vector<48xf32> to vector<48x1xf32>
    %233 = tpu.reciprocal %232 {approx = true} : vector<48x1xf32> -> vector<48x1xf32>
    %234 = vector.broadcast %233 : vector<48x1xf32> to vector<48x48xf32>
    %235 = arith.mulf %230, %234 : vector<48x48xf32>
    %236 = arith.truncf %235 : vector<48x48xf32> to vector<48x48xbf16>
    %cst_72 = arith.constant dense<0.000000e+00> : vector<48x16xf32>
    %237 = tpu.matmul %236, %223, %cst_72 {dimension_numbers = #tpu.dot_dimension_numbers<[1], [0], [0], [1], [0, 0, 1, 1], [], []>} : vector<48x48xbf16>, vector<48x16xbf16>, vector<48x16xf32> -> vector<48x16xf32>
    %c304 = arith.constant 304 : index
    %c0_73 = arith.constant 0 : index
    %238 = vector.load %arg3[%c304, %c0_73] : memref<576x128xbf16, #tpu.memory_space<vmem>>, vector<16x32xbf16>
    %239 = arith.truncf %237 : vector<48x16xf32> to vector<48x16xbf16>
    %cst_74 = arith.constant dense<0.000000e+00> : vector<48x32xf32>
    %240 = tpu.matmul %239, %238, %cst_74 {dimension_numbers = #tpu.dot_dimension_numbers<[1], [0], [0], [1], [0, 0, 1, 1], [], []>} : vector<48x16xbf16>, vector<16x32xbf16>, vector<48x32xf32> -> vector<48x32xf32>
    %241 = arith.addf %217, %240 : vector<48x32xf32>
    %242 = vector.extract_strided_slice %216 {offsets = [0, 16], sizes = [48, 16], strides = [1, 1]} : vector<48x96xf32> to vector<48x16xf32>
    %243 = arith.truncf %242 : vector<48x16xf32> to vector<48x16xbf16>
    %244 = vector.extract_strided_slice %216 {offsets = [0, 48], sizes = [48, 16], strides = [1, 1]} : vector<48x96xf32> to vector<48x16xf32>
    %245 = arith.truncf %244 : vector<48x16xf32> to vector<48x16xbf16>
    %246 = vector.extract_strided_slice %216 {offsets = [0, 80], sizes = [48, 16], strides = [1, 1]} : vector<48x96xf32> to vector<48x16xf32>
    %247 = arith.truncf %246 : vector<48x16xf32> to vector<48x16xbf16>
    %cst_75 = arith.constant dense<0.000000e+00> : vector<48x48xf32>
    %248 = tpu.matmul %243, %245, %cst_75 {dimension_numbers = #tpu.dot_dimension_numbers<[1], [1], [0], [0], [0, 0, 1, 0], [], []>} : vector<48x16xbf16>, vector<48x16xbf16>, vector<48x48xf32> -> vector<48x48xf32>
    %249 = arith.addf %248, %58 : vector<48x48xf32>
    %cst_76 = arith.constant dense<0xFF800000> : vector<48xf32>
    %250 = vector.multi_reduction <maximumf>, %249, %cst_76 [1] : vector<48x48xf32> to vector<48xf32>
    %251 = vector.shape_cast %250 : vector<48xf32> to vector<48x1xf32>
    %252 = vector.broadcast %251 : vector<48x1xf32> to vector<48x48xf32>
    %253 = arith.subf %249, %252 : vector<48x48xf32>
    %254 = math.exp %253 : vector<48x48xf32>
    %cst_77 = arith.constant dense<0.000000e+00> : vector<48xf32>
    %255 = vector.multi_reduction <add>, %254, %cst_77 [1] : vector<48x48xf32> to vector<48xf32>
    %256 = vector.shape_cast %255 : vector<48xf32> to vector<48x1xf32>
    %257 = tpu.reciprocal %256 {approx = true} : vector<48x1xf32> -> vector<48x1xf32>
    %258 = vector.broadcast %257 : vector<48x1xf32> to vector<48x48xf32>
    %259 = arith.mulf %254, %258 : vector<48x48xf32>
    %260 = arith.truncf %259 : vector<48x48xf32> to vector<48x48xbf16>
    %cst_78 = arith.constant dense<0.000000e+00> : vector<48x16xf32>
    %261 = tpu.matmul %260, %247, %cst_78 {dimension_numbers = #tpu.dot_dimension_numbers<[1], [0], [0], [1], [0, 0, 1, 1], [], []>} : vector<48x48xbf16>, vector<48x16xbf16>, vector<48x16xf32> -> vector<48x16xf32>
    %c320 = arith.constant 320 : index
    %c0_79 = arith.constant 0 : index
    %262 = vector.load %arg3[%c320, %c0_79] : memref<576x128xbf16, #tpu.memory_space<vmem>>, vector<16x32xbf16>
    %263 = arith.truncf %261 : vector<48x16xf32> to vector<48x16xbf16>
    %cst_80 = arith.constant dense<0.000000e+00> : vector<48x32xf32>
    %264 = tpu.matmul %263, %262, %cst_80 {dimension_numbers = #tpu.dot_dimension_numbers<[1], [0], [0], [1], [0, 0, 1, 1], [], []>} : vector<48x16xbf16>, vector<16x32xbf16>, vector<48x32xf32> -> vector<48x32xf32>
    %265 = arith.addf %241, %264 : vector<48x32xf32>
    %c13 = arith.constant 13 : index
    %c0_81 = arith.constant 0 : index
    %266 = vector.load %arg2[%c13, %c0_81] : memref<24x128xf32, #tpu.memory_space<vmem>>, vector<1x32xf32>
    %267 = vector.broadcast %266 : vector<1x32xf32> to vector<48x32xf32>
    %268 = arith.addf %265, %267 : vector<48x32xf32>
    %269 = arith.addf %186, %268 : vector<48x32xf32>
    %c14 = arith.constant 14 : index
    %c0_82 = arith.constant 0 : index
    %270 = vector.load %arg2[%c14, %c0_82] : memref<24x128xf32, #tpu.memory_space<vmem>>, vector<1x32xf32>
    %c15 = arith.constant 15 : index
    %c0_83 = arith.constant 0 : index
    %271 = vector.load %arg2[%c15, %c0_83] : memref<24x128xf32, #tpu.memory_space<vmem>>, vector<1x32xf32>
    %cst_84 = arith.constant dense<0.000000e+00> : vector<48xf32>
    %272 = vector.multi_reduction <add>, %269, %cst_84 [1] : vector<48x32xf32> to vector<48xf32>
    %273 = vector.shape_cast %272 : vector<48xf32> to vector<48x1xf32>
    %cst_85 = arith.constant 3.200000e+01 : f32
    %274 = vector.broadcast %cst_85 : f32 to vector<48x1xf32>
    %275 = arith.divf %273, %274 : vector<48x1xf32>
    %276 = vector.broadcast %275 : vector<48x1xf32> to vector<48x32xf32>
    %277 = arith.subf %269, %276 : vector<48x32xf32>
    %278 = arith.mulf %277, %277 : vector<48x32xf32>
    %cst_86 = arith.constant dense<0.000000e+00> : vector<48xf32>
    %279 = vector.multi_reduction <add>, %278, %cst_86 [1] : vector<48x32xf32> to vector<48xf32>
    %280 = vector.shape_cast %279 : vector<48xf32> to vector<48x1xf32>
    %cst_87 = arith.constant 3.200000e+01 : f32
    %281 = vector.broadcast %cst_87 : f32 to vector<48x1xf32>
    %282 = arith.divf %280, %281 : vector<48x1xf32>
    %283 = vector.broadcast %275 : vector<48x1xf32> to vector<48x32xf32>
    %284 = arith.subf %269, %283 : vector<48x32xf32>
    %cst_88 = arith.constant 9.99999974E-6 : f32
    %285 = vector.broadcast %cst_88 : f32 to vector<48x1xf32>
    %286 = arith.addf %282, %285 : vector<48x1xf32>
    %287 = math.rsqrt %286 : vector<48x1xf32>
    %288 = vector.broadcast %287 : vector<48x1xf32> to vector<48x32xf32>
    %289 = arith.mulf %284, %288 : vector<48x32xf32>
    %290 = vector.broadcast %270 : vector<1x32xf32> to vector<48x32xf32>
    %291 = arith.mulf %289, %290 : vector<48x32xf32>
    %292 = vector.broadcast %271 : vector<1x32xf32> to vector<48x32xf32>
    %293 = arith.addf %291, %292 : vector<48x32xf32>
    %c336 = arith.constant 336 : index
    %c0_89 = arith.constant 0 : index
    %294 = vector.load %arg3[%c336, %c0_89] : memref<576x128xbf16, #tpu.memory_space<vmem>>, vector<32x128xbf16>
    %295 = arith.truncf %293 : vector<48x32xf32> to vector<48x32xbf16>
    %cst_90 = arith.constant dense<0.000000e+00> : vector<48x128xf32>
    %296 = tpu.matmul %295, %294, %cst_90 {dimension_numbers = #tpu.dot_dimension_numbers<[1], [0], [0], [1], [0, 0, 1, 1], [], []>} : vector<48x32xbf16>, vector<32x128xbf16>, vector<48x128xf32> -> vector<48x128xf32>
    %c16 = arith.constant 16 : index
    %c0_91 = arith.constant 0 : index
    %297 = vector.load %arg2[%c16, %c0_91] : memref<24x128xf32, #tpu.memory_space<vmem>>, vector<1x128xf32>
    %298 = vector.broadcast %297 : vector<1x128xf32> to vector<48x128xf32>
    %299 = arith.addf %296, %298 : vector<48x128xf32>
    %cst_92 = arith.constant 1.702000e+00 : f32
    %300 = vector.broadcast %cst_92 : f32 to vector<48x128xf32>
    %301 = arith.mulf %300, %299 : vector<48x128xf32>
    %302 = arith.negf %301 : vector<48x128xf32>
    %303 = math.exp %302 : vector<48x128xf32>
    %cst_93 = arith.constant 1.000000e+00 : f32
    %304 = vector.broadcast %cst_93 : f32 to vector<48x128xf32>
    %305 = arith.addf %304, %303 : vector<48x128xf32>
    %306 = arith.divf %304, %305 : vector<48x128xf32>
    %307 = arith.mulf %299, %306 : vector<48x128xf32>
    %c368 = arith.constant 368 : index
    %c0_94 = arith.constant 0 : index
    %308 = vector.load %arg3[%c368, %c0_94] : memref<576x128xbf16, #tpu.memory_space<vmem>>, vector<128x32xbf16>
    %309 = arith.truncf %307 : vector<48x128xf32> to vector<48x128xbf16>
    %cst_95 = arith.constant dense<0.000000e+00> : vector<48x32xf32>
    %310 = tpu.matmul %309, %308, %cst_95 {dimension_numbers = #tpu.dot_dimension_numbers<[1], [0], [0], [1], [0, 0, 1, 1], [], []>} : vector<48x128xbf16>, vector<128x32xbf16>, vector<48x32xf32> -> vector<48x32xf32>
    %c17 = arith.constant 17 : index
    %c0_96 = arith.constant 0 : index
    %311 = vector.load %arg2[%c17, %c0_96] : memref<24x128xf32, #tpu.memory_space<vmem>>, vector<1x32xf32>
    %312 = vector.broadcast %311 : vector<1x32xf32> to vector<48x32xf32>
    %313 = arith.addf %310, %312 : vector<48x32xf32>
    %314 = arith.addf %269, %313 : vector<48x32xf32>
    %315 = tpu.iota {dimensions = array<i32: 0>} : vector<2x48xi32>
    %316 = tpu.iota {dimensions = array<i32: 1>} : vector<2x48xi32>
    %c24_i32_97 = arith.constant 24 : i32
    %317 = vector.broadcast %c24_i32_97 : i32 to vector<2x48xi32>
    %318 = arith.muli %315, %317 : vector<2x48xi32>
    %319 = arith.cmpi eq, %316, %318 : vector<2x48xi32>
    %320 = arith.extui %319 : vector<2x48xi1> to vector<2x48xi32>
    %321 = arith.sitofp %320 : vector<2x48xi32> to vector<2x48xf32>
    %cst_98 = arith.constant dense<0.000000e+00> : vector<2x32xf32>
    %322 = tpu.matmul %321, %314, %cst_98 {dimension_numbers = #tpu.dot_dimension_numbers<[1], [0], [0], [1], [0, 0, 1, 1], [], []>} : vector<2x48xf32>, vector<48x32xf32>, vector<2x32xf32> -> vector<2x32xf32>
    %c18 = arith.constant 18 : index
    %c0_99 = arith.constant 0 : index
    %323 = vector.load %arg2[%c18, %c0_99] : memref<24x128xf32, #tpu.memory_space<vmem>>, vector<1x32xf32>
    %c19 = arith.constant 19 : index
    %c0_100 = arith.constant 0 : index
    %324 = vector.load %arg2[%c19, %c0_100] : memref<24x128xf32, #tpu.memory_space<vmem>>, vector<1x32xf32>
    %cst_101 = arith.constant dense<0.000000e+00> : vector<2xf32>
    %325 = vector.multi_reduction <add>, %322, %cst_101 [1] : vector<2x32xf32> to vector<2xf32>
    %326 = vector.shape_cast %325 : vector<2xf32> to vector<2x1xf32>
    %cst_102 = arith.constant 3.200000e+01 : f32
    %327 = vector.broadcast %cst_102 : f32 to vector<2x1xf32>
    %328 = arith.divf %326, %327 : vector<2x1xf32>
    %329 = vector.broadcast %328 : vector<2x1xf32> to vector<2x32xf32>
    %330 = arith.subf %322, %329 : vector<2x32xf32>
    %331 = arith.mulf %330, %330 : vector<2x32xf32>
    %cst_103 = arith.constant dense<0.000000e+00> : vector<2xf32>
    %332 = vector.multi_reduction <add>, %331, %cst_103 [1] : vector<2x32xf32> to vector<2xf32>
    %333 = vector.shape_cast %332 : vector<2xf32> to vector<2x1xf32>
    %cst_104 = arith.constant 3.200000e+01 : f32
    %334 = vector.broadcast %cst_104 : f32 to vector<2x1xf32>
    %335 = arith.divf %333, %334 : vector<2x1xf32>
    %336 = vector.broadcast %328 : vector<2x1xf32> to vector<2x32xf32>
    %337 = arith.subf %322, %336 : vector<2x32xf32>
    %cst_105 = arith.constant 9.99999974E-6 : f32
    %338 = vector.broadcast %cst_105 : f32 to vector<2x1xf32>
    %339 = arith.addf %335, %338 : vector<2x1xf32>
    %340 = math.rsqrt %339 : vector<2x1xf32>
    %341 = vector.broadcast %340 : vector<2x1xf32> to vector<2x32xf32>
    %342 = arith.mulf %337, %341 : vector<2x32xf32>
    %343 = vector.broadcast %323 : vector<1x32xf32> to vector<2x32xf32>
    %344 = arith.mulf %342, %343 : vector<2x32xf32>
    %345 = vector.broadcast %324 : vector<1x32xf32> to vector<2x32xf32>
    %346 = arith.addf %344, %345 : vector<2x32xf32>
    %c496 = arith.constant 496 : index
    %c0_106 = arith.constant 0 : index
    %347 = vector.load %arg3[%c496, %c0_106] : memref<576x128xbf16, #tpu.memory_space<vmem>>, vector<32x16xbf16>
    %348 = arith.truncf %346 : vector<2x32xf32> to vector<2x32xbf16>
    %cst_107 = arith.constant dense<0.000000e+00> : vector<2x16xf32>
    %349 = tpu.matmul %348, %347, %cst_107 {dimension_numbers = #tpu.dot_dimension_numbers<[1], [0], [0], [1], [0, 0, 1, 1], [], []>} : vector<2x32xbf16>, vector<32x16xbf16>, vector<2x16xf32> -> vector<2x16xf32>
    %c528 = arith.constant 528 : index
    %c0_108 = arith.constant 0 : index
    %350 = vector.load %arg3[%c528, %c0_108] : memref<576x128xbf16, #tpu.memory_space<vmem>>, vector<16x32xbf16>
    %351 = arith.truncf %349 : vector<2x16xf32> to vector<2x16xbf16>
    %cst_109 = arith.constant dense<0.000000e+00> : vector<2x32xf32>
    %352 = tpu.matmul %351, %350, %cst_109 {dimension_numbers = #tpu.dot_dimension_numbers<[1], [0], [0], [1], [0, 0, 1, 1], [], []>} : vector<2x16xbf16>, vector<16x32xbf16>, vector<2x32xf32> -> vector<2x32xf32>
    %c20 = arith.constant 20 : index
    %c0_110 = arith.constant 0 : index
    %353 = vector.load %arg2[%c20, %c0_110] : memref<24x128xf32, #tpu.memory_space<vmem>>, vector<1x32xf32>
    %354 = vector.broadcast %353 : vector<1x32xf32> to vector<2x32xf32>
    %355 = arith.addf %352, %354 : vector<2x32xf32>
    %cst_111 = arith.constant 0.000000e+00 : f32
    %356 = vector.broadcast %cst_111 : f32 to vector<2x32xf32>
    %357 = arith.maximumf %355, %356 : vector<2x32xf32>
    %c544 = arith.constant 544 : index
    %c0_112 = arith.constant 0 : index
    %358 = vector.load %arg3[%c544, %c0_112] : memref<576x128xbf16, #tpu.memory_space<vmem>>, vector<32x8xbf16>
    %359 = arith.truncf %357 : vector<2x32xf32> to vector<2x32xbf16>
    %cst_113 = arith.constant dense<0.000000e+00> : vector<2x8xf32>
    %360 = tpu.matmul %359, %358, %cst_113 {dimension_numbers = #tpu.dot_dimension_numbers<[1], [0], [0], [1], [0, 0, 1, 1], [], []>} : vector<2x32xbf16>, vector<32x8xbf16>, vector<2x8xf32> -> vector<2x8xf32>
    %c21 = arith.constant 21 : index
    %c0_114 = arith.constant 0 : index
    %361 = vector.load %arg2[%c21, %c0_114] : memref<24x128xf32, #tpu.memory_space<vmem>>, vector<1x8xf32>
    %362 = vector.broadcast %361 : vector<1x8xf32> to vector<2x8xf32>
    %363 = arith.addf %360, %362 : vector<2x8xf32>
    %c0_115 = arith.constant 0 : index
    %c0_116 = arith.constant 0 : index
    %364 = vector.load %arg4[%c0_115, %c0_116] : memref<2x8xf32, #tpu.memory_space<vmem>>, vector<2x8xf32>
    tpu.vector_store %arg4[%c0_115, %c0_116], %363 {strides = array<i32>} : memref<2x8xf32, #tpu.memory_space<vmem>>, vector<2x8xf32>,
    return
  }
}

</mosaic_0001>

<bundles_post_ra>
// kernel: clip_adapter_forward.1
= control target key start
LH: loop header
LB: loop body
LE: loop exit
PB: predicated region body
PF: predicated region fallthrough
CT: control target
= control target key end

     0   :  { %v3920_v1 = vmov 0.0   ;;  %vm3921_vm0 = vmmov 0   ;;  %vm58_vm1 = vcmask 392192   ;;  %s4933_s0 = inlined_call_operand.vmem [shape: f32[48,48], index: 0, kind: input, shape index: {}]   ;;  %s4934_s1 = inlined_call_operand.vmem [shape: f32[48,32], index: 1, kind: input, shape index: {}]   ;;  %s4935_s2 = inlined_call_operand.vmem [shape: f32[24,128], index: 2, kind: input, shape index: {}]   ;;  %s4936_s3 = inlined_call_operand.vmem [shape: bf16[576,128], index: 3, kind: input, shape index: {}]   ;;  %s4937_s4 = inlined_call_operand.hbm [shape: f32[2,8], index: 4, kind: output, shape index: {}]  }
   0x1   :  { %v3654_v0 = vld [vmem:[%s4936_s3] sm:$0xff]   ;;  %3260 = vmatprep.subr.bf16.mxu0 %v3920_v1  ;;  %3278 = vmatprep.subr.bf16.mxu1 %v3920_v1  ;;  %v3655_v2 = vld [vmem:[%s4936_s3 + $0x8] sm:$0xff]   ;;  %v3656_v3 = vld [vmem:[%s4936_s3 + $0x10] sm:$0xff]  }
   0x2   :  { %3261 = vmatpush3.bf16.msra.mxu0 %v3654_v0  ;;  %3266 = vmatprep.mubr.msk.bf16.mxu0 %vm3921_vm0, %v3920_v1  ;;  %v19_v4 = vld [vmem:[%s4933_s0] sm:$0xff]  ;;  %v20_v5 = vld [vmem:[%s4933_s0 + $0x8] sm:$0xff]  ;;  %v21_v7 = vld [vmem:[%s4933_s0 + $0x10] sm:$0xff] }
   0x3   :  { %3262 = vmatprep.subr.bf16.mxu0 %v3920_v1  ;;  %3282 = vmatprep.mubr.msk.bf16.mxu1 %vm3921_vm0, %v3920_v1  ;;  %v31_v6 = vpack.c.bf16 %v20_v5, %v19_v4  ;;  %v22_v8 = vld [vmem:[%s4933_s0 + $0x18] sm:$0xff]  ;;  %v23_v10 = vld [vmem:[%s4933_s0 + $0x20] sm:$0xff]  ;;  %v24_v11 = vld [vmem:[%s4933_s0 + $0x28] sm:$0xff] }
   0x4   :  { %v32_v9 = vpack.c.bf16 %v22_v8, %v21_v7  ;;  %v33_v12 = vpack.c.bf16 %v24_v11, %v23_v10 }
   0x6   :  { %3263 = vmatpush3.bf16.msra.mxu0 %v3655_v2 }
   0x7   :  { %3264 = vmatprep.subr.bf16.mxu0 %v3920_v1 }
   0xa   :  { %3265 = vmatpush3.bf16.msra.mxu0 %v3656_v3 }
   0xb   :  { %3312 = vmatprep.subr.bf16.mxu0 %v3920_v1 }
   0xd   :  { %3267 = vmatmul.mubr.msk.bf16.vlgmr.msra.gmra.mrb[0].mxu0 %vm58_vm1, %v31_v6 }
   0xe   :  { %3270 = vmatprep.mubr.msk.bf16.mxu0 %vm3921_vm0, %v3920_v1 }
  0x15   :  { %3271 = vmatmul.mubr.msk.bf16.gmra.mrb[4].mxu0 %vm58_vm1, %v32_v9 }
  0x16   :  { %3274 = vmatprep.mubr.msk.bf16.mxu0 %vm3921_vm0, %v3920_v1 }
  0x17   :  { %9 = vsyncpa [#allocation3], 0  ;;  %v34_v13 = vld [vmem:[%s4934_s1] sm:$0xff]  ;;  %v35_v15 = vld [vmem:[%s4934_s1 + $0x8] sm:$0xff]  ;;  %vm127_vm2 = vcmask 261120   ;;  %s3922_s5 = smov 96  }
  0x18   :  { %v36_v22 = vld [vmem:[%s4934_s1 + $0x10] sm:$0xff]  ;;  %v37_v25 = vld [vmem:[%s4934_s1 + $0x18] sm:$0xff]  ;;  %v38_v32 = vld [vmem:[%s4934_s1 + $0x20] sm:$0xff]  ;;  %s3923_s6 = smov 80   ;;  %s3924_s7 = smov 112   ;;  %vm514_vm3 = vcmask 130048  }
  0x19   :  { %v39_v35 = vld [vmem:[%s4934_s1 + $0x28] sm:$0xff]  ;;  %s3925_s8 = smov 64   ;;  %s3927_s9 = smov 48   ;;  %vm2784_vm9 = vcmask 254976   ;;  %vm2991_vm10 = vcmask 58368  }
  0x1a   :  { %s3929_s25 = smov [#allocation2]  }
  0x1d   :  { %3275 = vmatmul.mubr.msk.bf16.gmra.mrb[8].mxu0 %vm58_vm1, %v33_v12 }
  0x1e   :  { %3318 = vmatprep.mubr.msk.bf16.mxu0 %vm3921_vm0, %v3920_v1 }
  0xe0   :  { %v102_v14 = vpop.f32.mrb[0].mxu0 }
  0xe1   :  { %v103_v16 = vadd.f32 %v102_v14, %v34_v13  ;;  %v3268_v17 = vpop.f32.mrb[1].mxu0 }
  0xe2   :  { %v105_v18 = vpop.f32.mrb[2].mxu0 }
  0xe3   :  { %v106_v19 = vadd.f32 %v105_v18, %v35_v15  ;;  %v3269_v20 = vpop.f32.mrb[3].mxu0  ;;  %v128_v21 = vsel %vm127_vm2, %v103_v16, 0.0 }
  0xe4   :  { %129 = vadd.xlane.f32.xlu0 %v128_v21 }
  0xe5   :  { %v131_v23 = vsel %vm127_vm2, %v106_v19, 0.0 }
  0xe8   :  { %132 = vadd.xlane.f32.xlu0 %v131_v23  ;;  %v110_v24 = vpop.f32.mrb[4].mxu0  ;;  %v3013_v23 = vld [vmem:[%s4935_s2] ss:$0 sm:$0xff] }
  0xe9   :  { %v111_v26 = vadd.f32 %v110_v24, %v36_v22  ;;  %v3272_v27 = vpop.f32.mrb[5].mxu0 }
  0xea   :  { %v113_v28 = vpop.f32.mrb[6].mxu0  ;;  %v3014_v27 = vld [vmem:[%s4935_s2 + $0x1] ss:$0 sm:$0xff] }
  0xeb   :  { %v114_v29 = vadd.f32 %v113_v28, %v37_v25  ;;  %v3273_v30 = vpop.f32.mrb[7].mxu0  ;;  %v134_v31 = vsel %vm127_vm2, %v111_v26, 0.0 }
  0xec   :  { %135 = vadd.xlane.f32.xlu1 %v134_v31 }
  0xed   :  { %v137_v33 = vsel %vm127_vm2, %v114_v29, 0.0 }
  0xf0   :  { %138 = vadd.xlane.f32.xlu1 %v137_v33  ;;  %v118_v34 = vpop.f32.mrb[8].mxu0 }
  0xf1   :  { %v119_v36 = vadd.f32 %v118_v34, %v38_v32  ;;  %v3276_v37 = vpop.f32.mrb[9].mxu0 }
  0xf2   :  { %v121_v38 = vpop.f32.mrb[10].mxu0 }
  0xf3   :  { %v122_v39 = vadd.f32 %v121_v38, %v39_v35  ;;  %v3277_v40 = vpop.f32.mrb[11].mxu0  ;;  %v140_v41 = vsel %vm127_vm2, %v119_v36, 0.0 }
  0xf4   :  { %141 = vadd.xlane.f32.xlu0 %v140_v41 }
  0xf5   :  { %v143_v42 = vsel %vm127_vm2, %v122_v39, 0.0 }
  0xf6   :  { %144 = vadd.xlane.f32.xlu1 %v143_v42 }
 0x171   :  { %v130_v43 = vpop.xlane.xlu0 %129 }
 0x172   :  { %v147_v44 = vmul.f32 0.03125, %v130_v43 }
 0x174   :  { %v153_v45 = vsub.f32 %v103_v16, %v147_v44 }
 0x175   :  { %v133_v46 = vpop.xlane.xlu0 %132 }
 0x176   :  { %v148_v47 = vmul.f32 0.03125, %v133_v46  ;;  %v159_v48 = vmul.f32 %v153_v45, %v153_v45 }
 0x178   :  { %v154_v49 = vsub.f32 %v106_v19, %v148_v47  ;;  %v165_v50 = vsel %vm127_vm2, %v159_v48, 0.0 }
 0x179   :  { %v136_v51 = vpop.xlane.xlu1 %135  ;;  %166 = vadd.xlane.f32.xlu0 %v165_v50 }
 0x17a   :  { %v149_v52 = vmul.f32 0.03125, %v136_v51  ;;  %v160_v53 = vmul.f32 %v154_v49, %v154_v49 }
 0x17c   :  { %v155_v54 = vsub.f32 %v111_v26, %v149_v52  ;;  %v168_v55 = vsel %vm127_vm2, %v160_v53, 0.0 }
 0x17d   :  { %v139_v56 = vpop.xlane.xlu1 %138  ;;  %169 = vadd.xlane.f32.xlu1 %v168_v55 }
 0x17e   :  { %v150_v57 = vmul.f32 0.03125, %v139_v56  ;;  %v161_v58 = vmul.f32 %v155_v54, %v155_v54 }
 0x180   :  { %v156_v59 = vsub.f32 %v114_v29, %v150_v57  ;;  %v171_v60 = vsel %vm127_vm2, %v161_v58, 0.0 }
 0x181   :  { %172 = vadd.xlane.f32.xlu0 %v171_v60  ;;  %v142_v61 = vpop.xlane.xlu0 %141 }
 0x182   :  { %v151_v62 = vmul.f32 0.03125, %v142_v61  ;;  %v162_v63 = vmul.f32 %v156_v59, %v156_v59 }
 0x183   :  { %v145_v0 = vpop.xlane.xlu1 %144 }
 0x184   :  { %v157_v2 = vsub.f32 %v119_v36, %v151_v62  ;;  %v152_v3 = vmul.f32 0.03125, %v145_v0  ;;  %v174_v4 = vsel %vm127_vm2, %v162_v63, 0.0 }
 0x185   :  { %175 = vadd.xlane.f32.xlu1 %v174_v4 }
 0x186   :  { %v158_v5 = vsub.f32 %v122_v39, %v152_v3  ;;  %v163_v6 = vmul.f32 %v157_v2, %v157_v2 }
 0x188   :  { %v177_v7 = vsel %vm127_vm2, %v163_v6, 0.0  ;;  %v164_v8 = vmul.f32 %v158_v5, %v158_v5 }
 0x189   :  { %178 = vadd.xlane.f32.xlu0 %v177_v7 }
 0x18a   :  { %v180_v9 = vsel %vm127_vm2, %v164_v8, 0.0 }
 0x18b   :  { %181 = vadd.xlane.f32.xlu1 %v180_v9 }
 0x206   :  { %v167_v10 = vpop.xlane.xlu0 %166 }
 0x207   :  { %v183_v11 = vmul.f32 0.03125, %v167_v10 }
 0x209   :  { %v189_v12 = vadd.f32 1e-05, %v183_v11 }
 0x20a   :  { %v170_v13 = vpop.xlane.xlu1 %169 }
 0x20b   :  { %3690 = vrsqrt.f32 %v189_v12  ;;  %v184_v14 = vmul.f32 0.03125, %v170_v13 }
 0x20d   :  { %v190_v15 = vadd.f32 1e-05, %v184_v14 }
 0x20e   :  { %v173_v16 = vpop.xlane.xlu0 %172 }
 0x20f   :  { %3692 = vrsqrt.f32 %v190_v15  ;;  %v185_v17 = vmul.f32 0.03125, %v173_v16 }
 0x211   :  { %v191_v18 = vadd.f32 1e-05, %v185_v17 }
 0x212   :  { %v176_v19 = vpop.xlane.xlu1 %175 }
 0x213   :  { %3694 = vrsqrt.f32 %v191_v18  ;;  %v186_v20 = vmul.f32 0.03125, %v176_v19 }
 0x215   :  { %v3691_v21 = vpop.eup %3690  ;;  %v192_v22 = vadd.f32 1e-05, %v186_v20 }
 0x216   :  { %v179_v24 = vpop.xlane.xlu0 %178  ;;  %v201_v25 = vmul.f32 %v3691_v21, %v153_v45 }
 0x217   :  { %3696 = vrsqrt.f32 %v192_v22  ;;  %v187_v26 = vmul.f32 0.03125, %v179_v24 }
 0x218   :  { %v182_v28 = vpop.xlane.xlu1 %181  ;;  %v211_v29 = vmul.f32 %v3013_v23, %v201_v25 }
 0x219   :  { %v3693_v30 = vpop.eup %3692  ;;  %v193_v31 = vadd.f32 1e-05, %v187_v26  ;;  %v188_v32 = vmul.f32 0.03125, %v182_v28  ;;  %v3658_v28 = vld [vmem:[%s4936_s3 + $0x20] sm:$0xff]  }
 0x21a   :  { %v4036_v33 = vadd.f32 %v3014_v27, %v211_v29  ;;  %v202_v34 = vmul.f32 %v3693_v30, %v154_v49 }
 0x21b   :  { %3698 = vrsqrt.f32 %v193_v31  ;;  %v194_v35 = vadd.f32 1e-05, %v188_v32 }
 0x21c   :  { %v314_v36 = vsel %vm127_vm2, %v4036_v33, 0.0  ;;  %v212_v37 = vmul.f32 %v3013_v23, %v202_v34 }
 0x21d   :  { %v3695_v38 = vpop.eup %3694  ;;  %3700 = vrsqrt.f32 %v194_v35  ;;  %315 = vadd.xlane.f32.xlu0 %v314_v36 }
 0x21e   :  { %v4040_v39 = vadd.f32 %v3014_v27, %v212_v37  ;;  %v203_v40 = vmul.f32 %v3695_v38, %v155_v54 }
 0x220   :  { %v317_v41 = vsel %vm127_vm2, %v4040_v39, 0.0  ;;  %v213_v42 = vmul.f32 %v3013_v23, %v203_v40 }
 0x221   :  { %v3697_v43 = vpop.eup %3696  ;;  %318 = vadd.xlane.f32.xlu1 %v317_v41 }
 0x222   :  { %v4044_v44 = vadd.f32 %v3014_v27, %v213_v42  ;;  %v204_v45 = vmul.f32 %v3697_v43, %v156_v59 }
 0x224   :  { %v320_v46 = vsel %vm127_vm2, %v4044_v44, 0.0  ;;  %v214_v47 = vmul.f32 %v3013_v23, %v204_v45 }
 0x225   :  { %v3699_v48 = vpop.eup %3698  ;;  %321 = vadd.xlane.f32.xlu0 %v320_v46 }
 0x226   :  { %v4048_v49 = vadd.f32 %v3014_v27, %v214_v47  ;;  %v205_v50 = vmul.f32 %v3699_v48, %v157_v2  ;;  %v3015_v48 = vld [vmem:[%s4935_s2 + $0x2] ss:$0 sm:$0xff] }
 0x227   :  { %v3701_v51 = vpop.eup %3700 }
 0x228   :  { %v323_v52 = vsel %vm127_vm2, %v4048_v49, 0.0  ;;  %v215_v53 = vmul.f32 %v3013_v23, %v205_v50  ;;  %v206_v54 = vmul.f32 %v3701_v51, %v158_v5 }
 0x229   :  { %324 = vadd.xlane.f32.xlu1 %v323_v52 }
 0x22a   :  { %v4052_v55 = vadd.f32 %v3014_v27, %v215_v53  ;;  %v216_v56 = vmul.f32 %v3013_v23, %v206_v54 }
 0x22c   :  { %v326_v57 = vsel %vm127_vm2, %v4052_v55, 0.0  ;;  %v4056_v58 = vadd.f32 %v3014_v27, %v216_v56  ;;  %v3657_v27 = vld [vmem:[%s4936_s3 + $0x18] sm:$0xff]  }
 0x22d   :  { %327 = vadd.xlane.f32.xlu0 %v326_v57  ;;  %3279 = vmatpush3.bf16.msra.mxu1 %v3657_v27 }
 0x22e   :  { %v329_v59 = vsel %vm127_vm2, %v4056_v58, 0.0  ;;  %3280 = vmatprep.subr.bf16.mxu1 %v3920_v1 }
 0x22f   :  { %330 = vadd.xlane.f32.xlu1 %v329_v59  ;;  %v3016_v59 = vld [vmem:[%s4935_s2 + $0x3] ss:$0 sm:$0xff] }
 0x231   :  { %3281 = vmatpush3.bf16.msra.mxu1 %v3658_v28 }
 0x232   :  { %3294 = vmatprep.subr.bf16.mxu1 %v3920_v1 }
 0x2aa   :  { %v316_v60 = vpop.xlane.xlu0 %315 }
 0x2ab   :  { %v332_v61 = vmul.f32 0.03125, %v316_v60 }
 0x2ad   :  { %v338_v62 = vsub.f32 %v4036_v33, %v332_v61 }
 0x2ae   :  { %v319_v63 = vpop.xlane.xlu1 %318 }
 0x2af   :  { %v333_v0 = vmul.f32 0.03125, %v319_v63  ;;  %v344_v2 = vmul.f32 %v338_v62, %v338_v62 }
 0x2b1   :  { %v339_v3 = vsub.f32 %v4040_v39, %v333_v0  ;;  %v350_v4 = vsel %vm127_vm2, %v344_v2, 0.0 }
 0x2b2   :  { %351 = vadd.xlane.f32.xlu0 %v350_v4  ;;  %v322_v5 = vpop.xlane.xlu0 %321 }
 0x2b3   :  { %v334_v6 = vmul.f32 0.03125, %v322_v5  ;;  %v345_v7 = vmul.f32 %v339_v3, %v339_v3 }
 0x2b5   :  { %v4064_v8 = vsub.f32 %v4044_v44, %v334_v6  ;;  %v353_v9 = vsel %vm127_vm2, %v345_v7, 0.0 }
 0x2b6   :  { %354 = vadd.xlane.f32.xlu1 %v353_v9  ;;  %v325_v10 = vpop.xlane.xlu1 %324 }
 0x2b7   :  { %v335_v11 = vmul.f32 0.03125, %v325_v10  ;;  %v346_v12 = vmul.f32 %v4064_v8, %v4064_v8 }
 0x2b9   :  { %v4070_v13 = vsub.f32 %v4048_v49, %v335_v11  ;;  %v356_v14 = vsel %vm127_vm2, %v346_v12, 0.0 }
 0x2ba   :  { %357 = vadd.xlane.f32.xlu0 %v356_v14  ;;  %v328_v15 = vpop.xlane.xlu0 %327 }
 0x2bb   :  { %v336_v16 = vmul.f32 0.03125, %v328_v15  ;;  %v347_v17 = vmul.f32 %v4070_v13, %v4070_v13 }
 0x2bc   :  { %v331_v18 = vpop.xlane.xlu1 %330 }
 0x2bd   :  { %v4076_v19 = vsub.f32 %v4052_v55, %v336_v16  ;;  %v337_v20 = vmul.f32 0.03125, %v331_v18  ;;  %v359_v21 = vsel %vm127_vm2, %v347_v17, 0.0 }
 0x2be   :  { %360 = vadd.xlane.f32.xlu1 %v359_v21 }
 0x2bf   :  { %v343_v22 = vsub.f32 %v4056_v58, %v337_v20  ;;  %v348_v23 = vmul.f32 %v4076_v19, %v4076_v19 }
 0x2c1   :  { %v362_v24 = vsel %vm127_vm2, %v348_v23, 0.0  ;;  %v349_v25 = vmul.f32 %v343_v22, %v343_v22 }
 0x2c2   :  { %363 = vadd.xlane.f32.xlu0 %v362_v24 }
 0x2c3   :  { %v365_v26 = vsel %vm127_vm2, %v349_v25, 0.0 }
 0x2c4   :  { %366 = vadd.xlane.f32.xlu1 %v365_v26 }
 0x33f   :  { %v352_v29 = vpop.xlane.xlu0 %351 }
 0x340   :  { %v368_v30 = vmul.f32 0.03125, %v352_v29 }
 0x342   :  { %v374_v31 = vadd.f32 1e-05, %v368_v30 }
 0x343   :  { %v355_v32 = vpop.xlane.xlu1 %354 }
 0x344   :  { %3702 = vrsqrt.f32 %v374_v31  ;;  %v369_v34 = vmul.f32 0.03125, %v355_v32 }
 0x346   :  { %v375_v35 = vadd.f32 1e-05, %v369_v34 }
 0x347   :  { %v358_v36 = vpop.xlane.xlu0 %357 }
 0x348   :  { %3704 = vrsqrt.f32 %v375_v35  ;;  %v370_v37 = vmul.f32 0.03125, %v358_v36 }
 0x34a   :  { %v376_v38 = vadd.f32 1e-05, %v370_v37 }
 0x34b   :  { %v361_v40 = vpop.xlane.xlu1 %360 }
 0x34c   :  { %3706 = vrsqrt.f32 %v376_v38  ;;  %v371_v41 = vmul.f32 0.03125, %v361_v40 }
 0x34e   :  { %v3703_v42 = vpop.eup %3702  ;;  %v377_v43 = vadd.f32 1e-05, %v371_v41 }
 0x34f   :  { %v364_v45 = vpop.xlane.xlu0 %363  ;;  %v386_v46 = vmul.f32 %v3703_v42, %v338_v62 }
 0x350   :  { %3708 = vrsqrt.f32 %v377_v43  ;;  %v372_v47 = vmul.f32 0.03125, %v364_v45 }
 0x351   :  { %v367_v50 = vpop.xlane.xlu1 %366  ;;  %v396_v56 = vmul.f32 %v3015_v48, %v386_v46 }
 0x352   :  { %v3705_v51 = vpop.eup %3704  ;;  %v378_v52 = vadd.f32 1e-05, %v372_v47  ;;  %v373_v53 = vmul.f32 0.03125, %v367_v50 }
 0x353   :  { %v387_v54 = vmul.f32 %v3705_v51, %v339_v3  ;;  %v406_v62 = vadd.f32 %v3016_v59, %v396_v56 }
 0x354   :  { %3710 = vrsqrt.f32 %v378_v52  ;;  %v379_v57 = vadd.f32 1e-05, %v373_v53 }
 0x355   :  { %v397_v60 = vmul.f32 %v3015_v48, %v387_v54 }
 0x356   :  { %v3707_v61 = vpop.eup %3706  ;;  %3712 = vrsqrt.f32 %v379_v57 }
 0x357   :  { %v407_v63 = vadd.f32 %v3016_v59, %v397_v60  ;;  %v388_v0 = vmul.f32 %v3707_v61, %v4064_v8 }
 0x359   :  { %v416_v2 = vpack.c.bf16 %v407_v63, %v406_v62  ;;  %v398_v5 = vmul.f32 %v3015_v48, %v388_v0  ;;  %v227_v63 = vlaneseq }
 0x35a   :  { %v3709_v4 = vpop.eup %3708 }
 0x35b   :  { %3283 = vmatmul.mubr.msk.bf16.vlgmr.msra.gmra.mrb[0].mxu1 %vm127_vm2, %v416_v2  ;;  %v389_v3 = vmul.f32 %v3709_v4, %v4070_v13  ;;  %v408_v9 = vadd.f32 %v3016_v59, %v398_v5  ;;  %v4174_v0 = vand.u32 127, %v227_v63  ;;  %v3926_v2 = vmov -1e+30  }
 0x35c   :  { %3286 = vmatprep.mubr.msk.bf16.mxu1 %vm3921_vm0, %v3920_v1 }
 0x35d   :  { %v399_v6 = vmul.f32 %v3015_v48, %v389_v3  ;;  %vm261_vm4 = vcmp.lt.s32.totalorder %v4174_v0, 17  ;;  %vm292_vm5 = vcmp.ge.s32.totalorder %v4174_v0, 24  ;;  %vm299_vm6 = vcmp.lt.s32.totalorder %v4174_v0, 41 }
 0x35e   :  { %v3711_v7 = vpop.eup %3710  ;;  %v4177_v4 = vsel %vm261_vm4, 0.0, %v3926_v2  ;;  %vm303_vm7 = vmand %vm292_vm5, %vm299_vm6 }
 0x35f   :  { %v409_v10 = vadd.f32 %v3016_v59, %v399_v6  ;;  %v390_v11 = vmul.f32 %v3711_v7, %v4076_v19  ;;  %v3017_v19 = vld [vmem:[%s4935_s2 + $0x4] ss:$0 sm:$0xff] }
 0x360   :  { %v3713_v12 = vpop.eup %3712 }
 0x361   :  { %v417_v14 = vpack.c.bf16 %v409_v10, %v408_v9  ;;  %v391_v15 = vmul.f32 %v3713_v12, %v343_v22  ;;  %v400_v8 = vmul.f32 %v3015_v48, %v390_v11 }
 0x363   :  { %3287 = vmatmul.mubr.msk.bf16.gmra.mrb[4].mxu1 %vm127_vm2, %v417_v14  ;;  %v401_v16 = vmul.f32 %v3015_v48, %v391_v15  ;;  %v410_v17 = vadd.f32 %v3016_v59, %v400_v8  ;;  %v4191_v15 = vsel %vm303_vm7, 0.0, %v3926_v2 }
 0x364   :  { %3290 = vmatprep.mubr.msk.bf16.mxu1 %vm3921_vm0, %v3920_v1 }
 0x365   :  { %v411_v13 = vadd.f32 %v3016_v59, %v401_v16 }
 0x367   :  { %v418_v18 = vpack.c.bf16 %v411_v13, %v410_v17 }
 0x36b   :  { %3291 = vmatmul.mubr.msk.bf16.gmra.mrb[8].mxu1 %vm127_vm2, %v418_v18 }
 0x36c   :  { %3300 = vmatprep.mubr.msk.bf16.mxu1 %vm3921_vm0, %v3920_v1 }
 0x42e   :  { %v479_v20 = vpop.f32.mrb[0].mxu1 }
 0x42f   :  { %v3284_v21 = vpop.f32.mrb[1].mxu1  ;;  %v480_v23 = vadd.f32 %v3017_v19, %v479_v20 }
 0x430   :  { %v482_v22 = vpop.f32.mrb[2].mxu1 }
 0x431   :  { %v483_v24 = vadd.f32 %v3017_v19, %v482_v22  ;;  %v3285_v25 = vpop.f32.mrb[3].mxu1 }
 0x433   :  { %v4113_v26 = vpack.c.bf16 %v483_v24, %v480_v23 }
 0x435   :  { %508 = vrot.lane.b32.xlu0 %v4113_v26, %s3922_s5 }
 0x436   :  { %v487_v27 = vpop.f32.mrb[4].mxu1 }
 0x437   :  { %v3288_v28 = vpop.f32.mrb[5].mxu1  ;;  %v488_v30 = vadd.f32 %v3017_v19, %v487_v27 }
 0x438   :  { %v490_v29 = vpop.f32.mrb[6].mxu1 }
 0x439   :  { %v491_v31 = vadd.f32 %v3017_v19, %v490_v29  ;;  %v3289_v32 = vpop.f32.mrb[7].mxu1 }
 0x43b   :  { %v4117_v34 = vpack.c.bf16 %v491_v31, %v488_v30 }
 0x43d   :  { %747 = vrot.lane.b32.xlu0 %v4117_v34, %s3923_s6  ;;  %510 = vrot.lane.b32.xlu1 %v4117_v34, %s3922_s5 }
 0x43e   :  { %v495_v35 = vpop.f32.mrb[8].mxu1 }
 0x43f   :  { %v3292_v36 = vpop.f32.mrb[9].mxu1  ;;  %v496_v38 = vadd.f32 %v3017_v19, %v495_v35 }
 0x440   :  { %v498_v37 = vpop.f32.mrb[10].mxu1 }
 0x441   :  { %v499_v40 = vadd.f32 %v3017_v19, %v498_v37  ;;  %739 = vrot.lane.b32.xlu0 %v4113_v26, %s3924_s7  ;;  %v3293_v41 = vpop.f32.mrb[11].mxu1 }
 0x443   :  { %v4125_v42 = vpack.c.bf16 %v499_v40, %v496_v38 }
 0x445   :  { %743 = vrot.lane.b32.xlu0 %v4125_v42, %s3924_s7  ;;  %512 = vrot.lane.b32.xlu1 %v4125_v42, %s3922_s5 }
 0x449   :  { %745 = vrot.lane.b32.xlu1 %v4113_v26, %s3923_s6 }
 0x44d   :  { %749 = vrot.lane.b32.xlu1 %v4125_v42, %s3923_s6 }
 0x451   :  { %741 = vrot.lane.b32.xlu1 %v4117_v34, %s3924_s7 }
 0x455   :  { %659 = vrot.lane.b32.xlu1 %v4113_v26, %s3925_s8 }
 0x4a7   :  { %v509_v43 = vpop.permute.xlu0 %508 }
 0x4a8   :  { %v525_v45 = vsel %vm514_vm3, %v509_v43, 0 }
 0x4a9   :  { %3295 = vmatpush3.bf16.xpose.msra.mxu1 %v525_v45 }
 0x4aa   :  { %3296 = vmatprep.subr.bf16.mxu1 %v3920_v1 }
 0x4af   :  { %v511_v46 = vpop.permute.xlu1 %510  ;;  %v748_v56 = vpop.permute.xlu0 %747 }
 0x4b0   :  { %v528_v47 = vsel %vm514_vm3, %v511_v46, 0  ;;  %v764_v59 = vsel %vm514_vm3, %v748_v56, 0 }
 0x4b1   :  { %3297 = vmatpush3.bf16.xpose.msra.mxu1 %v528_v47 }
 0x4b2   :  { %3298 = vmatprep.subr.bf16.mxu1 %v3920_v1 }
 0x4b3   :  { %v740_v61 = vpop.permute.xlu0 %739 }
 0x4b7   :  { %v513_v48 = vpop.permute.xlu1 %512  ;;  %v744_v62 = vpop.permute.xlu0 %743 }
 0x4b8   :  { %v531_v50 = vsel %vm514_vm3, %v513_v48, 0 }
 0x4b9   :  { %3299 = vmatpush3.bf16.xpose.msra.mxu1 %v531_v50 }
 0x4ba   :  { %3330 = vmatprep.subr.bf16.mxu1 %v3920_v1 }
 0x4bb   :  { %v746_v51 = vpop.permute.xlu1 %745 }
 0x4bc   :  { %v761_v53 = vsel %vm514_vm3, %v746_v51, 0 }
 0x4bf   :  { %v750_v52 = vpop.permute.xlu1 %749 }
 0x4c0   :  { %3301 = vmatmul.mubr.msk.bf16.vlgmr.msra.gmra.mrb[12].mxu1 %vm514_vm3, %v4113_v26  ;;  %v767_v60 = vsel %vm514_vm3, %v750_v52, 0 }
 0x4c1   :  { %3331 = vmatpush3.bf16.xpose.msra.mxu1 %v761_v53  ;;  %3304 = vmatprep.mubr.msk.bf16.mxu1 %vm3921_vm0, %v3920_v1 }
 0x4c2   :  { %3332 = vmatprep.subr.bf16.mxu1 %v3920_v1 }
 0x4c3   :  { %v742_v54 = vpop.permute.xlu1 %741 }
 0x4c7   :  { %v660_v57 = vpop.permute.xlu1 %659 }
 0x4c8   :  { %3305 = vmatmul.mubr.msk.bf16.gmra.mrb[16].mxu1 %vm514_vm3, %v4117_v34  ;;  %3313 = vmatpush3.bf16.msra.mxu0 %v660_v57 }
 0x4c9   :  { %3333 = vmatpush3.bf16.xpose.msra.mxu1 %v764_v59  ;;  %3308 = vmatprep.mubr.msk.bf16.mxu1 %vm3921_vm0, %v3920_v1 }
 0x4ca   :  { %3334 = vmatprep.subr.bf16.mxu1 %v3920_v1  ;;  %3314 = vmatprep.subr.bf16.mxu0 %v3920_v1 }
 0x4d0   :  { %3309 = vmatmul.mubr.msk.bf16.gmra.mrb[20].mxu1 %vm514_vm3, %v4125_v42 }
 0x4d1   :  { %3335 = vmatpush3.bf16.xpose.msra.mxu1 %v767_v60  ;;  %3336 = vmatprep.mubr.msk.bf16.mxu1 %vm3921_vm0, %v3920_v1 }
 0x4d2   :  { %3366 = vmatprep.subr.bf16.mxu1 %v3920_v1 }
 0x4d8   :  { %3337 = vmatmul.mubr.msk.bf16.vlgmr.msra.gmra.mrb[24].mxu1 %vm514_vm3, %v740_v61 }
 0x4d9   :  { %3340 = vmatprep.mubr.msk.bf16.mxu1 %vm3921_vm0, %v3920_v1 }
 0x4e0   :  { %3341 = vmatmul.mubr.msk.bf16.gmra.mrb[28].mxu1 %vm514_vm3, %v742_v54 }
 0x4e1   :  { %3344 = vmatprep.mubr.msk.bf16.mxu1 %vm3921_vm0, %v3920_v1 }
 0x4e8   :  { %3345 = vmatmul.mubr.msk.bf16.gmra.mrb[32].mxu1 %vm514_vm3, %v744_v62 }
 0x4e9   :  { %3368 = vmatprep.mubr.msk.bf16.mxu1 %vm3921_vm0, %v3920_v1 }
 0x593   :  { %v567_v3 = vpop.f32.mrb[12].mxu1 }
 0x594   :  { %v4180_v5 = vadd.f32 %v567_v3, %v4177_v4  ;;  %v3302_v6 = vpop.f32.mrb[13].mxu1 }
 0x595   :  { %v570_v7 = vpop.f32.mrb[14].mxu1 }
 0x596   :  { %v4185_v9 = vadd.f32 %v570_v7, %v4177_v4  ;;  %v3303_v10 = vpop.f32.mrb[15].mxu1  ;;  %v590_v11 = vsel %vm58_vm1, %v4180_v5, -inf }
 0x597   :  { %591 = vmax.xlane.f32.xlu1 %v590_v11 }
 0x598   :  { %v593_v12 = vsel %vm58_vm1, %v4185_v9, -inf }
 0x599   :  { %594 = vmax.xlane.f32.xlu0 %v593_v12 }
 0x59b   :  { %v575_v14 = vpop.f32.mrb[16].mxu1 }
 0x59c   :  { %v4194_v8 = vadd.f32 %v575_v14, %v4177_v4  ;;  %v3306_v16 = vpop.f32.mrb[17].mxu1 }
 0x59d   :  { %v578_v13 = vpop.f32.mrb[18].mxu1 }
 0x59e   :  { %v579_v17 = vadd.f32 %v578_v13, %v4191_v15  ;;  %v3307_v18 = vpop.f32.mrb[19].mxu1  ;;  %v596_v19 = vsel %vm58_vm1, %v4194_v8, -inf }
 0x59f   :  { %597 = vmax.xlane.f32.xlu0 %v596_v19 }
 0x5a0   :  { %v599_v20 = vsel %vm58_vm1, %v579_v17, -inf }
 0x5a3   :  { %600 = vmax.xlane.f32.xlu0 %v599_v20  ;;  %v583_v21 = vpop.f32.mrb[20].mxu1 }
 0x5a4   :  { %v4201_v22 = vadd.f32 %v583_v21, %v4191_v15  ;;  %v3310_v23 = vpop.f32.mrb[21].mxu1 }
 0x5a5   :  { %v586_v24 = vpop.f32.mrb[22].mxu1 }
 0x5a6   :  { %v587_v25 = vadd.f32 %v586_v24, %v4191_v15  ;;  %v3311_v27 = vpop.f32.mrb[23].mxu1  ;;  %v602_v28 = vsel %vm58_vm1, %v4201_v22, -inf }
 0x5a7   :  { %603 = vmax.xlane.f32.xlu1 %v602_v28 }
 0x5a8   :  { %v605_v29 = vsel %vm58_vm1, %v587_v25, -inf }
 0x5a9   :  { %606 = vmax.xlane.f32.xlu0 %v605_v29 }
 0x5ab   :  { %v803_v30 = vpop.f32.mrb[24].mxu1 }
 0x5ac   :  { %v4208_v31 = vadd.f32 %v803_v30, %v4177_v4  ;;  %v3338_v32 = vpop.f32.mrb[25].mxu1 }
 0x5ad   :  { %v806_v35 = vpop.f32.mrb[26].mxu1 }
 0x5ae   :  { %v807_v36 = vadd.f32 %v806_v35, %v4177_v4  ;;  %v3339_v37 = vpop.f32.mrb[27].mxu1  ;;  %v826_v38 = vsel %vm58_vm1, %v4208_v31, -inf }
 0x5af   :  { %827 = vmax.xlane.f32.xlu1 %v826_v38 }
 0x5b0   :  { %v829_v40 = vsel %vm58_vm1, %v807_v36, -inf }
 0x5b1   :  { %830 = vmax.xlane.f32.xlu0 %v829_v40 }
 0x5b3   :  { %v811_v41 = vpop.f32.mrb[28].mxu1 }
 0x5b4   :  { %v812_v43 = vadd.f32 %v811_v41, %v4177_v4  ;;  %v3342_v45 = vpop.f32.mrb[29].mxu1 }
 0x5b5   :  { %v814_v46 = vpop.f32.mrb[30].mxu1 }
 0x5b6   :  { %v815_v47 = vadd.f32 %v814_v46, %v4191_v15  ;;  %v3343_v48 = vpop.f32.mrb[31].mxu1  ;;  %v832_v50 = vsel %vm58_vm1, %v812_v43, -inf }
 0x5b7   :  { %833 = vmax.xlane.f32.xlu1 %v832_v50 }
 0x5b8   :  { %v835_v51 = vsel %vm58_vm1, %v815_v47, -inf }
 0x5b9   :  { %836 = vmax.xlane.f32.xlu0 %v835_v51 }
 0x5bb   :  { %v819_v52 = vpop.f32.mrb[32].mxu1 }
 0x5bc   :  { %v820_v53 = vadd.f32 %v819_v52, %v4191_v15  ;;  %v3346_v54 = vpop.f32.mrb[33].mxu1 }
 0x5bd   :  { %v822_v56 = vpop.f32.mrb[34].mxu1 }
 0x5be   :  { %v823_v57 = vadd.f32 %v822_v56, %v4191_v15  ;;  %v3347_v59 = vpop.f32.mrb[35].mxu1  ;;  %v838_v60 = vsel %vm58_vm1, %v820_v53, -inf }
 0x5bf   :  { %839 = vmax.xlane.f32.xlu1 %v838_v60 }
 0x5c0   :  { %v841_v61 = vsel %vm58_vm1, %v823_v57, -inf }
 0x5c1   :  { %842 = vmax.xlane.f32.xlu0 %v841_v61 }
 0x5d0   :  { %663 = vrot.lane.b32.xlu1 %v4125_v42, %s3925_s8 }
 0x5d7   :  { %661 = vrot.lane.b32.xlu0 %v4117_v34, %s3925_s8 }
 0x624   :  { %v592_v62 = vpop.xlane.xlu1 %591 }
 0x625   :  { %v608_v2 = vsub.f32 %v4180_v5, %v592_v62 }
 0x626   :  { %v595_v3 = vpop.xlane.xlu0 %594 }
 0x627   :  { %v614_v6 = vmul.f32 1.442695, %v608_v2  ;;  %v609_v7 = vsub.f32 %v4185_v9, %v595_v3 }
 0x629   :  { %3714 = vpow2.f32 %v614_v6  ;;  %v616_v10 = vmul.f32 1.442695, %v609_v7 }
 0x62b   :  { %3716 = vpow2.f32 %v616_v10 }
 0x62c   :  { %v598_v11 = vpop.xlane.xlu0 %597 }
 0x630   :  { %v601_v12 = vpop.xlane.xlu0 %600 }
 0x631   :  { %v611_v14 = vsub.f32 %v579_v17, %v601_v12 }
 0x633   :  { %v4228_v16 = vpop.eup %3714  ;;  %v620_v13 = vmul.f32 1.442695, %v611_v14 }
 0x634   :  { %v626_v18 = vsel %vm58_vm1, %v4228_v16, 0.0  ;;  %v604_v23 = vpop.xlane.xlu1 %603 }
 0x635   :  { %v4232_v19 = vpop.eup %3716  ;;  %3718 = vpow2.f32 %v620_v13  ;;  %627 = vadd.xlane.f32.xlu1 %v626_v18  ;;  %v612_v61 = vsub.f32 %v4201_v22, %v604_v23 }
 0x636   :  { %v607_v5 = vpop.xlane.xlu0 %606  ;;  %v629_v9 = vsel %vm58_vm1, %v4232_v19, 0.0 }
 0x637   :  { %v613_v20 = vsub.f32 %v587_v25, %v607_v5  ;;  %630 = vadd.xlane.f32.xlu0 %v629_v9  ;;  %v622_v2 = vmul.f32 1.442695, %v612_v61 }
 0x639   :  { %v624_v21 = vmul.f32 1.442695, %v613_v20 }
 0x63b   :  { %3720 = vpow2.f32 %v624_v21 }
 0x63c   :  { %v828_v28 = vpop.xlane.xlu1 %827 }
 0x63d   :  { %v844_v3 = vsub.f32 %v4208_v31, %v828_v28 }
 0x63e   :  { %v831_v17 = vpop.xlane.xlu0 %830 }
 0x63f   :  { %v4236_v24 = vpop.eup %3718  ;;  %v845_v27 = vsub.f32 %v807_v36, %v831_v17  ;;  %v850_v22 = vmul.f32 1.442695, %v844_v3 }
 0x640   :  { %v635_v29 = vsel %vm58_vm1, %v4236_v24, 0.0 }
 0x641   :  { %v852_v30 = vmul.f32 1.442695, %v845_v27  ;;  %636 = vadd.xlane.f32.xlu0 %v635_v29 }
 0x643   :  { %3722 = vpow2.f32 %v852_v30 }
 0x644   :  { %v834_v32 = vpop.xlane.xlu1 %833 }
 0x645   :  { %v4240_v35 = vpop.eup %3720  ;;  %v846_v37 = vsub.f32 %v812_v43, %v834_v32 }
 0x646   :  { %v837_v25 = vpop.xlane.xlu0 %836  ;;  %895 = vrot.lane.b32.xlu1 %v4113_v26, %s3927_s9  ;;  %v641_v38 = vsel %vm58_vm1, %v4240_v35, 0.0 }
 0x647   :  { %v854_v36 = vmul.f32 1.442695, %v846_v37  ;;  %v847_v40 = vsub.f32 %v815_v47, %v837_v25  ;;  %642 = vadd.xlane.f32.xlu0 %v641_v38  ;;  %v610_v47 = vsub.f32 %v4194_v8, %v598_v11 }
 0x649   :  { %3724 = vpow2.f32 %v854_v36  ;;  %v856_v41 = vmul.f32 1.442695, %v847_v40 }
 0x64b   :  { %3726 = vpow2.f32 %v856_v41 }
 0x64c   :  { %v840_v45 = vpop.xlane.xlu1 %839 }
 0x64d   :  { %v4246_v46 = vpop.eup %3722  ;;  %v848_v48 = vsub.f32 %v820_v53, %v840_v45 }
 0x64e   :  { %v843_v50 = vpop.xlane.xlu0 %842  ;;  %v865_v43 = vsel %vm58_vm1, %v4246_v46, 0.0 }
 0x64f   :  { %v858_v51 = vmul.f32 1.442695, %v848_v48  ;;  %v849_v52 = vsub.f32 %v823_v57, %v843_v50  ;;  %866 = vadd.xlane.f32.xlu0 %v865_v43  ;;  %v618_v57 = vmul.f32 1.442695, %v610_v47 }
 0x650   :  { %v664_v60 = vpop.permute.xlu1 %663 }
 0x651   :  { %3728 = vpow2.f32 %v858_v51  ;;  %v860_v26 = vmul.f32 1.442695, %v849_v52 }
 0x652   :  { %v662_v54 = vpop.permute.xlu0 %661 }
 0x653   :  { %v4250_v56 = vpop.eup %3724  ;;  %3730 = vpow2.f32 %v860_v26  ;;  %3315 = vmatpush3.bf16.msra.mxu0 %v662_v54 }
 0x654   :  { %v868_v59 = vsel %vm58_vm1, %v4250_v56, 0.0  ;;  %3316 = vmatprep.subr.bf16.mxu0 %v3920_v1  ;;  %3732 = vpow2.f32 %v618_v57 }
 0x655   :  { %v4256_v53 = vpop.eup %3726  ;;  %869 = vadd.xlane.f32.xlu0 %v868_v59  ;;  %3734 = vpow2.f32 %v622_v2 }
 0x656   :  { %v871_v62 = vsel %vm58_vm1, %v4256_v53, 0.0  ;;  %3736 = vpow2.f32 %v850_v22 }
 0x657   :  { %3317 = vmatpush3.bf16.msra.mxu0 %v664_v60 }
 0x658   :  { %3348 = vmatprep.subr.bf16.mxu0 %v3920_v1 }
 0x659   :  { %872 = vadd.xlane.f32.xlu0 %v871_v62 }
 0x65b   :  { %v4262_v8 = vpop.eup %3728 }
 0x65c   :  { %v874_v6 = vsel %vm58_vm1, %v4262_v8, 0.0 }
 0x65d   :  { %v4267_v7 = vpop.eup %3730  ;;  %875 = vadd.xlane.f32.xlu0 %v874_v6 }
 0x65e   :  { %v877_v10 = vsel %vm58_vm1, %v4267_v7, 0.0  ;;  %v3733_v11 = vpop.eup %3732 }
 0x65f   :  { %v632_v12 = vsel %vm58_vm1, %v3733_v11, 0.0  ;;  %v3735_v14 = vpop.eup %3734 }
 0x660   :  { %v638_v31 = vsel %vm58_vm1, %v3735_v14, 0.0  ;;  %v3737_v13 = vpop.eup %3736 }
 0x661   :  { %878 = vadd.xlane.f32.xlu0 %v877_v10  ;;  %v862_v18 = vsel %vm58_vm1, %v3737_v13, 0.0 }
 0x66a   :  { %633 = vadd.xlane.f32.xlu1 %v632_v12 }
 0x66e   :  { %639 = vadd.xlane.f32.xlu1 %v638_v31 }
 0x672   :  { %863 = vadd.xlane.f32.xlu1 %v862_v18 }
 0x677   :  { %897 = vrot.lane.b32.xlu0 %v4117_v34, %s3927_s9 }
 0x683   :  { %899 = vrot.lane.b32.xlu1 %v4125_v42, %s3927_s9 }
 0x6c2   :  { %v628_v5 = vpop.xlane.xlu1 %627 }
 0x6c3   :  { %3738 = vrcp.f32 %v628_v5 }
 0x6c4   :  { %v631_v9 = vpop.xlane.xlu0 %630 }
 0x6c5   :  { %3740 = vrcp.f32 %v631_v9 }
 0x6c6   :  { %v896_v28 = vpop.permute.xlu1 %895 }
 0x6cd   :  { %v3739_v20 = vpop.eup %3738 }
 0x6ce   :  { %v650_v23 = vmul.f32 %v3739_v20, %v4228_v16  ;;  %v637_v34 = vpop.xlane.xlu0 %636 }
 0x6cf   :  { %v3741_v21 = vpop.eup %3740  ;;  %3742 = vrcp.f32 %v637_v34 }
 0x6d0   :  { %v651_v17 = vmul.f32 %v3741_v21, %v4232_v19 }
 0x6d2   :  { %v656_v27 = vpack.c.bf16 %v651_v17, %v650_v23 }
 0x6d4   :  { %3319 = vmatmul.mubr.msk.bf16.vlgmr.msra.gmra.mrb[12].mxu0 %vm58_vm1, %v656_v27  ;;  %v643_v42 = vpop.xlane.xlu0 %642 }
 0x6d5   :  { %3349 = vmatpush3.bf16.msra.mxu0 %v896_v28  ;;  %3322 = vmatprep.mubr.msk.bf16.mxu0 %vm3921_vm0, %v3920_v1 }
 0x6d6   :  { %3350 = vmatprep.subr.bf16.mxu0 %v3920_v1 }
 0x6d9   :  { %v3743_v40 = vpop.eup %3742 }
 0x6da   :  { %v653_v50 = vmul.f32 %v3743_v40, %v4236_v24 }
 0x6dc   :  { %v867_v29 = vpop.xlane.xlu0 %866 }
 0x6e2   :  { %v870_v30 = vpop.xlane.xlu0 %869 }
 0x6e6   :  { %v873_v32 = vpop.xlane.xlu0 %872 }
 0x6ea   :  { %v876_v37 = vpop.xlane.xlu0 %875 }
 0x6ee   :  { %v879_v25 = vpop.xlane.xlu0 %878 }
 0x6f2   :  { %v898_v16 = vpop.permute.xlu0 %897 }
 0x6f3   :  { %3351 = vmatpush3.bf16.msra.mxu0 %v898_v16 }
 0x6f4   :  { %3352 = vmatprep.subr.bf16.mxu0 %v3920_v1 }
 0x6f7   :  { %v634_v19 = vpop.xlane.xlu1 %633 }
 0x6f8   :  { %3744 = vrcp.f32 %v634_v19 }
 0x6fb   :  { %v640_v38 = vpop.xlane.xlu1 %639 }
 0x6fc   :  { %3746 = vrcp.f32 %v640_v38 }
 0x6fd   :  { %3748 = vrcp.f32 %v643_v42 }
 0x6ff   :  { %v864_v36 = vpop.xlane.xlu1 %863 }
 0x700   :  { %3750 = vrcp.f32 %v864_v36 }
 0x701   :  { %3752 = vrcp.f32 %v867_v29 }
 0x702   :  { %v3745_v41 = vpop.eup %3744  ;;  %3754 = vrcp.f32 %v873_v32 }
 0x703   :  { %v900_v45 = vpop.permute.xlu1 %899  ;;  %v652_v48 = vmul.f32 %v3745_v41, %v3733_v11  ;;  %3756 = vrcp.f32 %v870_v30 }
 0x704   :  { %3353 = vmatpush3.bf16.msra.mxu0 %v900_v45  ;;  %3758 = vrcp.f32 %v879_v25 }
 0x705   :  { %v657_v43 = vpack.c.bf16 %v653_v50, %v652_v48  ;;  %3380 = vmatprep.subr.bf16.mxu0 %v3920_v1  ;;  %3760 = vrcp.f32 %v876_v37 }
 0x706   :  { %v3747_v51 = vpop.eup %3746 }
 0x707   :  { %3323 = vmatmul.mubr.msk.bf16.gmra.mrb[16].mxu0 %vm58_vm1, %v657_v43  ;;  %v3749_v52 = vpop.eup %3748  ;;  %v654_v26 = vmul.f32 %v3747_v51, %v3735_v14 }
 0x708   :  { %3326 = vmatprep.mubr.msk.bf16.mxu0 %vm3921_vm0, %v3920_v1  ;;  %v655_v54 = vmul.f32 %v3749_v52, %v4240_v35 }
 0x70a   :  { %v658_v47 = vpack.c.bf16 %v655_v54, %v654_v26  ;;  %v3751_v59 = vpop.eup %3750 }
 0x70b   :  { %v3753_v24 = vpop.eup %3752  ;;  %v886_v60 = vmul.f32 %v3751_v59, %v3737_v13 }
 0x70c   :  { %v887_v57 = vmul.f32 %v3753_v24, %v4246_v46  ;;  %v3755_v62 = vpop.eup %3754 }
 0x70d   :  { %v3757_v35 = vpop.eup %3756  ;;  %v889_v2 = vmul.f32 %v3755_v62, %v4256_v53  ;;  %v3659_v53 = vld [vmem:[%s4936_s3 + $0x28] sm:$0xff]  }
 0x70e   :  { %v892_v61 = vpack.c.bf16 %v887_v57, %v886_v60  ;;  %v888_v3 = vmul.f32 %v3757_v35, %v4250_v56  ;;  %v3759_v22 = vpop.eup %3758  ;;  %v3660_v56 = vld [vmem:[%s4936_s3 + $0x30] sm:$0xff]  }
 0x70f   :  { %3327 = vmatmul.mubr.msk.bf16.gmra.mrb[20].mxu0 %vm58_vm1, %v658_v47  ;;  %v3761_v10 = vpop.eup %3760  ;;  %v891_v46 = vmul.f32 %v3759_v22, %v4267_v7  ;;  %3367 = vmatpush3.bf16.msra.mxu1 %v3660_v56 }
 0x710   :  { %3354 = vmatprep.mubr.msk.bf16.mxu0 %vm3921_vm0, %v3920_v1  ;;  %v893_v6 = vpack.c.bf16 %v889_v2, %v888_v3  ;;  %v890_v11 = vmul.f32 %v3761_v10, %v4262_v8  ;;  %3394 = vmatprep.subr.bf16.mxu1 %v3920_v1  ;;  %v3043_v2 = vld [vmem:[%s4935_s2 + $0x5] ss:$0 sm:$0xff] }
 0x712   :  { %v894_v12 = vpack.c.bf16 %v891_v46, %v890_v11 }
 0x717   :  { %3355 = vmatmul.mubr.msk.bf16.vlgmr.msra.gmra.mrb[24].mxu0 %vm58_vm1, %v892_v61 }
 0x718   :  { %3358 = vmatprep.mubr.msk.bf16.mxu0 %vm3921_vm0, %v3920_v1  ;;  %3381 = vmatpush3.bf16.msra.mxu0 %v3659_v53 }
 0x719   :  { %3410 = vmatprep.subr.bf16.mxu0 %v3920_v1 }
 0x71f   :  { %3359 = vmatmul.mubr.msk.bf16.gmra.mrb[28].mxu0 %vm58_vm1, %v893_v6 }
 0x720   :  { %3362 = vmatprep.mubr.msk.bf16.mxu0 %vm3921_vm0, %v3920_v1 }
 0x727   :  { %3363 = vmatmul.mubr.msk.bf16.gmra.mrb[32].mxu0 %vm58_vm1, %v894_v12 }
 0x728   :  { %3382 = vmatprep.mubr.msk.bf16.mxu0 %vm3921_vm0, %v3920_v1 }
 0x7a7   :  { %v711_v8 = vpop.f32.mrb[12].mxu0 }
 0x7a8   :  { %v3320_v7 = vpop.f32.mrb[13].mxu0 }
 0x7a9   :  { %v714_v14 = vpop.f32.mrb[14].mxu0 }
 0x7aa   :  { %v736_v31 = vpack.c.bf16 %v714_v14, %v711_v8  ;;  %v3321_v13 = vpop.f32.mrb[15].mxu0 }
 0x7ac   :  { %3383 = vmatmul.mubr.msk.bf16.vlgmr.msra.gmra.mrb[36].mxu0 %vm514_vm3, %v736_v31 }
 0x7ad   :  { %3386 = vmatprep.mubr.msk.bf16.mxu0 %vm3921_vm0, %v3920_v1 }
 0x7da   :  { %v719_v18 = vpop.f32.mrb[16].mxu0 }
 0x7db   :  { %v3324_v5 = vpop.f32.mrb[17].mxu0 }
 0x7dc   :  { %v722_v9 = vpop.f32.mrb[18].mxu0 }
 0x7dd   :  { %v737_v20 = vpack.c.bf16 %v722_v9, %v719_v18  ;;  %v3325_v21 = vpop.f32.mrb[19].mxu0 }
 0x7df   :  { %3387 = vmatmul.mubr.msk.bf16.gmra.mrb[40].mxu0 %vm514_vm3, %v737_v20 }
 0x7e0   :  { %3390 = vmatprep.mubr.msk.bf16.mxu0 %vm3921_vm0, %v3920_v1 }
 0x7e2   :  { %v727_v23 = vpop.f32.mrb[20].mxu0 }
 0x7e3   :  { %v3328_v17 = vpop.f32.mrb[21].mxu0 }
 0x7e4   :  { %v730_v27 = vpop.f32.mrb[22].mxu0 }
 0x7e5   :  { %v738_v28 = vpack.c.bf16 %v730_v27, %v727_v23  ;;  %v3329_v34 = vpop.f32.mrb[23].mxu0 }
 0x7e7   :  { %3391 = vmatmul.mubr.msk.bf16.gmra.mrb[44].mxu0 %vm514_vm3, %v738_v28 }
 0x7e8   :  { %3426 = vmatprep.mubr.msk.bf16.mxu0 %vm3921_vm0, %v3920_v1 }
 0x7ea   :  { %v947_v42 = vpop.f32.mrb[24].mxu0 }
 0x7eb   :  { %v3356_v29 = vpop.f32.mrb[25].mxu0 }
 0x7ec   :  { %v950_v30 = vpop.f32.mrb[26].mxu0 }
 0x7ed   :  { %v972_v32 = vpack.c.bf16 %v950_v30, %v947_v42  ;;  %v3357_v37 = vpop.f32.mrb[27].mxu0 }
 0x7ef   :  { %3369 = vmatmul.mubr.msk.bf16.vlgmr.msra.gmra.mrb[36].mxu1 %vm514_vm3, %v972_v32 }
 0x7f0   :  { %3372 = vmatprep.mubr.msk.bf16.mxu1 %vm3921_vm0, %v3920_v1 }
 0x7f2   :  { %v955_v25 = vpop.f32.mrb[28].mxu0 }
 0x7f3   :  { %v3360_v16 = vpop.f32.mrb[29].mxu0 }
 0x7f4   :  { %v958_v19 = vpop.f32.mrb[30].mxu0 }
 0x7f5   :  { %v973_v38 = vpack.c.bf16 %v958_v19, %v955_v25  ;;  %v3361_v36 = vpop.f32.mrb[31].mxu0 }
 0x7f7   :  { %3373 = vmatmul.mubr.msk.bf16.gmra.mrb[40].mxu1 %vm514_vm3, %v973_v38 }
 0x7f8   :  { %3376 = vmatprep.mubr.msk.bf16.mxu1 %vm3921_vm0, %v3920_v1 }
 0x7fa   :  { %v963_v40 = vpop.f32.mrb[32].mxu0 }
 0x7fb   :  { %v3364_v41 = vpop.f32.mrb[33].mxu0 }
 0x7fc   :  { %v966_v45 = vpop.f32.mrb[34].mxu0 }
 0x7fd   :  { %v974_v48 = vpack.c.bf16 %v966_v45, %v963_v40  ;;  %v3365_v50 = vpop.f32.mrb[35].mxu0 }
 0x7ff   :  { %3377 = vmatmul.mubr.msk.bf16.gmra.mrb[44].mxu1 %vm514_vm3, %v974_v48 }
 0x800   :  { %3398 = vmatprep.mubr.msk.bf16.mxu1 %vm3921_vm0, %v3920_v1 }
 0x87f   :  { %v1096_v43 = vpop.f32.mrb[36].mxu0 }
 0x880   :  { %v3384_v51 = vpop.f32.mrb[37].mxu0 }
 0x881   :  { %v1099_v52 = vpop.f32.mrb[38].mxu0 }
 0x882   :  { %v3385_v26 = vpop.f32.mrb[39].mxu0 }
 0x8b2   :  { %v1104_v54 = vpop.f32.mrb[40].mxu0 }
 0x8b3   :  { %v3388_v47 = vpop.f32.mrb[41].mxu0 }
 0x8b4   :  { %v1107_v59 = vpop.f32.mrb[42].mxu0 }
 0x8b5   :  { %v3389_v24 = vpop.f32.mrb[43].mxu0 }
 0x8ba   :  { %v1112_v60 = vpop.f32.mrb[44].mxu0 }
 0x8bb   :  { %v3392_v57 = vpop.f32.mrb[45].mxu0 }
 0x8bc   :  { %v1115_v61 = vpop.f32.mrb[46].mxu0 }
 0x8bd   :  { %v3393_v62 = vpop.f32.mrb[47].mxu0 }
 0x8c2   :  { %v1024_v35 = vpop.f32.mrb[36].mxu1 }
 0x8c3   :  { %v1097_v3 = vadd.f32 %v1096_v43, %v1024_v35  ;;  %v3370_v6 = vpop.f32.mrb[37].mxu1 }
 0x8c4   :  { %v1027_v22 = vpop.f32.mrb[38].mxu1 }
 0x8c5   :  { %v1124_v10 = vadd.f32 %v3043_v2, %v1097_v3  ;;  %v1100_v46 = vadd.f32 %v1099_v52, %v1027_v22  ;;  %v3371_v11 = vpop.f32.mrb[39].mxu1 }
 0x8c7   :  { %v4338_v12 = vadd.f32 %v1124_v10, %v4036_v33  ;;  %v1125_v53 = vadd.f32 %v3043_v2, %v1100_v46 }
 0x8c9   :  { %v4341_v56 = vadd.f32 %v1125_v53, %v4040_v39  ;;  %v1138_v8 = vsel %vm127_vm2, %v4338_v12, 0.0  ;;  %v3661_v53 = vld [vmem:[%s4936_s3 + $0x38] sm:$0xff]  }
 0x8ca   :  { %v1032_v7 = vpop.f32.mrb[40].mxu1  ;;  %1139 = vadd.xlane.f32.xlu1 %v1138_v8  ;;  %3395 = vmatpush3.bf16.msra.mxu1 %v3661_v53  ;;  %v3662_v8 = vld [vmem:[%s4936_s3 + $0x40] sm:$0xff]   ;;  %v3667_v53 = vld [vmem:[%s4936_s3 + $0x68] sm:$0xff]  }
 0x8cb   :  { %v1105_v14 = vadd.f32 %v1104_v54, %v1032_v7  ;;  %v3374_v31 = vpop.f32.mrb[41].mxu1  ;;  %v1141_v13 = vsel %vm127_vm2, %v4341_v56, 0.0  ;;  %3396 = vmatprep.subr.bf16.mxu1 %v3920_v1 }
 0x8cc   :  { %v1035_v18 = vpop.f32.mrb[42].mxu1  ;;  %1142 = vadd.xlane.f32.xlu0 %v1141_v13 }
 0x8cd   :  { %v1126_v5 = vadd.f32 %v3043_v2, %v1105_v14  ;;  %v1108_v9 = vadd.f32 %v1107_v59, %v1035_v18  ;;  %v3375_v33 = vpop.f32.mrb[43].mxu1 }
 0x8ce   :  { %3397 = vmatpush3.bf16.msra.mxu1 %v3662_v8  ;;  %v3668_v8 = vld [vmem:[%s4936_s3 + $0x70] sm:$0xff]  }
 0x8cf   :  { %v4348_v20 = vadd.f32 %v1126_v5, %v4044_v44  ;;  %v1127_v39 = vadd.f32 %v3043_v2, %v1108_v9  ;;  %3438 = vmatprep.subr.bf16.mxu1 %v3920_v1 }
 0x8d1   :  { %v4351_v21 = vadd.f32 %v1127_v39, %v4048_v49  ;;  %v1144_v23 = vsel %vm127_vm2, %v4348_v20, 0.0 }
 0x8d2   :  { %v1040_v17 = vpop.f32.mrb[44].mxu1  ;;  %1145 = vadd.xlane.f32.xlu1 %v1144_v23 }
 0x8d3   :  { %v1113_v27 = vadd.f32 %v1112_v60, %v1040_v17  ;;  %v3378_v28 = vpop.f32.mrb[45].mxu1  ;;  %v1147_v32 = vsel %vm127_vm2, %v4351_v21, 0.0 }
 0x8d4   :  { %v1043_v34 = vpop.f32.mrb[46].mxu1  ;;  %v3044_v28 = vld [vmem:[%s4935_s2 + $0x6] ss:$0 sm:$0xff] }
 0x8d5   :  { %v1128_v42 = vadd.f32 %v3043_v2, %v1113_v27  ;;  %v1116_v29 = vadd.f32 %v1115_v61, %v1043_v34  ;;  %v3379_v30 = vpop.f32.mrb[47].mxu1 }
 0x8d6   :  { %1148 = vadd.xlane.f32.xlu1 %v1147_v32 }
 0x8d7   :  { %v4358_v44 = vadd.f32 %v1128_v42, %v4052_v55  ;;  %v1129_v49 = vadd.f32 %v3043_v2, %v1116_v29 }
 0x8d9   :  { %v4361_v37 = vadd.f32 %v1129_v49, %v4056_v58  ;;  %v1150_v25 = vsel %vm127_vm2, %v4358_v44, 0.0 }
 0x8da   :  { %1151 = vadd.xlane.f32.xlu1 %v1150_v25 }
 0x8db   :  { %v1153_v16 = vsel %vm127_vm2, %v4361_v37, 0.0 }
 0x8dc   :  { %1154 = vadd.xlane.f32.xlu0 %v1153_v16 }
 0x957   :  { %v1140_v19 = vpop.xlane.xlu1 %1139 }
 0x958   :  { %v1156_v38 = vmul.f32 0.03125, %v1140_v19  ;;  %v3045_v19 = vld [vmem:[%s4935_s2 + $0x7] ss:$0 sm:$0xff] }
 0x959   :  { %v1143_v36 = vpop.xlane.xlu0 %1142 }
 0x95a   :  { %v1162_v40 = vsub.f32 %v4338_v12, %v1156_v38  ;;  %v1157_v41 = vmul.f32 0.03125, %v1143_v36 }
 0x95c   :  { %v1163_v55 = vsub.f32 %v4341_v56, %v1157_v41  ;;  %v1168_v45 = vmul.f32 %v1162_v40, %v1162_v40 }
 0x95e   :  { %v1174_v58 = vsel %vm127_vm2, %v1168_v45, 0.0  ;;  %v1169_v48 = vmul.f32 %v1163_v55, %v1163_v55 }
 0x95f   :  { %v1146_v50 = vpop.xlane.xlu1 %1145  ;;  %1175 = vadd.xlane.f32.xlu1 %v1174_v58 }
 0x960   :  { %v1158_v43 = vmul.f32 0.03125, %v1146_v50  ;;  %v1177_v51 = vsel %vm127_vm2, %v1169_v48, 0.0 }
 0x961   :  { %1178 = vadd.xlane.f32.xlu0 %v1177_v51 }
 0x962   :  { %v4372_v52 = vsub.f32 %v4348_v20, %v1158_v43 }
 0x963   :  { %v1149_v26 = vpop.xlane.xlu1 %1148 }
 0x964   :  { %v1159_v54 = vmul.f32 0.03125, %v1149_v26  ;;  %v1170_v47 = vmul.f32 %v4372_v52, %v4372_v52 }
 0x966   :  { %v4377_v59 = vsub.f32 %v4351_v21, %v1159_v54  ;;  %v1180_v24 = vsel %vm127_vm2, %v1170_v47, 0.0 }
 0x967   :  { %1181 = vadd.xlane.f32.xlu1 %v1180_v24  ;;  %v1152_v60 = vpop.xlane.xlu1 %1151 }
 0x968   :  { %v1160_v57 = vmul.f32 0.03125, %v1152_v60  ;;  %v1171_v61 = vmul.f32 %v4377_v59, %v4377_v59 }
 0x969   :  { %v1155_v62 = vpop.xlane.xlu0 %1154 }
 0x96a   :  { %v1166_v35 = vsub.f32 %v4358_v44, %v1160_v57  ;;  %v1161_v2 = vmul.f32 0.03125, %v1155_v62  ;;  %v1183_v3 = vsel %vm127_vm2, %v1171_v61, 0.0 }
 0x96b   :  { %1184 = vadd.xlane.f32.xlu0 %v1183_v3 }
 0x96c   :  { %v1167_v6 = vsub.f32 %v4361_v37, %v1161_v2  ;;  %v1172_v22 = vmul.f32 %v1166_v35, %v1166_v35 }
 0x96e   :  { %v1186_v10 = vsel %vm127_vm2, %v1172_v22, 0.0  ;;  %v1173_v46 = vmul.f32 %v1167_v6, %v1167_v6 }
 0x96f   :  { %1187 = vadd.xlane.f32.xlu1 %v1186_v10 }
 0x970   :  { %v1189_v11 = vsel %vm127_vm2, %v1173_v46, 0.0 }
 0x971   :  { %1190 = vadd.xlane.f32.xlu0 %v1189_v11  ;;  %v3666_v11 = vld [vmem:[%s4936_s3 + $0x60] sm:$0xff]  }
 0x9ec   :  { %v1176_v7 = vpop.xlane.xlu1 %1175 }
 0x9ed   :  { %v1192_v14 = vmul.f32 0.03125, %v1176_v7  ;;  %v3669_v7 = vld [vmem:[%s4936_s3 + $0x78] sm:$0xff]  }
 0x9ee   :  { %v1179_v31 = vpop.xlane.xlu0 %1178 }
 0x9ef   :  { %v1198_v13 = vadd.f32 1e-05, %v1192_v14  ;;  %v1193_v18 = vmul.f32 0.03125, %v1179_v31  ;;  %v3670_v14 = vld [vmem:[%s4936_s3 + $0x80] sm:$0xff]   ;;  %v3046_v31 = vld [vmem:[%s4935_s2 + $0x8] ss:$0 sm:$0xff] }
 0x9f1   :  { %3762 = vrsqrt.f32 %v1198_v13  ;;  %v1199_v5 = vadd.f32 1e-05, %v1193_v18 }
 0x9f3   :  { %3764 = vrsqrt.f32 %v1199_v5 }
 0x9f4   :  { %v1182_v9 = vpop.xlane.xlu1 %1181 }
 0x9f5   :  { %v1194_v33 = vmul.f32 0.03125, %v1182_v9 }
 0x9f7   :  { %v1200_v39 = vadd.f32 1e-05, %v1194_v33 }
 0x9f8   :  { %v1185_v23 = vpop.xlane.xlu0 %1184 }
 0x9f9   :  { %3766 = vrsqrt.f32 %v1200_v39  ;;  %v1195_v17 = vmul.f32 0.03125, %v1185_v23 }
 0x9fb   :  { %v3763_v27 = vpop.eup %3762  ;;  %v1201_v34 = vadd.f32 1e-05, %v1195_v17 }
 0x9fc   :  { %v1210_v42 = vmul.f32 %v3763_v27, %v1162_v40  ;;  %v1188_v29 = vpop.xlane.xlu1 %1187 }
 0x9fd   :  { %v3765_v30 = vpop.eup %3764  ;;  %3768 = vrsqrt.f32 %v1201_v34  ;;  %v1196_v32 = vmul.f32 0.03125, %v1188_v29 }
 0x9fe   :  { %v1220_v49 = vmul.f32 %v3044_v28, %v1210_v42  ;;  %v1211_v25 = vmul.f32 %v3765_v30, %v1163_v55  ;;  %v1191_v16 = vpop.xlane.xlu0 %1190 }
 0x9ff   :  { %v1202_v38 = vadd.f32 1e-05, %v1196_v32  ;;  %v1197_v36 = vmul.f32 0.03125, %v1191_v16 }
 0xa00   :  { %v1221_v41 = vmul.f32 %v3044_v28, %v1211_v25  ;;  %v1230_v58 = vadd.f32 %v3045_v19, %v1220_v49 }
 0xa01   :  { %3770 = vrsqrt.f32 %v1202_v38  ;;  %v1203_v45 = vadd.f32 1e-05, %v1197_v36 }
 0xa02   :  { %v1231_v48 = vadd.f32 %v3045_v19, %v1221_v41 }
 0xa03   :  { %v3767_v50 = vpop.eup %3766  ;;  %3772 = vrsqrt.f32 %v1203_v45 }
 0xa04   :  { %v1212_v40 = vmul.f32 %v3767_v50, %v4372_v52  ;;  %v1240_v43 = vpack.c.bf16 %v1231_v48, %v1230_v58 }
 0xa06   :  { %3399 = vmatmul.mubr.msk.bf16.vlgmr.msra.gmra.mrb[48].mxu1 %vm127_vm2, %v1240_v43  ;;  %v1222_v26 = vmul.f32 %v3044_v28, %v1212_v40 }
 0xa07   :  { %v3769_v55 = vpop.eup %3768  ;;  %3402 = vmatprep.mubr.msk.bf16.mxu1 %vm3921_vm0, %v3920_v1 }
 0xa08   :  { %v1213_v51 = vmul.f32 %v3769_v55, %v4377_v59  ;;  %v1232_v60 = vadd.f32 %v3045_v19, %v1222_v26  ;;  %v3663_v59 = vld [vmem:[%s4936_s3 + $0x48] sm:$0xff]  }
 0xa09   :  { %3411 = vmatpush3.bf16.msra.mxu0 %v3663_v59 }
 0xa0a   :  { %v1223_v54 = vmul.f32 %v3044_v28, %v1213_v51  ;;  %3412 = vmatprep.subr.bf16.mxu0 %v3920_v1 }
 0xa0b   :  { %v3771_v47 = vpop.eup %3770 }
 0xa0c   :  { %v1214_v24 = vmul.f32 %v3771_v47, %v1166_v35  ;;  %v1233_v57 = vadd.f32 %v3045_v19, %v1223_v54  ;;  %v3664_v35 = vld [vmem:[%s4936_s3 + $0x50] sm:$0xff]  }
 0xa0d   :  { %v3773_v61 = vpop.eup %3772  ;;  %3413 = vmatpush3.bf16.msra.mxu0 %v3664_v35 }
 0xa0e   :  { %v1215_v62 = vmul.f32 %v3773_v61, %v1167_v6  ;;  %v1241_v2 = vpack.c.bf16 %v1233_v57, %v1232_v60  ;;  %v1224_v52 = vmul.f32 %v3044_v28, %v1214_v24  ;;  %3414 = vmatprep.subr.bf16.mxu0 %v3920_v1  ;;  %v3665_v6 = vld [vmem:[%s4936_s3 + $0x58] sm:$0xff]  }
 0xa10   :  { %3403 = vmatmul.mubr.msk.bf16.gmra.mrb[52].mxu1 %vm127_vm2, %v1241_v2  ;;  %v1225_v3 = vmul.f32 %v3044_v28, %v1215_v62  ;;  %v1234_v10 = vadd.f32 %v3045_v19, %v1224_v52 }
 0xa11   :  { %3406 = vmatprep.mubr.msk.bf16.mxu1 %vm3921_vm0, %v3920_v1  ;;  %3415 = vmatpush3.bf16.msra.mxu0 %v3665_v6 }
 0xa12   :  { %v1235_v22 = vadd.f32 %v3045_v19, %v1225_v3  ;;  %3416 = vmatprep.subr.bf16.mxu0 %v3920_v1 }
 0xa14   :  { %v1242_v46 = vpack.c.bf16 %v1235_v22, %v1234_v10 }
 0xa15   :  { %3417 = vmatpush3.bf16.msra.mxu0 %v3666_v11 }
 0xa16   :  { %3418 = vmatprep.subr.bf16.mxu0 %v3920_v1 }
 0xa18   :  { %3407 = vmatmul.mubr.msk.bf16.gmra.mrb[56].mxu1 %vm127_vm2, %v1242_v46 }
 0xa19   :  { %3442 = vmatprep.mubr.msk.bf16.mxu1 %vm3921_vm0, %v3920_v1  ;;  %3419 = vmatpush3.bf16.msra.mxu0 %v3667_v53 }
 0xa1a   :  { %3420 = vmatprep.subr.bf16.mxu0 %v3920_v1 }
 0xa1d   :  { %3421 = vmatpush3.bf16.msra.mxu0 %v3668_v8 }
 0xa1e   :  { %3422 = vmatprep.subr.bf16.mxu0 %v3920_v1 }
 0xa21   :  { %3423 = vmatpush3.bf16.msra.mxu0 %v3669_v7 }
 0xa22   :  { %3424 = vmatprep.subr.bf16.mxu0 %v3920_v1 }
 0xa25   :  { %3425 = vmatpush3.bf16.msra.mxu0 %v3670_v14 }
 0xa26   :  { %3454 = vmatprep.subr.bf16.mxu0 %v3920_v1 }
 0xad9   :  { %v1303_v13 = vpop.f32.mrb[48].mxu1 }
 0xada   :  { %v1304_v18 = vadd.f32 %v3046_v31, %v1303_v13  ;;  %v3400_v5 = vpop.f32.mrb[49].mxu1 }
 0xadb   :  { %v1306_v9 = vpop.f32.mrb[50].mxu1 }
 0xadc   :  { %v3052_v33 = vmul.f32 -1.702, %v1304_v18  ;;  %v1307_v39 = vadd.f32 %v3046_v31, %v1306_v9  ;;  %v3401_v23 = vpop.f32.mrb[51].mxu1 }
 0xade   :  { %v1338_v17 = vmul.f32 1.442695, %v3052_v33  ;;  %v3053_v27 = vmul.f32 -1.702, %v1307_v39  ;;  %v3058_v33 = vld [vmem:[%s4935_s2 + $0x9] ss:$0 sm:$0xff] }
 0xae0   :  { %3774 = vpow2.f32 %v1338_v17  ;;  %v1340_v28 = vmul.f32 1.442695, %v3053_v27 }
 0xae2   :  { %3776 = vpow2.f32 %v1340_v28 }
 0xae3   :  { %v1311_v34 = vpop.f32.mrb[52].mxu1 }
 0xae4   :  { %v1312_v42 = vadd.f32 %v3046_v31, %v1311_v34  ;;  %v3404_v29 = vpop.f32.mrb[53].mxu1 }
 0xae5   :  { %v1314_v30 = vpop.f32.mrb[54].mxu1 }
 0xae6   :  { %v3054_v32 = vmul.f32 -1.702, %v1312_v42  ;;  %v1315_v49 = vadd.f32 %v3046_v31, %v1314_v30  ;;  %v3405_v25 = vpop.f32.mrb[55].mxu1 }
 0xae8   :  { %v1342_v16 = vmul.f32 1.442695, %v3054_v32  ;;  %v3055_v19 = vmul.f32 -1.702, %v1315_v49 }
 0xaea   :  { %v3775_v38 = vpop.eup %3774  ;;  %3778 = vpow2.f32 %v1342_v16  ;;  %v1344_v36 = vmul.f32 1.442695, %v3055_v19 }
 0xaeb   :  { %v1350_v41 = vadd.f32 1.0, %v3775_v38  ;;  %v1319_v45 = vpop.f32.mrb[56].mxu1 }
 0xaec   :  { %v3777_v58 = vpop.eup %3776  ;;  %3780 = vpow2.f32 %v1344_v36  ;;  %v1320_v48 = vadd.f32 %v3046_v31, %v1319_v45  ;;  %v3408_v50 = vpop.f32.mrb[57].mxu1 }
 0xaed   :  { %3782 = vrcp.f32 %v1350_v41  ;;  %v1351_v40 = vadd.f32 1.0, %v3777_v58  ;;  %v1322_v43 = vpop.f32.mrb[58].mxu1 }
 0xaee   :  { %v3056_v55 = vmul.f32 -1.702, %v1320_v48  ;;  %v1323_v51 = vadd.f32 %v3046_v31, %v1322_v43  ;;  %v3409_v26 = vpop.f32.mrb[59].mxu1 }
 0xaef   :  { %3784 = vrcp.f32 %v1351_v40 }
 0xaf0   :  { %v1346_v54 = vmul.f32 1.442695, %v3056_v55  ;;  %v3057_v47 = vmul.f32 -1.702, %v1323_v51 }
 0xaf2   :  { %3786 = vpow2.f32 %v1346_v54  ;;  %v1348_v24 = vmul.f32 1.442695, %v3057_v47 }
 0xaf4   :  { %v3779_v60 = vpop.eup %3778  ;;  %3788 = vpow2.f32 %v1348_v24 }
 0xaf5   :  { %v1352_v57 = vadd.f32 1.0, %v3779_v60 }
 0xaf6   :  { %v3781_v61 = vpop.eup %3780 }
 0xaf7   :  { %v3783_v62 = vpop.eup %3782  ;;  %3790 = vrcp.f32 %v1352_v57  ;;  %v1353_v2 = vadd.f32 1.0, %v3781_v61 }
 0xaf8   :  { %v1368_v3 = vmul.f32 %v3783_v62, %v1304_v18 }
 0xaf9   :  { %v3785_v52 = vpop.eup %3784  ;;  %3792 = vrcp.f32 %v1353_v2 }
 0xafa   :  { %v1369_v22 = vmul.f32 %v3785_v52, %v1307_v39 }
 0xafc   :  { %v3787_v10 = vpop.eup %3786  ;;  %v1390_v46 = vpack.c.bf16 %v1369_v22, %v1368_v3 }
 0xafd   :  { %v1354_v59 = vadd.f32 1.0, %v3787_v10 }
 0xafe   :  { %v3789_v35 = vpop.eup %3788  ;;  %3427 = vmatmul.mubr.bf16.vlgmr.msra.gmra.mrb[48].mxu0 %v1390_v46 }
 0xaff   :  { %3794 = vrcp.f32 %v1354_v59  ;;  %v1355_v6 = vadd.f32 1.0, %v3789_v35  ;;  %3430 = vmatprep.mubr.msk.bf16.mxu0 %vm3921_vm0, %v3920_v1 }
 0xb01   :  { %v3791_v11 = vpop.eup %3790  ;;  %3796 = vrcp.f32 %v1355_v6 }
 0xb02   :  { %v1370_v8 = vmul.f32 %v3791_v11, %v1312_v42 }
 0xb03   :  { %v3793_v53 = vpop.eup %3792 }
 0xb04   :  { %v1371_v7 = vmul.f32 %v3793_v53, %v1315_v49 }
 0xb06   :  { %v1391_v14 = vpack.c.bf16 %v1371_v7, %v1370_v8 }
 0xb08   :  { %3431 = vmatmul.mubr.bf16.gmra.mrb[52].mxu0 %v1391_v14 }
 0xb09   :  { %v3795_v31 = vpop.eup %3794  ;;  %3434 = vmatprep.mubr.msk.bf16.mxu0 %vm3921_vm0, %v3920_v1 }
 0xb0a   :  { %v1372_v18 = vmul.f32 %v3795_v31, %v1320_v48 }
 0xb0b   :  { %v3797_v13 = vpop.eup %3796 }
 0xb0c   :  { %v1373_v5 = vmul.f32 %v3797_v13, %v1323_v51 }
 0xb0e   :  { %v1392_v9 = vpack.c.bf16 %v1373_v5, %v1372_v18 }
 0xb10   :  { %3435 = vmatmul.mubr.bf16.gmra.mrb[56].mxu0 %v1392_v9 }
 0xb11   :  { %3460 = vmatprep.mubr.msk.bf16.mxu0 %vm3921_vm0, %v3920_v1 }
 0xbd1   :  { %v1480_v39 = vpop.f32.mrb[48].mxu0 }
 0xbd2   :  { %v1481_v23 = vadd.f32 %v3058_v33, %v1480_v39  ;;  %v3428_v17 = vpop.f32.mrb[49].mxu0 }
 0xbd3   :  { %v1483_v27 = vpop.f32.mrb[50].mxu0  ;;  %v3672_v17 = vld [vmem:[%s4936_s3 + $0x90] sm:$0xff]  }
 0xbd4   :  { %v4457_v28 = vadd.f32 %v1481_v23, %v4338_v12  ;;  %v1484_v34 = vadd.f32 %v3058_v33, %v1483_v27  ;;  %v3429_v42 = vpop.f32.mrb[51].mxu0  ;;  %v3671_v23 = vld [vmem:[%s4936_s3 + $0x88] sm:$0xff]  }
 0xbd5   :  { %3439 = vmatpush3.bf16.msra.mxu1 %v3671_v23 }
 0xbd6   :  { %v4460_v29 = vadd.f32 %v1484_v34, %v4341_v56  ;;  %v1511_v30 = vsel %vm127_vm2, %v4457_v28, 0.0  ;;  %3440 = vmatprep.subr.bf16.mxu1 %v3920_v1 }
 0xbd7   :  { %1512 = vadd.xlane.f32.xlu1 %v1511_v30 }
 0xbd8   :  { %v1514_v32 = vsel %vm127_vm2, %v4460_v29, 0.0 }
 0xbd9   :  { %1515 = vadd.xlane.f32.xlu0 %v1514_v32  ;;  %3441 = vmatpush3.bf16.msra.mxu1 %v3672_v17 }
 0xbda   :  { %3472 = vmatprep.subr.bf16.mxu1 %v3920_v1 }
 0xbdb   :  { %v1488_v49 = vpop.f32.mrb[52].mxu0 }
 0xbdc   :  { %v1489_v25 = vadd.f32 %v3058_v33, %v1488_v49  ;;  %v3432_v16 = vpop.f32.mrb[53].mxu0 }
 0xbdd   :  { %v1491_v19 = vpop.f32.mrb[54].mxu0 }
 0xbde   :  { %v4467_v12 = vadd.f32 %v1489_v25, %v4348_v20  ;;  %v1492_v38 = vadd.f32 %v3058_v33, %v1491_v19  ;;  %v3433_v36 = vpop.f32.mrb[55].mxu0 }
 0xbe0   :  { %v4470_v56 = vadd.f32 %v1492_v38, %v4351_v21  ;;  %v1517_v41 = vsel %vm127_vm2, %v4467_v12, 0.0 }
 0xbe1   :  { %1518 = vadd.xlane.f32.xlu1 %v1517_v41 }
 0xbe2   :  { %v1520_v45 = vsel %vm127_vm2, %v4470_v56, 0.0 }
 0xbe3   :  { %1521 = vadd.xlane.f32.xlu0 %v1520_v45  ;;  %v1496_v58 = vpop.f32.mrb[56].mxu0  ;;  %v3067_v45 = vld [vmem:[%s4935_s2 + $0xa] ss:$0 sm:$0xff] }
 0xbe4   :  { %v1497_v48 = vadd.f32 %v3058_v33, %v1496_v58  ;;  %v3436_v50 = vpop.f32.mrb[57].mxu0 }
 0xbe5   :  { %v1499_v40 = vpop.f32.mrb[58].mxu0 }
 0xbe6   :  { %v4477_v20 = vadd.f32 %v1497_v48, %v4358_v44  ;;  %v1500_v43 = vadd.f32 %v3058_v33, %v1499_v40  ;;  %v3437_v55 = vpop.f32.mrb[59].mxu0 }
 0xbe8   :  { %v4480_v21 = vadd.f32 %v1500_v43, %v4361_v37  ;;  %v1523_v51 = vsel %vm127_vm2, %v4477_v20, 0.0 }
 0xbe9   :  { %1524 = vadd.xlane.f32.xlu1 %v1523_v51  ;;  %v3068_v51 = vld [vmem:[%s4935_s2 + $0xb] ss:$0 sm:$0xff] }
 0xbea   :  { %v1526_v26 = vsel %vm127_vm2, %v4480_v21, 0.0 }
 0xbeb   :  { %1527 = vadd.xlane.f32.xlu0 %v1526_v26 }
 0xc64   :  { %v1513_v54 = vpop.xlane.xlu1 %1512 }
 0xc65   :  { %v1529_v47 = vmul.f32 0.03125, %v1513_v54 }
 0xc66   :  { %v1516_v24 = vpop.xlane.xlu0 %1515 }
 0xc67   :  { %v1535_v60 = vsub.f32 %v4457_v28, %v1529_v47  ;;  %v1530_v44 = vmul.f32 0.03125, %v1516_v24 }
 0xc69   :  { %v1536_v57 = vsub.f32 %v4460_v29, %v1530_v44  ;;  %v1541_v61 = vmul.f32 %v1535_v60, %v1535_v60 }
 0xc6b   :  { %v1547_v37 = vsel %vm127_vm2, %v1541_v61, 0.0  ;;  %v1542_v62 = vmul.f32 %v1536_v57, %v1536_v57 }
 0xc6c   :  { %1548 = vadd.xlane.f32.xlu1 %v1547_v37 }
 0xc6d   :  { %v1550_v2 = vsel %vm127_vm2, %v1542_v62, 0.0 }
 0xc6e   :  { %v1519_v52 = vpop.xlane.xlu1 %1518  ;;  %1551 = vadd.xlane.f32.xlu0 %v1550_v2 }
 0xc6f   :  { %v1531_v3 = vmul.f32 0.03125, %v1519_v52 }
 0xc70   :  { %v1522_v22 = vpop.xlane.xlu0 %1521 }
 0xc71   :  { %v4491_v10 = vsub.f32 %v4467_v12, %v1531_v3  ;;  %v1532_v46 = vmul.f32 0.03125, %v1522_v22 }
 0xc73   :  { %v4494_v59 = vsub.f32 %v4470_v56, %v1532_v46  ;;  %v1543_v35 = vmul.f32 %v4491_v10, %v4491_v10 }
 0xc75   :  { %v1553_v6 = vsel %vm127_vm2, %v1543_v35, 0.0  ;;  %v1544_v11 = vmul.f32 %v4494_v59, %v4494_v59 }
 0xc76   :  { %1554 = vadd.xlane.f32.xlu1 %v1553_v6  ;;  %v1525_v53 = vpop.xlane.xlu1 %1524 }
 0xc77   :  { %v1533_v8 = vmul.f32 0.03125, %v1525_v53  ;;  %v1556_v7 = vsel %vm127_vm2, %v1544_v11, 0.0 }
 0xc78   :  { %1557 = vadd.xlane.f32.xlu0 %v1556_v7  ;;  %v1528_v14 = vpop.xlane.xlu0 %1527 }
 0xc79   :  { %v1539_v31 = vsub.f32 %v4477_v20, %v1533_v8  ;;  %v1534_v13 = vmul.f32 0.03125, %v1528_v14 }
 0xc7b   :  { %v1540_v18 = vsub.f32 %v4480_v21, %v1534_v13  ;;  %v1545_v5 = vmul.f32 %v1539_v31, %v1539_v31 }
 0xc7d   :  { %v1559_v9 = vsel %vm127_vm2, %v1545_v5, 0.0  ;;  %v1546_v33 = vmul.f32 %v1540_v18, %v1540_v18 }
 0xc7e   :  { %1560 = vadd.xlane.f32.xlu1 %v1559_v9 }
 0xc7f   :  { %v1562_v39 = vsel %vm127_vm2, %v1546_v33, 0.0 }
 0xc80   :  { %1563 = vadd.xlane.f32.xlu0 %v1562_v39 }
 0xcf9   :  { %v1549_v27 = vpop.xlane.xlu1 %1548 }
 0xcfa   :  { %v1565_v34 = vmul.f32 0.03125, %v1549_v27 }
 0xcfb   :  { %v1552_v42 = vpop.xlane.xlu0 %1551 }
 0xcfc   :  { %v1571_v30 = vadd.f32 1e-05, %v1565_v34  ;;  %v1566_v32 = vmul.f32 0.03125, %v1552_v42 }
 0xcfe   :  { %3798 = vrsqrt.f32 %v1571_v30  ;;  %v1572_v49 = vadd.f32 1e-05, %v1566_v32 }
 0xd00   :  { %3800 = vrsqrt.f32 %v1572_v49 }
 0xd03   :  { %v1555_v25 = vpop.xlane.xlu1 %1554 }
 0xd04   :  { %v1567_v16 = vmul.f32 0.03125, %v1555_v25 }
 0xd05   :  { %v1558_v19 = vpop.xlane.xlu0 %1557 }
 0xd06   :  { %v1573_v38 = vadd.f32 1e-05, %v1567_v16  ;;  %v1568_v36 = vmul.f32 0.03125, %v1558_v19 }
 0xd08   :  { %v3799_v41 = vpop.eup %3798  ;;  %3802 = vrsqrt.f32 %v1573_v38  ;;  %v1574_v58 = vadd.f32 1e-05, %v1568_v36 }
 0xd09   :  { %v1583_v48 = vmul.f32 %v3799_v41, %v1535_v60 }
 0xd0a   :  { %v3801_v50 = vpop.eup %3800  ;;  %3804 = vrsqrt.f32 %v1574_v58 }
 0xd0b   :  { %v1593_v40 = vmul.f32 %v3067_v45, %v1583_v48  ;;  %v1584_v43 = vmul.f32 %v3801_v50, %v1536_v57  ;;  %v1561_v55 = vpop.xlane.xlu1 %1560 }
 0xd0c   :  { %v1569_v26 = vmul.f32 0.03125, %v1561_v55 }
 0xd0d   :  { %v1594_v54 = vmul.f32 %v3067_v45, %v1584_v43  ;;  %v1564_v47 = vpop.xlane.xlu0 %1563  ;;  %v1603_v61 = vadd.f32 %v3068_v51, %v1593_v40 }
 0xd0e   :  { %v1575_v24 = vadd.f32 1e-05, %v1569_v26  ;;  %v1570_v44 = vmul.f32 0.03125, %v1564_v47 }
 0xd0f   :  { %v1604_v37 = vadd.f32 %v3068_v51, %v1594_v54 }
 0xd10   :  { %3806 = vrsqrt.f32 %v1575_v24  ;;  %v1576_v62 = vadd.f32 1e-05, %v1570_v44 }
 0xd11   :  { %v1613_v2 = vpack.c.bf16 %v1604_v37, %v1603_v61 }
 0xd12   :  { %v3803_v60 = vpop.eup %3802  ;;  %3808 = vrsqrt.f32 %v1576_v62 }
 0xd13   :  { %v1585_v52 = vmul.f32 %v3803_v60, %v4491_v10  ;;  %3443 = vmatmul.mubr.msk.bf16.vlgmr.msra.gmra.mrb[60].mxu1 %vm127_vm2, %v1613_v2 }
 0xd14   :  { %v3805_v57 = vpop.eup %3804  ;;  %3446 = vmatprep.mubr.msk.bf16.mxu1 %vm3921_vm0, %v3920_v1 }
 0xd15   :  { %v1586_v3 = vmul.f32 %v3805_v57, %v4494_v59  ;;  %v1595_v22 = vmul.f32 %v3067_v45, %v1585_v52  ;;  %v3069_v59 = vld [vmem:[%s4935_s2 + $0xc] ss:$0 sm:$0xff] }
 0xd17   :  { %v1596_v46 = vmul.f32 %v3067_v45, %v1586_v3  ;;  %v1605_v35 = vadd.f32 %v3068_v51, %v1595_v22 }
 0xd19   :  { %v1606_v6 = vadd.f32 %v3068_v51, %v1596_v46 }
 0xd1a   :  { %v3807_v11 = vpop.eup %3806 }
 0xd1b   :  { %v1587_v53 = vmul.f32 %v3807_v11, %v1539_v31  ;;  %v1614_v8 = vpack.c.bf16 %v1606_v6, %v1605_v35 }
 0xd1c   :  { %v3809_v7 = vpop.eup %3808 }
 0xd1d   :  { %v1588_v14 = vmul.f32 %v3809_v7, %v1540_v18  ;;  %3447 = vmatmul.mubr.msk.bf16.gmra.mrb[64].mxu1 %vm127_vm2, %v1614_v8  ;;  %v1597_v10 = vmul.f32 %v3067_v45, %v1587_v53 }
 0xd1e   :  { %3450 = vmatprep.mubr.msk.bf16.mxu1 %vm3921_vm0, %v3920_v1 }
 0xd1f   :  { %v1598_v13 = vmul.f32 %v3067_v45, %v1588_v14  ;;  %v1607_v5 = vadd.f32 %v3068_v51, %v1597_v10 }
 0xd21   :  { %v1608_v9 = vadd.f32 %v3068_v51, %v1598_v13 }
 0xd23   :  { %v1615_v33 = vpack.c.bf16 %v1608_v9, %v1607_v5 }
 0xd25   :  { %3451 = vmatmul.mubr.msk.bf16.gmra.mrb[68].mxu1 %vm127_vm2, %v1615_v33 }
 0xd26   :  { %3478 = vmatprep.mubr.msk.bf16.mxu1 %vm3921_vm0, %v3920_v1 }
 0xde6   :  { %v1676_v31 = vpop.f32.mrb[60].mxu1 }
 0xde7   :  { %v3444_v18 = vpop.f32.mrb[61].mxu1  ;;  %v1677_v23 = vadd.f32 %v3069_v59, %v1676_v31 }
 0xde8   :  { %v1679_v39 = vpop.f32.mrb[62].mxu1 }
 0xde9   :  { %v1680_v17 = vadd.f32 %v3069_v59, %v1679_v39  ;;  %v3445_v27 = vpop.f32.mrb[63].mxu1 }
 0xdeb   :  { %v4534_v34 = vpack.c.bf16 %v1680_v17, %v1677_v23 }
 0xded   :  { %1705 = vrot.lane.b32.xlu1 %v4534_v34, %s3922_s5 }
 0xdf0   :  { %v1684_v42 = vpop.f32.mrb[64].mxu1 }
 0xdf1   :  { %v3448_v30 = vpop.f32.mrb[65].mxu1  ;;  %v1685_v49 = vadd.f32 %v3069_v59, %v1684_v42 }
 0xdf2   :  { %v1687_v32 = vpop.f32.mrb[66].mxu1 }
 0xdf3   :  { %v1688_v25 = vadd.f32 %v3069_v59, %v1687_v32  ;;  %v3449_v16 = vpop.f32.mrb[67].mxu1 }
 0xdf5   :  { %v4538_v19 = vpack.c.bf16 %v1688_v25, %v1685_v49 }
 0xdf7   :  { %1707 = vrot.lane.b32.xlu0 %v4538_v19, %s3922_s5 }
 0xdf8   :  { %v1692_v38 = vpop.f32.mrb[68].mxu1 }
 0xdf9   :  { %v3452_v36 = vpop.f32.mrb[69].mxu1  ;;  %v1693_v45 = vadd.f32 %v3069_v59, %v1692_v38 }
 0xdfa   :  { %v1695_v41 = vpop.f32.mrb[70].mxu1 }
 0xdfb   :  { %v1696_v58 = vadd.f32 %v3069_v59, %v1695_v41  ;;  %v3453_v48 = vpop.f32.mrb[71].mxu1 }
 0xdfd   :  { %v4542_v50 = vpack.c.bf16 %v1696_v58, %v1693_v45 }
 0xdff   :  { %1945 = vrot.lane.b32.xlu0 %v4542_v50, %s3923_s6  ;;  %1709 = vrot.lane.b32.xlu1 %v4542_v50, %s3922_s5 }
 0xe03   :  { %1937 = vrot.lane.b32.xlu0 %v4538_v19, %s3924_s7  ;;  %1941 = vrot.lane.b32.xlu1 %v4534_v34, %s3923_s6 }
 0xe07   :  { %1943 = vrot.lane.b32.xlu1 %v4538_v19, %s3923_s6 }
 0xe0b   :  { %1935 = vrot.lane.b32.xlu1 %v4534_v34, %s3924_s7 }
 0xe0f   :  { %1939 = vrot.lane.b32.xlu1 %v4542_v50, %s3924_s7 }
 0xe5f   :  { %v1706_v40 = vpop.permute.xlu1 %1705 }
 0xe60   :  { %v1721_v43 = vsel %vm514_vm3, %v1706_v40, 0 }
 0xe61   :  { %3455 = vmatpush3.bf16.xpose.msra.mxu0 %v1721_v43 }
 0xe62   :  { %3456 = vmatprep.subr.bf16.mxu0 %v3920_v1 }
 0xe69   :  { %v1708_v55 = vpop.permute.xlu0 %1707 }
 0xe6a   :  { %v1724_v51 = vsel %vm514_vm3, %v1708_v55, 0 }
 0xe6b   :  { %3457 = vmatpush3.bf16.xpose.msra.mxu0 %v1724_v51 }
 0xe6c   :  { %3458 = vmatprep.subr.bf16.mxu0 %v3920_v1 }
 0xe71   :  { %v1710_v26 = vpop.permute.xlu1 %1709  ;;  %v1946_v37 = vpop.permute.xlu0 %1945 }
 0xe72   :  { %v1727_v54 = vsel %vm514_vm3, %v1710_v26, 0  ;;  %v1963_v62 = vsel %vm514_vm3, %v1946_v37, 0 }
 0xe73   :  { %3459 = vmatpush3.bf16.xpose.msra.mxu0 %v1727_v54 }
 0xe74   :  { %3490 = vmatprep.subr.bf16.mxu0 %v3920_v1 }
 0xe75   :  { %v1942_v47 = vpop.permute.xlu1 %1941  ;;  %v1938_v60 = vpop.permute.xlu0 %1937 }
 0xe76   :  { %v1957_v24 = vsel %vm514_vm3, %v1942_v47, 0 }
 0xe79   :  { %v1944_v44 = vpop.permute.xlu1 %1943 }
 0xe7a   :  { %3461 = vmatmul.mubr.msk.bf16.vlgmr.msra.gmra.mrb[60].mxu0 %vm514_vm3, %v4534_v34  ;;  %v1960_v61 = vsel %vm514_vm3, %v1944_v44, 0 }
 0xe7b   :  { %3491 = vmatpush3.bf16.xpose.msra.mxu0 %v1957_v24  ;;  %3464 = vmatprep.mubr.msk.bf16.mxu0 %vm3921_vm0, %v3920_v1 }
 0xe7c   :  { %3492 = vmatprep.subr.bf16.mxu0 %v3920_v1 }
 0xe7d   :  { %v1936_v2 = vpop.permute.xlu1 %1935 }
 0xe81   :  { %v1940_v52 = vpop.permute.xlu1 %1939 }
 0xe82   :  { %3465 = vmatmul.mubr.msk.bf16.gmra.mrb[64].mxu0 %vm514_vm3, %v4538_v19 }
 0xe83   :  { %3493 = vmatpush3.bf16.xpose.msra.mxu0 %v1960_v61  ;;  %3468 = vmatprep.mubr.msk.bf16.mxu0 %vm3921_vm0, %v3920_v1 }
 0xe84   :  { %3494 = vmatprep.subr.bf16.mxu0 %v3920_v1 }
 0xe8a   :  { %3469 = vmatmul.mubr.msk.bf16.gmra.mrb[68].mxu0 %vm514_vm3, %v4542_v50 }
 0xe8b   :  { %3495 = vmatpush3.bf16.xpose.msra.mxu0 %v1963_v62  ;;  %3496 = vmatprep.mubr.msk.bf16.mxu0 %vm3921_vm0, %v3920_v1 }
 0xe8c   :  { %3526 = vmatprep.subr.bf16.mxu0 %v3920_v1 }
 0xe92   :  { %3497 = vmatmul.mubr.msk.bf16.vlgmr.msra.gmra.mrb[72].mxu0 %vm514_vm3, %v1936_v2 }
 0xe93   :  { %3500 = vmatprep.mubr.msk.bf16.mxu0 %vm3921_vm0, %v3920_v1 }
 0xe9a   :  { %3501 = vmatmul.mubr.msk.bf16.gmra.mrb[76].mxu0 %vm514_vm3, %v1938_v60 }
 0xe9b   :  { %3504 = vmatprep.mubr.msk.bf16.mxu0 %vm3921_vm0, %v3920_v1 }
 0xea2   :  { %3505 = vmatmul.mubr.msk.bf16.gmra.mrb[80].mxu0 %vm514_vm3, %v1940_v52 }
 0xea3   :  { %3528 = vmatprep.mubr.msk.bf16.mxu0 %vm3921_vm0, %v3920_v1 }
 0xf4d   :  { %v1763_v57 = vpop.f32.mrb[60].mxu0 }
 0xf4e   :  { %v4592_v3 = vadd.f32 %v1763_v57, %v4177_v4  ;;  %v3462_v22 = vpop.f32.mrb[61].mxu0 }
 0xf4f   :  { %v1766_v46 = vpop.f32.mrb[62].mxu0 }
 0xf50   :  { %v4595_v35 = vadd.f32 %v1766_v46, %v4177_v4  ;;  %v3463_v6 = vpop.f32.mrb[63].mxu0  ;;  %v1786_v11 = vsel %vm58_vm1, %v4592_v3, -inf }
 0xf51   :  { %1787 = vmax.xlane.f32.xlu0 %v1786_v11 }
 0xf52   :  { %v1789_v53 = vsel %vm58_vm1, %v4595_v35, -inf }
 0xf53   :  { %1790 = vmax.xlane.f32.xlu1 %v1789_v53 }
 0xf55   :  { %v1771_v8 = vpop.f32.mrb[64].mxu0 }
 0xf56   :  { %v4602_v7 = vadd.f32 %v1771_v8, %v4177_v4  ;;  %v3466_v14 = vpop.f32.mrb[65].mxu0 }
 0xf57   :  { %v1774_v10 = vpop.f32.mrb[66].mxu0 }
 0xf58   :  { %v1775_v13 = vadd.f32 %v1774_v10, %v4191_v15  ;;  %v3467_v5 = vpop.f32.mrb[67].mxu0  ;;  %v1792_v9 = vsel %vm58_vm1, %v4602_v7, -inf }
 0xf59   :  { %1793 = vmax.xlane.f32.xlu0 %v1792_v9 }
 0xf5a   :  { %v1795_v33 = vsel %vm58_vm1, %v1775_v13, -inf }
 0xf5d   :  { %1796 = vmax.xlane.f32.xlu0 %v1795_v33  ;;  %v1779_v59 = vpop.f32.mrb[68].mxu0 }
 0xf5e   :  { %v4609_v31 = vadd.f32 %v1779_v59, %v4191_v15  ;;  %v3470_v18 = vpop.f32.mrb[69].mxu0 }
 0xf5f   :  { %v1782_v39 = vpop.f32.mrb[70].mxu0 }
 0xf60   :  { %v1783_v23 = vadd.f32 %v1782_v39, %v4191_v15  ;;  %v3471_v17 = vpop.f32.mrb[71].mxu0  ;;  %v1798_v27 = vsel %vm58_vm1, %v4609_v31, -inf }
 0xf61   :  { %1799 = vmax.xlane.f32.xlu0 %v1798_v27 }
 0xf62   :  { %v1801_v42 = vsel %vm58_vm1, %v1783_v23, -inf }
 0xf63   :  { %1802 = vmax.xlane.f32.xlu1 %v1801_v42 }
 0xf65   :  { %v1999_v30 = vpop.f32.mrb[72].mxu0 }
 0xf66   :  { %v2000_v32 = vadd.f32 %v1999_v30, %v4177_v4  ;;  %v3498_v49 = vpop.f32.mrb[73].mxu0 }
 0xf67   :  { %v2002_v25 = vpop.f32.mrb[74].mxu0 }
 0xf68   :  { %v4617_v16 = vadd.f32 %v2002_v25, %v4177_v4  ;;  %v3499_v38 = vpop.f32.mrb[75].mxu0  ;;  %v2022_v36 = vsel %vm58_vm1, %v2000_v32, -inf }
 0xf69   :  { %2023 = vmax.xlane.f32.xlu0 %v2022_v36 }
 0xf6a   :  { %v2025_v41 = vsel %vm58_vm1, %v4617_v16, -inf }
 0xf6b   :  { %2026 = vmax.xlane.f32.xlu1 %v2025_v41 }
 0xf6d   :  { %v2007_v45 = vpop.f32.mrb[76].mxu0 }
 0xf6e   :  { %v2008_v58 = vadd.f32 %v2007_v45, %v4177_v4  ;;  %v3502_v48 = vpop.f32.mrb[77].mxu0 }
 0xf6f   :  { %v2010_v40 = vpop.f32.mrb[78].mxu0 }
 0xf70   :  { %v2011_v43 = vadd.f32 %v2010_v40, %v4191_v15  ;;  %v3503_v55 = vpop.f32.mrb[79].mxu0  ;;  %v2028_v51 = vsel %vm58_vm1, %v2008_v58, -inf }
 0xf71   :  { %2029 = vmax.xlane.f32.xlu0 %v2028_v51 }
 0xf72   :  { %v2031_v26 = vsel %vm58_vm1, %v2011_v43, -inf }
 0xf73   :  { %2032 = vmax.xlane.f32.xlu1 %v2031_v26 }
 0xf75   :  { %v2015_v54 = vpop.f32.mrb[80].mxu0 }
 0xf76   :  { %v3506_v47 = vpop.f32.mrb[81].mxu0  ;;  %v4636_v37 = vadd.f32 %v2015_v54, %v4191_v15 }
 0xf77   :  { %v2018_v24 = vpop.f32.mrb[82].mxu0 }
 0xf78   :  { %v4627_v44 = vadd.f32 %v2018_v24, %v4191_v15  ;;  %v3507_v61 = vpop.f32.mrb[83].mxu0  ;;  %v2034_v62 = vsel %vm58_vm1, %v4636_v37, -inf }
 0xf7a   :  { %v2037_v4 = vsel %vm58_vm1, %v4627_v44, -inf }
 0xf7b   :  { %2038 = vmax.xlane.f32.xlu1 %v2037_v4 }
 0xf87   :  { %1855 = vrot.lane.b32.xlu0 %v4534_v34, %s3925_s8 }
 0xf8c   :  { %1857 = vrot.lane.b32.xlu1 %v4538_v19, %s3925_s8 }
 0xfa6   :  { %2035 = vmax.xlane.f32.xlu0 %v2034_v62 }
 0xfde   :  { %v1788_v2 = vpop.xlane.xlu0 %1787 }
 0xfdf   :  { %v1804_v60 = vsub.f32 %v4592_v3, %v1788_v2 }
 0xfe0   :  { %v1791_v52 = vpop.xlane.xlu1 %1790 }
 0xfe1   :  { %v1810_v57 = vmul.f32 1.442695, %v1804_v60  ;;  %v1805_v22 = vsub.f32 %v4595_v35, %v1791_v52 }
 0xfe3   :  { %3810 = vpow2.f32 %v1810_v57  ;;  %v1812_v46 = vmul.f32 1.442695, %v1805_v22 }
 0xfe5   :  { %3812 = vpow2.f32 %v1812_v46 }
 0xfe6   :  { %v1794_v6 = vpop.xlane.xlu0 %1793 }
 0xfe7   :  { %v1806_v55 = vsub.f32 %v4602_v7, %v1794_v6 }
 0xfe9   :  { %v1814_v54 = vmul.f32 1.442695, %v1806_v55 }
 0xfea   :  { %v1797_v11 = vpop.xlane.xlu0 %1796 }
 0xfeb   :  { %v1807_v53 = vsub.f32 %v1775_v13, %v1797_v11 }
 0xfed   :  { %v4642_v8 = vpop.eup %3810  ;;  %v1816_v15 = vmul.f32 1.442695, %v1807_v53 }
 0xfee   :  { %v1822_v14 = vsel %vm58_vm1, %v4642_v8, 0.0  ;;  %v1800_v9 = vpop.xlane.xlu0 %1799 }
 0xfef   :  { %v4646_v10 = vpop.eup %3812  ;;  %3814 = vpow2.f32 %v1816_v15  ;;  %1823 = vadd.xlane.f32.xlu0 %v1822_v14  ;;  %v1808_v47 = vsub.f32 %v4609_v31, %v1800_v9 }
 0xff0   :  { %v1803_v3 = vpop.xlane.xlu1 %1802  ;;  %v1825_v35 = vsel %vm58_vm1, %v4646_v10, 0.0 }
 0xff1   :  { %v1809_v5 = vsub.f32 %v1783_v23, %v1803_v3  ;;  %1826 = vadd.xlane.f32.xlu1 %v1825_v35  ;;  %v1818_v61 = vmul.f32 1.442695, %v1808_v47 }
 0xff3   :  { %v1820_v33 = vmul.f32 1.442695, %v1809_v5 }
 0xff5   :  { %3816 = vpow2.f32 %v1820_v33 }
 0xff6   :  { %v2024_v13 = vpop.xlane.xlu0 %2023 }
 0xff7   :  { %v2040_v59 = vsub.f32 %v2000_v32, %v2024_v13 }
 0xff8   :  { %v2027_v27 = vpop.xlane.xlu1 %2026 }
 0xff9   :  { %v4650_v18 = vpop.eup %3814  ;;  %v2046_v39 = vmul.f32 1.442695, %v2040_v59  ;;  %v2041_v4 = vsub.f32 %v4617_v16, %v2027_v27 }
 0xffa   :  { %v1831_v17 = vsel %vm58_vm1, %v4650_v18, 0.0 }
 0xffb   :  { %3818 = vpow2.f32 %v2046_v39  ;;  %1832 = vadd.xlane.f32.xlu1 %v1831_v17  ;;  %v2048_v7 = vmul.f32 1.442695, %v2041_v4  ;;  %v3673_v4 = vld [vmem:[%s4936_s3 + $0x98] sm:$0xff]  }
 0xffe   :  { %v2030_v42 = vpop.xlane.xlu0 %2029 }
 0xfff   :  { %v4654_v30 = vpop.eup %3816  ;;  %v2042_v49 = vsub.f32 %v2008_v58, %v2030_v42 }
0x1000   :  { %v2033_v23 = vpop.xlane.xlu1 %2032  ;;  %v1837_v25 = vsel %vm58_vm1, %v4654_v30, 0.0 }
0x1001   :  { %v2050_v38 = vmul.f32 1.442695, %v2042_v49  ;;  %v2043_v36 = vsub.f32 %v2011_v43, %v2033_v23  ;;  %1838 = vadd.xlane.f32.xlu1 %v1837_v25 }
0x1002   :  { %v1856_v32 = vpop.permute.xlu0 %1855 }
0x1003   :  { %3820 = vpow2.f32 %v2050_v38  ;;  %v2052_v41 = vmul.f32 1.442695, %v2043_v36  ;;  %3473 = vmatpush3.bf16.msra.mxu1 %v1856_v32 }
0x1004   :  { %3474 = vmatprep.subr.bf16.mxu1 %v3920_v1 }
0x1005   :  { %v4659_v45 = vpop.eup %3818  ;;  %3822 = vpow2.f32 %v2052_v41  ;;  %1859 = vrot.lane.b32.xlu0 %v4542_v50, %s3925_s8 }
0x1006   :  { %v2058_v58 = vsel %vm58_vm1, %v4659_v45, 0.0  ;;  %3824 = vpow2.f32 %v1814_v54 }
0x1007   :  { %2059 = vadd.xlane.f32.xlu1 %v2058_v58  ;;  %3826 = vpow2.f32 %v1818_v61 }
0x1008   :  { %v2039_v48 = vpop.xlane.xlu1 %2038  ;;  %3828 = vpow2.f32 %v2048_v7 }
0x1009   :  { %v2045_v22 = vsub.f32 %v4627_v44, %v2039_v48 }
0x100b   :  { %v2056_v6 = vmul.f32 1.442695, %v2045_v22 }
0x100c   :  { %v1858_v40 = vpop.permute.xlu1 %1857 }
0x100d   :  { %v4665_v43 = vpop.eup %3820  ;;  %3475 = vmatpush3.bf16.msra.mxu1 %v1858_v40 }
0x100e   :  { %v2064_v51 = vsel %vm58_vm1, %v4665_v43, 0.0  ;;  %3476 = vmatprep.subr.bf16.mxu1 %v3920_v1 }
0x100f   :  { %v4671_v26 = vpop.eup %3822  ;;  %2065 = vadd.xlane.f32.xlu1 %v2064_v51 }
0x1010   :  { %v2067_v24 = vsel %vm58_vm1, %v4671_v26, 0.0  ;;  %v3825_v62 = vpop.eup %3824 }
0x1011   :  { %v1828_v2 = vsel %vm58_vm1, %v3825_v62, 0.0  ;;  %v3827_v60 = vpop.eup %3826 }
0x1012   :  { %v1834_v52 = vsel %vm58_vm1, %v3827_v60, 0.0  ;;  %v4679_v57 = vpop.eup %3828 }
0x1013   :  { %2068 = vadd.xlane.f32.xlu1 %v2067_v24  ;;  %v2061_v31 = vsel %vm58_vm1, %v4679_v57, 0.0 }
0x1024   :  { %1829 = vadd.xlane.f32.xlu0 %v1828_v2 }
0x1028   :  { %1835 = vadd.xlane.f32.xlu0 %v1834_v52 }
0x102c   :  { %2062 = vadd.xlane.f32.xlu0 %v2061_v31 }
0x1033   :  { %v2036_v16 = vpop.xlane.xlu0 %2035 }
0x1034   :  { %v2044_v46 = vsub.f32 %v4636_v37, %v2036_v16 }
0x1036   :  { %v2054_v11 = vmul.f32 1.442695, %v2044_v46 }
0x1038   :  { %3830 = vpow2.f32 %v2054_v11 }
0x1039   :  { %3832 = vpow2.f32 %v2056_v6 }
0x1042   :  { %v4685_v53 = vpop.eup %3830  ;;  %2093 = vrot.lane.b32.xlu0 %v4538_v19, %s3927_s9 }
0x1043   :  { %v2070_v15 = vsel %vm58_vm1, %v4685_v53, 0.0  ;;  %v4691_v14 = vpop.eup %3832 }
0x1044   :  { %2071 = vadd.xlane.f32.xlu1 %v2070_v15  ;;  %v2073_v44 = vsel %vm58_vm1, %v4691_v14, 0.0 }
0x1046   :  { %2095 = vrot.lane.b32.xlu0 %v4542_v50, %s3927_s9 }
0x1048   :  { %2074 = vadd.xlane.f32.xlu1 %v2073_v44 }
0x1059   :  { %2091 = vrot.lane.b32.xlu1 %v4534_v34, %s3927_s9 }
0x107c   :  { %v1824_v37 = vpop.xlane.xlu0 %1823 }
0x107d   :  { %3834 = vrcp.f32 %v1824_v37 }
0x107e   :  { %v1827_v3 = vpop.xlane.xlu1 %1826 }
0x107f   :  { %3836 = vrcp.f32 %v1827_v3 }
0x1080   :  { %v1860_v19 = vpop.permute.xlu0 %1859 }
0x1081   :  { %3477 = vmatpush3.bf16.msra.mxu1 %v1860_v19 }
0x1082   :  { %3508 = vmatprep.subr.bf16.mxu1 %v3920_v1 }
0x1087   :  { %v3835_v35 = vpop.eup %3834 }
0x1088   :  { %v1846_v9 = vmul.f32 %v3835_v35, %v4642_v8  ;;  %v1833_v34 = vpop.xlane.xlu1 %1832 }
0x1089   :  { %v3837_v5 = vpop.eup %3836  ;;  %3838 = vrcp.f32 %v1833_v34 }
0x108a   :  { %v1847_v50 = vmul.f32 %v3837_v5, %v4646_v10 }
0x108c   :  { %v1852_v33 = vpack.c.bf16 %v1847_v50, %v1846_v9 }
0x108e   :  { %3479 = vmatmul.mubr.msk.bf16.vlgmr.msra.gmra.mrb[72].mxu1 %vm58_vm1, %v1852_v33  ;;  %v1839_v59 = vpop.xlane.xlu1 %1838 }
0x108f   :  { %3482 = vmatprep.mubr.msk.bf16.mxu1 %vm3921_vm0, %v3920_v1 }
0x1093   :  { %v3839_v17 = vpop.eup %3838 }
0x1094   :  { %v1849_v8 = vmul.f32 %v3839_v17, %v4650_v18  ;;  %v2060_v25 = vpop.xlane.xlu1 %2059 }
0x109c   :  { %v2066_v32 = vpop.xlane.xlu1 %2065 }
0x10a0   :  { %v2069_v18 = vpop.xlane.xlu1 %2068 }
0x10b1   :  { %v1830_v13 = vpop.xlane.xlu0 %1829 }
0x10b2   :  { %3840 = vrcp.f32 %v1830_v13 }
0x10b5   :  { %v1836_v39 = vpop.xlane.xlu0 %1835 }
0x10b6   :  { %3842 = vrcp.f32 %v1836_v39 }
0x10b7   :  { %3844 = vrcp.f32 %v1839_v59 }
0x10b9   :  { %v2063_v58 = vpop.xlane.xlu0 %2062 }
0x10ba   :  { %3846 = vrcp.f32 %v2063_v58 }
0x10bb   :  { %3848 = vrcp.f32 %v2060_v25 }
0x10bc   :  { %v3841_v27 = vpop.eup %3840  ;;  %3850 = vrcp.f32 %v2069_v18 }
0x10bd   :  { %v1848_v42 = vmul.f32 %v3841_v27, %v3825_v62  ;;  %v2094_v51 = vpop.permute.xlu0 %2093  ;;  %3852 = vrcp.f32 %v2066_v32 }
0x10bf   :  { %v1853_v10 = vpack.c.bf16 %v1849_v8, %v1848_v42 }
0x10c0   :  { %v3843_v49 = vpop.eup %3842 }
0x10c1   :  { %3483 = vmatmul.mubr.msk.bf16.gmra.mrb[76].mxu1 %vm58_vm1, %v1853_v10  ;;  %v3845_v23 = vpop.eup %3844  ;;  %v1850_v38 = vmul.f32 %v3843_v49, %v3827_v60  ;;  %v2096_v61 = vpop.permute.xlu0 %2095 }
0x10c2   :  { %3486 = vmatprep.mubr.msk.bf16.mxu1 %vm3921_vm0, %v3920_v1  ;;  %v1851_v36 = vmul.f32 %v3845_v23, %v4654_v30 }
0x10c4   :  { %v1854_v41 = vpack.c.bf16 %v1851_v36, %v1850_v38  ;;  %v3847_v30 = vpop.eup %3846 }
0x10c5   :  { %v3849_v54 = vpop.eup %3848  ;;  %v2083_v47 = vmul.f32 %v3847_v30, %v4679_v57 }
0x10c6   :  { %v2082_v24 = vmul.f32 %v3849_v54, %v4659_v45  ;;  %v3851_v62 = vpop.eup %3850 }
0x10c7   :  { %v3853_v2 = vpop.eup %3852  ;;  %v2085_v45 = vmul.f32 %v3851_v62, %v4671_v26 }
0x10c8   :  { %v2088_v7 = vpack.c.bf16 %v2083_v47, %v2082_v24  ;;  %v2084_v60 = vmul.f32 %v3853_v2, %v4665_v43  ;;  %v3674_v43 = vld [vmem:[%s4936_s3 + $0xa0] sm:$0xff]  }
0x10c9   :  { %3487 = vmatmul.mubr.msk.bf16.gmra.mrb[80].mxu1 %vm58_vm1, %v1854_v41  ;;  %3527 = vmatpush3.bf16.msra.mxu0 %v3674_v43 }
0x10ca   :  { %3514 = vmatprep.mubr.msk.bf16.mxu1 %vm3921_vm0, %v3920_v1  ;;  %v2089_v52 = vpack.c.bf16 %v2085_v45, %v2084_v60  ;;  %3554 = vmatprep.subr.bf16.mxu0 %v3920_v1 }
0x10d1   :  { %v2072_v48 = vpop.xlane.xlu1 %2071 }
0x10d5   :  { %v2075_v40 = vpop.xlane.xlu1 %2074 }
0x10d6   :  { %3854 = vrcp.f32 %v2075_v40 }
0x10d7   :  { %3856 = vrcp.f32 %v2072_v48 }
0x10d9   :  { %v2092_v55 = vpop.permute.xlu1 %2091 }
0x10da   :  { %3509 = vmatpush3.bf16.msra.mxu1 %v2092_v55 }
0x10db   :  { %3510 = vmatprep.subr.bf16.mxu1 %v3920_v1 }
0x10de   :  { %3511 = vmatpush3.bf16.msra.mxu1 %v2094_v51 }
0x10df   :  { %3512 = vmatprep.subr.bf16.mxu1 %v3920_v1 }
0x10e0   :  { %v3855_v57 = vpop.eup %3854 }
0x10e1   :  { %v3857_v31 = vpop.eup %3856  ;;  %v2087_v22 = vmul.f32 %v3855_v57, %v4691_v14 }
0x10e2   :  { %3513 = vmatpush3.bf16.msra.mxu1 %v2096_v61  ;;  %v2086_v16 = vmul.f32 %v3857_v31, %v4685_v53 }
0x10e3   :  { %3540 = vmatprep.subr.bf16.mxu1 %v3920_v1 }
0x10e4   :  { %v2090_v46 = vpack.c.bf16 %v2087_v22, %v2086_v16 }
0x10e5   :  { %3515 = vmatmul.mubr.msk.bf16.vlgmr.msra.gmra.mrb[84].mxu1 %vm58_vm1, %v2088_v7  ;;  %v3095_v7 = vld [vmem:[%s4935_s2 + $0xd] ss:$0 sm:$0xff] }
0x10e6   :  { %3518 = vmatprep.mubr.msk.bf16.mxu1 %vm3921_vm0, %v3920_v1  ;;  %3541 = vmatpush3.bf16.msra.mxu1 %v3673_v4 }
0x10e7   :  { %3570 = vmatprep.subr.bf16.mxu1 %v3920_v1 }
0x10ed   :  { %3519 = vmatmul.mubr.msk.bf16.gmra.mrb[88].mxu1 %vm58_vm1, %v2089_v52 }
0x10ee   :  { %3522 = vmatprep.mubr.msk.bf16.mxu1 %vm3921_vm0, %v3920_v1 }
0x10f5   :  { %3523 = vmatmul.mubr.msk.bf16.gmra.mrb[92].mxu1 %vm58_vm1, %v2090_v46 }
0x10f6   :  { %3542 = vmatprep.mubr.msk.bf16.mxu1 %vm3921_vm0, %v3920_v1 }
0x1161   :  { %v1907_v26 = vpop.f32.mrb[72].mxu1 }
0x1162   :  { %v3480_v6 = vpop.f32.mrb[73].mxu1 }
0x1163   :  { %v1910_v11 = vpop.f32.mrb[74].mxu1 }
0x1164   :  { %v1932_v15 = vpack.c.bf16 %v1910_v11, %v1907_v26  ;;  %v3481_v14 = vpop.f32.mrb[75].mxu1 }
0x1166   :  { %3543 = vmatmul.mubr.msk.bf16.vlgmr.msra.gmra.mrb[96].mxu1 %vm514_vm3, %v1932_v15 }
0x1167   :  { %3546 = vmatprep.mubr.msk.bf16.mxu1 %vm3921_vm0, %v3920_v1 }
0x1194   :  { %v1915_v53 = vpop.f32.mrb[76].mxu1 }
0x1195   :  { %v3484_v44 = vpop.f32.mrb[77].mxu1 }
0x1196   :  { %v1918_v37 = vpop.f32.mrb[78].mxu1 }
0x1197   :  { %v1933_v3 = vpack.c.bf16 %v1918_v37, %v1915_v53  ;;  %v3485_v19 = vpop.f32.mrb[79].mxu1 }
0x1199   :  { %3547 = vmatmul.mubr.msk.bf16.gmra.mrb[100].mxu1 %vm514_vm3, %v1933_v3 }
0x119a   :  { %3550 = vmatprep.mubr.msk.bf16.mxu1 %vm3921_vm0, %v3920_v1 }
0x119c   :  { %v1923_v35 = vpop.f32.mrb[80].mxu1 }
0x119d   :  { %v3488_v5 = vpop.f32.mrb[81].mxu1 }
0x119e   :  { %v1926_v9 = vpop.f32.mrb[82].mxu1 }
0x119f   :  { %v1934_v50 = vpack.c.bf16 %v1926_v9, %v1923_v35  ;;  %v3489_v33 = vpop.f32.mrb[83].mxu1 }
0x11a1   :  { %3551 = vmatmul.mubr.msk.bf16.gmra.mrb[104].mxu1 %vm514_vm3, %v1934_v50 }
0x11a2   :  { %3586 = vmatprep.mubr.msk.bf16.mxu1 %vm3921_vm0, %v3920_v1 }
0x11b8   :  { %v2143_v34 = vpop.f32.mrb[84].mxu1 }
0x11b9   :  { %v3516_v13 = vpop.f32.mrb[85].mxu1 }
0x11ba   :  { %v2146_v59 = vpop.f32.mrb[86].mxu1 }
0x11bb   :  { %v2168_v39 = vpack.c.bf16 %v2146_v59, %v2143_v34  ;;  %v3517_v17 = vpop.f32.mrb[87].mxu1 }
0x11bd   :  { %3529 = vmatmul.mubr.msk.bf16.vlgmr.msra.gmra.mrb[84].mxu0 %vm514_vm3, %v2168_v39 }
0x11be   :  { %3532 = vmatprep.mubr.msk.bf16.mxu0 %vm3921_vm0, %v3920_v1 }
0x11c0   :  { %v2151_v27 = vpop.f32.mrb[88].mxu1 }
0x11c1   :  { %v3520_v42 = vpop.f32.mrb[89].mxu1 }
0x11c2   :  { %v2154_v8 = vpop.f32.mrb[90].mxu1 }
0x11c3   :  { %v2169_v10 = vpack.c.bf16 %v2154_v8, %v2151_v27  ;;  %v3521_v49 = vpop.f32.mrb[91].mxu1 }
0x11c5   :  { %3533 = vmatmul.mubr.msk.bf16.gmra.mrb[88].mxu0 %vm514_vm3, %v2169_v10 }
0x11c6   :  { %3536 = vmatprep.mubr.msk.bf16.mxu0 %vm3921_vm0, %v3920_v1 }
0x11c8   :  { %v2159_v23 = vpop.f32.mrb[92].mxu1 }
0x11c9   :  { %v3524_v25 = vpop.f32.mrb[93].mxu1 }
0x11ca   :  { %v2162_v38 = vpop.f32.mrb[94].mxu1 }
0x11cb   :  { %v2170_v36 = vpack.c.bf16 %v2162_v38, %v2159_v23  ;;  %v3525_v32 = vpop.f32.mrb[95].mxu1 }
0x11cd   :  { %3537 = vmatmul.mubr.msk.bf16.gmra.mrb[92].mxu0 %vm514_vm3, %v2170_v36 }
0x11ce   :  { %3558 = vmatprep.mubr.msk.bf16.mxu0 %vm3921_vm0, %v3920_v1 }
0x1239   :  { %v2292_v41 = vpop.f32.mrb[96].mxu1 }
0x123a   :  { %v3544_v18 = vpop.f32.mrb[97].mxu1 }
0x123b   :  { %v2295_v58 = vpop.f32.mrb[98].mxu1 }
0x123c   :  { %v3545_v48 = vpop.f32.mrb[99].mxu1 }
0x126c   :  { %v2300_v40 = vpop.f32.mrb[100].mxu1 }
0x126d   :  { %v3548_v55 = vpop.f32.mrb[101].mxu1 }
0x126e   :  { %v2303_v51 = vpop.f32.mrb[102].mxu1 }
0x126f   :  { %v3549_v30 = vpop.f32.mrb[103].mxu1 }
0x1274   :  { %v2308_v54 = vpop.f32.mrb[104].mxu1 }
0x1275   :  { %v3552_v47 = vpop.f32.mrb[105].mxu1 }
0x1276   :  { %v2311_v24 = vpop.f32.mrb[106].mxu1 }
0x1277   :  { %v3553_v61 = vpop.f32.mrb[107].mxu1 }
0x1290   :  { %v2220_v4 = vpop.f32.mrb[84].mxu0 }
0x1291   :  { %v2293_v62 = vadd.f32 %v2292_v41, %v2220_v4  ;;  %v3530_v2 = vpop.f32.mrb[85].mxu0 }
0x1292   :  { %v2223_v45 = vpop.f32.mrb[86].mxu0 }
0x1293   :  { %v2320_v60 = vadd.f32 %v3095_v7, %v2293_v62  ;;  %v2296_v52 = vadd.f32 %v2295_v58, %v2223_v45  ;;  %v3531_v57 = vpop.f32.mrb[87].mxu0 }
0x1294   :  { %v3676_v57 = vld [vmem:[%s4936_s3 + $0xb0] sm:$0xff]  }
0x1295   :  { %v4761_v31 = vadd.f32 %v2320_v60, %v4457_v28  ;;  %v2321_v22 = vadd.f32 %v3095_v7, %v2296_v52  ;;  %v3675_v52 = vld [vmem:[%s4936_s3 + $0xa8] sm:$0xff]  }
0x1296   :  { %3555 = vmatpush3.bf16.msra.mxu0 %v3675_v52  ;;  %v3683_v52 = vld [vmem:[%s4936_s3 + $0xe8] sm:$0xff]  }
0x1297   :  { %v4764_v16 = vadd.f32 %v2321_v22, %v4460_v29  ;;  %v2334_v46 = vsel %vm127_vm2, %v4761_v31, 0.0  ;;  %3556 = vmatprep.subr.bf16.mxu0 %v3920_v1 }
0x1298   :  { %2335 = vadd.xlane.f32.xlu0 %v2334_v46  ;;  %v2228_v43 = vpop.f32.mrb[88].mxu0 }
0x1299   :  { %v2301_v26 = vadd.f32 %v2300_v40, %v2228_v43  ;;  %v3534_v6 = vpop.f32.mrb[89].mxu0  ;;  %v2337_v11 = vsel %vm127_vm2, %v4764_v16, 0.0 }
0x129a   :  { %2338 = vadd.xlane.f32.xlu1 %v2337_v11  ;;  %v2231_v15 = vpop.f32.mrb[90].mxu0  ;;  %3557 = vmatpush3.bf16.msra.mxu0 %v3676_v57  ;;  %v3684_v57 = vld [vmem:[%s4936_s3 + $0xf0] sm:$0xff]  }
0x129b   :  { %v2322_v14 = vadd.f32 %v3095_v7, %v2301_v26  ;;  %v2304_v53 = vadd.f32 %v2303_v51, %v2231_v15  ;;  %v3535_v28 = vpop.f32.mrb[91].mxu0 }
0x129d   :  { %v4771_v44 = vadd.f32 %v2322_v14, %v4467_v12  ;;  %v2323_v29 = vadd.f32 %v3095_v7, %v2304_v53 }
0x129f   :  { %v4774_v37 = vadd.f32 %v2323_v29, %v4470_v56  ;;  %v2340_v3 = vsel %vm127_vm2, %v4771_v44, 0.0 }
0x12a0   :  { %2341 = vadd.xlane.f32.xlu0 %v2340_v3  ;;  %v2236_v19 = vpop.f32.mrb[92].mxu0 }
0x12a1   :  { %v2309_v35 = vadd.f32 %v2308_v54, %v2236_v19  ;;  %v3538_v5 = vpop.f32.mrb[93].mxu0  ;;  %v2343_v13 = vsel %vm127_vm2, %v4774_v37, 0.0  ;;  %v3096_v19 = vld [vmem:[%s4935_s2 + $0xe] ss:$0 sm:$0xff] }
0x12a2   :  { %v2239_v9 = vpop.f32.mrb[94].mxu0 }
0x12a3   :  { %v2324_v50 = vadd.f32 %v3095_v7, %v2309_v35  ;;  %v2312_v33 = vadd.f32 %v2311_v24, %v2239_v9  ;;  %v3539_v34 = vpop.f32.mrb[95].mxu0 }
0x12a4   :  { %2344 = vadd.xlane.f32.xlu0 %v2343_v13 }
0x12a5   :  { %v4781_v12 = vadd.f32 %v2324_v50, %v4477_v20  ;;  %v2325_v56 = vadd.f32 %v3095_v7, %v2312_v33 }
0x12a7   :  { %v4784_v59 = vadd.f32 %v2325_v56, %v4480_v21  ;;  %v2346_v39 = vsel %vm127_vm2, %v4781_v12, 0.0 }
0x12a8   :  { %2347 = vadd.xlane.f32.xlu0 %v2346_v39  ;;  %v3097_v39 = vld [vmem:[%s4935_s2 + $0xf] ss:$0 sm:$0xff] }
0x12a9   :  { %v2349_v17 = vsel %vm127_vm2, %v4784_v59, 0.0 }
0x12aa   :  { %2350 = vadd.xlane.f32.xlu1 %v2349_v17 }
0x1325   :  { %v2336_v27 = vpop.xlane.xlu0 %2335 }
0x1326   :  { %v2352_v42 = vmul.f32 0.03125, %v2336_v27 }
0x1327   :  { %v2339_v8 = vpop.xlane.xlu1 %2338 }
0x1328   :  { %v2358_v10 = vsub.f32 %v4761_v31, %v2352_v42  ;;  %v2353_v49 = vmul.f32 0.03125, %v2339_v8 }
0x132a   :  { %v2359_v20 = vsub.f32 %v4764_v16, %v2353_v49  ;;  %v2364_v23 = vmul.f32 %v2358_v10, %v2358_v10 }
0x132c   :  { %v2370_v21 = vsel %vm127_vm2, %v2364_v23, 0.0  ;;  %v2365_v25 = vmul.f32 %v2359_v20, %v2359_v20 }
0x132d   :  { %v2342_v38 = vpop.xlane.xlu0 %2341  ;;  %2371 = vadd.xlane.f32.xlu0 %v2370_v21 }
0x132e   :  { %v2354_v36 = vmul.f32 0.03125, %v2342_v38  ;;  %v2373_v32 = vsel %vm127_vm2, %v2365_v25, 0.0 }
0x132f   :  { %2374 = vadd.xlane.f32.xlu1 %v2373_v32 }
0x1330   :  { %v2360_v41 = vsub.f32 %v4771_v44, %v2354_v36 }
0x1331   :  { %v2345_v18 = vpop.xlane.xlu0 %2344 }
0x1332   :  { %v2355_v58 = vmul.f32 0.03125, %v2345_v18  ;;  %v2366_v48 = vmul.f32 %v2360_v41, %v2360_v41 }
0x1334   :  { %v4796_v40 = vsub.f32 %v4774_v37, %v2355_v58  ;;  %v2376_v55 = vsel %vm127_vm2, %v2366_v48, 0.0 }
0x1335   :  { %2377 = vadd.xlane.f32.xlu0 %v2376_v55  ;;  %v2348_v51 = vpop.xlane.xlu0 %2347 }
0x1336   :  { %v2356_v30 = vmul.f32 0.03125, %v2348_v51  ;;  %v2367_v54 = vmul.f32 %v4796_v40, %v4796_v40 }
0x1337   :  { %v2351_v47 = vpop.xlane.xlu1 %2350 }
0x1338   :  { %v2362_v24 = vsub.f32 %v4781_v12, %v2356_v30  ;;  %v2357_v61 = vmul.f32 0.03125, %v2351_v47  ;;  %v2379_v4 = vsel %vm127_vm2, %v2367_v54, 0.0 }
0x1339   :  { %2380 = vadd.xlane.f32.xlu1 %v2379_v4 }
0x133a   :  { %v2363_v7 = vsub.f32 %v4784_v59, %v2357_v61  ;;  %v2368_v62 = vmul.f32 %v2362_v24, %v2362_v24 }
0x133c   :  { %v2382_v2 = vsel %vm127_vm2, %v2368_v62, 0.0  ;;  %v2369_v45 = vmul.f32 %v2363_v7, %v2363_v7 }
0x133d   :  { %2383 = vadd.xlane.f32.xlu0 %v2382_v2  ;;  %v3680_v2 = vld [vmem:[%s4936_s3 + $0xd0] sm:$0xff]  }
0x133e   :  { %v2385_v60 = vsel %vm127_vm2, %v2369_v45, 0.0  ;;  %v3681_v45 = vld [vmem:[%s4936_s3 + $0xd8] sm:$0xff]  }
0x133f   :  { %2386 = vadd.xlane.f32.xlu1 %v2385_v60  ;;  %v3682_v60 = vld [vmem:[%s4936_s3 + $0xe0] sm:$0xff]  }
0x13ba   :  { %v2372_v22 = vpop.xlane.xlu0 %2371 }
0x13bb   :  { %v2388_v46 = vmul.f32 0.03125, %v2372_v22  ;;  %v3098_v22 = vld [vmem:[%s4935_s2 + $0x10] ss:$0 sm:$0xff] }
0x13bc   :  { %v2375_v43 = vpop.xlane.xlu1 %2374 }
0x13bd   :  { %v2394_v26 = vadd.f32 1e-05, %v2388_v46  ;;  %v2389_v6 = vmul.f32 0.03125, %v2375_v43 }
0x13bf   :  { %3858 = vrsqrt.f32 %v2394_v26  ;;  %v2395_v11 = vadd.f32 1e-05, %v2389_v6 }
0x13c1   :  { %3860 = vrsqrt.f32 %v2395_v11 }
0x13c2   :  { %v2378_v15 = vpop.xlane.xlu0 %2377 }
0x13c3   :  { %v2390_v14 = vmul.f32 0.03125, %v2378_v15 }
0x13c5   :  { %v2396_v53 = vadd.f32 1e-05, %v2390_v14 }
0x13c6   :  { %v2381_v28 = vpop.xlane.xlu1 %2380 }
0x13c7   :  { %3862 = vrsqrt.f32 %v2396_v53  ;;  %v2391_v29 = vmul.f32 0.03125, %v2381_v28 }
0x13c9   :  { %v3859_v3 = vpop.eup %3858  ;;  %v2397_v35 = vadd.f32 1e-05, %v2391_v29 }
0x13ca   :  { %v2406_v5 = vmul.f32 %v3859_v3, %v2358_v10  ;;  %v2384_v9 = vpop.xlane.xlu0 %2383 }
0x13cb   :  { %v3861_v50 = vpop.eup %3860  ;;  %3864 = vrsqrt.f32 %v2397_v35  ;;  %v2392_v33 = vmul.f32 0.03125, %v2384_v9 }
0x13cc   :  { %v2416_v34 = vmul.f32 %v3096_v19, %v2406_v5  ;;  %v2407_v13 = vmul.f32 %v3861_v50, %v2359_v20  ;;  %v2387_v56 = vpop.xlane.xlu1 %2386 }
0x13cd   :  { %v2398_v17 = vadd.f32 1e-05, %v2392_v33  ;;  %v2393_v27 = vmul.f32 0.03125, %v2387_v56 }
0x13ce   :  { %v2417_v42 = vmul.f32 %v3096_v19, %v2407_v13  ;;  %v2426_v49 = vadd.f32 %v3097_v39, %v2416_v34 }
0x13cf   :  { %3866 = vrsqrt.f32 %v2398_v17  ;;  %v2399_v8 = vadd.f32 1e-05, %v2393_v27 }
0x13d0   :  { %v2427_v23 = vadd.f32 %v3097_v39, %v2417_v42 }
0x13d1   :  { %v3863_v21 = vpop.eup %3862  ;;  %3868 = vrsqrt.f32 %v2399_v8 }
0x13d2   :  { %v2408_v10 = vmul.f32 %v3863_v21, %v2360_v41  ;;  %v2436_v25 = vpack.c.bf16 %v2427_v23, %v2426_v49 }
0x13d4   :  { %3559 = vmatmul.mubr.msk.bf16.vlgmr.msra.gmra.mrb[96].mxu0 %vm127_vm2, %v2436_v25  ;;  %v2418_v36 = vmul.f32 %v3096_v19, %v2408_v10 }
0x13d5   :  { %v3865_v38 = vpop.eup %3864  ;;  %3562 = vmatprep.mubr.msk.bf16.mxu0 %vm3921_vm0, %v3920_v1 }
0x13d6   :  { %v2409_v20 = vmul.f32 %v3865_v38, %v4796_v40  ;;  %v2428_v48 = vadd.f32 %v3097_v39, %v2418_v36  ;;  %v3677_v40 = vld [vmem:[%s4936_s3 + $0xb8] sm:$0xff]  }
0x13d7   :  { %3571 = vmatpush3.bf16.msra.mxu1 %v3677_v40 }
0x13d8   :  { %v2419_v32 = vmul.f32 %v3096_v19, %v2409_v20  ;;  %3572 = vmatprep.subr.bf16.mxu1 %v3920_v1 }
0x13d9   :  { %v3867_v18 = vpop.eup %3866 }
0x13da   :  { %v2410_v58 = vmul.f32 %v3867_v18, %v2362_v24  ;;  %v2429_v55 = vadd.f32 %v3097_v39, %v2419_v32  ;;  %v3678_v24 = vld [vmem:[%s4936_s3 + $0xc0] sm:$0xff]  }
0x13db   :  { %v3869_v51 = vpop.eup %3868  ;;  %3573 = vmatpush3.bf16.msra.mxu1 %v3678_v24 }
0x13dc   :  { %v2411_v30 = vmul.f32 %v3869_v51, %v2363_v7  ;;  %v2437_v54 = vpack.c.bf16 %v2429_v55, %v2428_v48  ;;  %v2420_v41 = vmul.f32 %v3096_v19, %v2410_v58  ;;  %3574 = vmatprep.subr.bf16.mxu1 %v3920_v1  ;;  %v3679_v7 = vld [vmem:[%s4936_s3 + $0xc8] sm:$0xff]  }
0x13de   :  { %3563 = vmatmul.mubr.msk.bf16.gmra.mrb[100].mxu0 %vm127_vm2, %v2437_v54  ;;  %v2421_v47 = vmul.f32 %v3096_v19, %v2411_v30  ;;  %v2430_v4 = vadd.f32 %v3097_v39, %v2420_v41 }
0x13df   :  { %3566 = vmatprep.mubr.msk.bf16.mxu0 %vm3921_vm0, %v3920_v1  ;;  %3575 = vmatpush3.bf16.msra.mxu1 %v3679_v7 }
0x13e0   :  { %v2431_v61 = vadd.f32 %v3097_v39, %v2421_v47  ;;  %3576 = vmatprep.subr.bf16.mxu1 %v3920_v1 }
0x13e2   :  { %v2438_v62 = vpack.c.bf16 %v2431_v61, %v2430_v4 }
0x13e3   :  { %3577 = vmatpush3.bf16.msra.mxu1 %v3680_v2 }
0x13e4   :  { %3578 = vmatprep.subr.bf16.mxu1 %v3920_v1 }
0x13e6   :  { %3567 = vmatmul.mubr.msk.bf16.gmra.mrb[104].mxu0 %vm127_vm2, %v2438_v62 }
0x13e7   :  { %3610 = vmatprep.mubr.msk.f32.mxu0 %vm3921_vm0, %v3920_v1  ;;  %3579 = vmatpush3.bf16.msra.mxu1 %v3681_v45 }
0x13e8   :  { %3580 = vmatprep.subr.bf16.mxu1 %v3920_v1 }
0x13eb   :  { %3581 = vmatpush3.bf16.msra.mxu1 %v3682_v60 }
0x13ec   :  { %3582 = vmatprep.subr.bf16.mxu1 %v3920_v1 }
0x13ef   :  { %3583 = vmatpush3.bf16.msra.mxu1 %v3683_v52 }
0x13f0   :  { %3584 = vmatprep.subr.bf16.mxu1 %v3920_v1 }
0x13f3   :  { %3585 = vmatpush3.bf16.msra.mxu1 %v3684_v57 }
0x13f4   :  { %3627 = vmatprep.subr.bf16.mxu1 %v3920_v1 }
0x14a7   :  { %v2499_v46 = vpop.f32.mrb[96].mxu0 }
0x14a8   :  { %v2500_v43 = vadd.f32 %v3098_v22, %v2499_v46  ;;  %v3560_v26 = vpop.f32.mrb[97].mxu0 }
0x14a9   :  { %v2502_v6 = vpop.f32.mrb[98].mxu0  ;;  %v3928_v26 = vmov 0.0|0.0  }
0x14aa   :  { %v3104_v11 = vmul.f32 -1.702, %v2500_v43  ;;  %v2503_v15 = vadd.f32 %v3098_v22, %v2502_v6  ;;  %v3561_v14 = vpop.f32.mrb[99].mxu0  ;;  %3635 = vmatprep.subr.bf16.mxu0 %v3928_v26  ;;  %v3110_v6 = vld [vmem:[%s4935_s2 + $0x11] ss:$0 sm:$0xff] }
0x14ac   :  { %v2534_v53 = vmul.f32 1.442695, %v3104_v11  ;;  %v3105_v28 = vmul.f32 -1.702, %v2503_v15 }
0x14ae   :  { %3870 = vpow2.f32 %v2534_v53  ;;  %v2536_v29 = vmul.f32 1.442695, %v3105_v28 }
0x14b0   :  { %3872 = vpow2.f32 %v2536_v29 }
0x14b1   :  { %v2507_v3 = vpop.f32.mrb[100].mxu0 }
0x14b2   :  { %v2508_v19 = vadd.f32 %v3098_v22, %v2507_v3  ;;  %v3564_v35 = vpop.f32.mrb[101].mxu0 }
0x14b3   :  { %v2510_v5 = vpop.f32.mrb[102].mxu0 }
0x14b4   :  { %v3106_v9 = vmul.f32 -1.702, %v2508_v19  ;;  %v2511_v50 = vadd.f32 %v3098_v22, %v2510_v5  ;;  %v3565_v33 = vpop.f32.mrb[103].mxu0 }
0x14b6   :  { %v2538_v34 = vmul.f32 1.442695, %v3106_v9  ;;  %v3107_v13 = vmul.f32 -1.702, %v2511_v50 }
0x14b8   :  { %v3871_v56 = vpop.eup %3870  ;;  %3874 = vpow2.f32 %v2538_v34  ;;  %v2540_v39 = vmul.f32 1.442695, %v3107_v13 }
0x14b9   :  { %v2546_v17 = vadd.f32 1.0, %v3871_v56  ;;  %v2515_v27 = vpop.f32.mrb[104].mxu0 }
0x14ba   :  { %v3873_v42 = vpop.eup %3872  ;;  %3876 = vpow2.f32 %v2540_v39  ;;  %v2516_v8 = vadd.f32 %v3098_v22, %v2515_v27  ;;  %v3568_v49 = vpop.f32.mrb[105].mxu0 }
0x14bb   :  { %3878 = vrcp.f32 %v2546_v17  ;;  %v2547_v23 = vadd.f32 1.0, %v3873_v42  ;;  %v2518_v21 = vpop.f32.mrb[106].mxu0  ;;  %v228_v17 = vshrl.u32 %v227_v63, 7 }
0x14bc   :  { %v3108_v10 = vmul.f32 -1.702, %v2516_v8  ;;  %v2519_v25 = vadd.f32 %v3098_v22, %v2518_v21  ;;  %v3569_v38 = vpop.f32.mrb[107].mxu0 }
0x14bd   :  { %3880 = vrcp.f32 %v2547_v23  ;;  %v2705_v49 = vmul.u32 24, %v228_v17 }
0x14be   :  { %v2542_v20 = vmul.f32 1.442695, %v3108_v10  ;;  %v3109_v36 = vmul.f32 -1.702, %v2519_v25 }
0x14bf   :  { %vm2706_vm8 = vcmp.eq.s32.totalorder %v4174_v0, %v2705_v49 }
0x14c0   :  { %3882 = vpow2.f32 %v2542_v20  ;;  %v2544_v32 = vmul.f32 1.442695, %v3109_v36  ;;  %v3119_v63 = vsel %vm2706_vm8, 1.0, %v3920_v1 }
0x14c2   :  { %v3875_v18 = vpop.eup %3874  ;;  %3884 = vpow2.f32 %v2544_v32 }
0x14c3   :  { %v2548_v58 = vadd.f32 1.0, %v3875_v18  ;;  %v3685_v18 = vld [vmem:[%s4936_s3 + $0xf8] sm:$0xff]  }
0x14c4   :  { %v3877_v48 = vpop.eup %3876 }
0x14c5   :  { %v3879_v55 = vpop.eup %3878  ;;  %3886 = vrcp.f32 %v2548_v58  ;;  %v2549_v51 = vadd.f32 1.0, %v3877_v48  ;;  %v3686_v58 = vld [vmem:[%s4936_s3 + $0x100] sm:$0xff]  }
0x14c6   :  { %v2564_v54 = vmul.f32 %v3879_v55, %v2500_v43 }
0x14c7   :  { %v3881_v30 = vpop.eup %3880  ;;  %3888 = vrcp.f32 %v2549_v51 }
0x14c8   :  { %v2565_v41 = vmul.f32 %v3881_v30, %v2503_v15 }
0x14ca   :  { %v3883_v47 = vpop.eup %3882  ;;  %v2586_v61 = vpack.c.bf16 %v2565_v41, %v2564_v54  ;;  %v3121_v54 = vld [vmem:[%s4935_s2 + $0x12] ss:$0 sm:$0xff] }
0x14cb   :  { %v2550_v4 = vadd.f32 1.0, %v3883_v47  ;;  %v3122_v47 = vld [vmem:[%s4935_s2 + $0x13] ss:$0 sm:$0xff] }
0x14cc   :  { %v3885_v62 = vpop.eup %3884  ;;  %3587 = vmatmul.mubr.bf16.vlgmr.msra.gmra.mrb[108].mxu1 %v2586_v61 }
0x14cd   :  { %3890 = vrcp.f32 %v2550_v4  ;;  %v2551_v40 = vadd.f32 1.0, %v3885_v62  ;;  %3590 = vmatprep.mubr.msk.bf16.mxu1 %vm3921_vm0, %v3920_v1 }
0x14cf   :  { %v3887_v24 = vpop.eup %3886  ;;  %3892 = vrcp.f32 %v2551_v40  ;;  %v3687_v40 = vld [vmem:[%s4936_s3 + $0x108] sm:$0xff]  }
0x14d0   :  { %v2566_v2 = vmul.f32 %v3887_v24, %v2508_v19  ;;  %v3688_v24 = vld [vmem:[%s4936_s3 + $0x110] sm:$0xff]  }
0x14d1   :  { %v3889_v7 = vpop.eup %3888  ;;  %3628 = vmatpush3.bf16.msra.mxu1 %v3688_v24 }
0x14d2   :  { %v2567_v45 = vmul.f32 %v3889_v7, %v2511_v50  ;;  %3629 = vmatprep.subr.bf16.mxu1 %v3920_v1 }
0x14d4   :  { %v2587_v60 = vpack.c.bf16 %v2567_v45, %v2566_v2 }
0x14d6   :  { %3591 = vmatmul.mubr.bf16.gmra.mrb[112].mxu1 %v2587_v60 }
0x14d7   :  { %v3891_v52 = vpop.eup %3890  ;;  %3594 = vmatprep.mubr.msk.bf16.mxu1 %vm3921_vm0, %v3920_v1 }
0x14d8   :  { %v2568_v22 = vmul.f32 %v3891_v52, %v2516_v8 }
0x14d9   :  { %v3893_v57 = vpop.eup %3892 }
0x14da   :  { %v2569_v46 = vmul.f32 %v3893_v57, %v2519_v25  ;;  %v3689_v57 = vld [vmem:[%s4936_s3 + $0x118] sm:$0xff]   ;;  %s2999_s3 = sshll.u32 %s3929_s25, 4  ;;  %s3000_s3 = int_to_ptr.vmem [resolvable:$true] %s2999_s3 }
0x14db   :  { %3630 = vmatpush3.bf16.msra.mxu1 %v3689_v57  ;;  %s3896_s26 = scalar_lea.vmem %s3000_s3, 32  ;;  %p3901_p1 = scmp.lt.s32.totalorder %s3000_s3, %s3000_s3 }
0x14dc   :  { %v2588_v43 = vpack.c.bf16 %v2569_v46, %v2568_v22  ;;  %v3126_v22 = vld [vmem:[%s4935_s2 + $0x14] ss:$0 sm:$0xff]  ;;  %p3897_p0 = scmp.ne.s32.totalorder %s3000_s3, %s3896_s26  ;;  %p3902_p2 = scmp.lt.s32.totalorder %s3896_s26, %s3896_s26 }
0x14de   :  { %3595 = vmatmul.mubr.bf16.gmra.mrb[116].mxu1 %v2588_v43  ;;  %p3903_p3 = por %p3902_p2, %p3901_p1 }
0x14df   :  { %3631 = vmatprep.mubr.msk.bf16.mxu1 %vm3921_vm0, %v3920_v1 }
0x14e0   :  { %p3904_p4 = pnand %p3903_p3, %p3897_p0 }
0x159f   :  { %v2676_v11 = vpop.f32.mrb[108].mxu1 }
0x15a0   :  { %v2677_v15 = vadd.f32 %v3110_v6, %v2676_v11  ;;  %v3588_v14 = vpop.f32.mrb[109].mxu1 }
0x15a1   :  { %v2679_v53 = vpop.f32.mrb[110].mxu1  ;;  %v3129_v14 = vld [vmem:[%s4935_s2 + $0x15] ss:$0 sm:$0xff] }
0x15a2   :  { %v2680_v28 = vadd.f32 %v3110_v6, %v2679_v53  ;;  %v3589_v29 = vpop.f32.mrb[111].mxu1  ;;  %v2699_v3 = vadd.f32 %v2677_v15, %v4761_v31 }
0x15a4   :  { %v2700_v19 = vadd.f32 %v2680_v28, %v4764_v16 }
0x15a6   :  { %v3636_v35 = vpack.c.bf16 %v2700_v19, %v2699_v3 }
0x15a8   :  { %3637 = vmatpush3.bf16.msra.mxu0 %v3636_v35 }
0x15a9   :  { %v2684_v5 = vpop.f32.mrb[112].mxu1  ;;  %3638 = vmatprep.subr.bf16.mxu0 %v3928_v26 }
0x15aa   :  { %v2685_v9 = vadd.f32 %v3110_v6, %v2684_v5  ;;  %v3592_v50 = vpop.f32.mrb[113].mxu1 }
0x15ab   :  { %v2687_v33 = vpop.f32.mrb[114].mxu1 }
0x15ac   :  { %v2688_v34 = vadd.f32 %v3110_v6, %v2687_v33  ;;  %v3593_v13 = vpop.f32.mrb[115].mxu1  ;;  %v2701_v56 = vadd.f32 %v2685_v9, %v4771_v44 }
0x15ae   :  { %v2702_v39 = vadd.f32 %v2688_v34, %v4774_v37 }
0x15b0   :  { %v3639_v27 = vpack.c.bf16 %v2702_v39, %v2701_v56 }
0x15b1   :  { %v2692_v42 = vpop.f32.mrb[116].mxu1 }
0x15b2   :  { %v2693_v31 = vadd.f32 %v3110_v6, %v2692_v42  ;;  %v3596_v8 = vpop.f32.mrb[117].mxu1  ;;  %3640 = vmatpush3.bf16.msra.mxu0 %v3639_v27 }
0x15b3   :  { %v2695_v16 = vpop.f32.mrb[118].mxu1  ;;  %3641 = vmatprep.subr.bf16.mxu0 %v3928_v26 }
0x15b4   :  { %v2696_v23 = vadd.f32 %v3110_v6, %v2695_v16  ;;  %v3597_v21 = vpop.f32.mrb[119].mxu1  ;;  %v2703_v10 = vadd.f32 %v2693_v31, %v4781_v12 }
0x15b6   :  { %v2704_v25 = vadd.f32 %v2696_v23, %v4784_v59 }
0x15b8   :  { %v3642_v44 = vpack.c.bf16 %v2704_v25, %v2703_v10 }
0x15ba   :  { %3643 = vmatpush3.bf16.msra.mxu0 %v3642_v44 }
0x15bb   :  { %3613 = vmatprep.subr.bf16.mxu0 %v3920_v1 }
0x15bd   :  { %3611 = vmatmul.mubr.msk.f32.vlgmr.msra.gmra.mrb[108].mxu0 %vm58_vm1, %v3119_v63 }
0x15be   :  { %3617 = vmatprep.mubr.msk.bf16.mxu0 %vm3921_vm0, %v3920_v1  ;;  %3614 = vmatpush3.bf16.msra.mxu0 %v3685_v18 }
0x15bf   :  { %3615 = vmatprep.subr.bf16.mxu0 %v3920_v1 }
0x15c2   :  { %3616 = vmatpush3.bf16.msra.mxu0 %v3686_v58 }
0x15c3   :  { %3621 = vmatprep.subr.bf16.mxu0 %v3920_v1 }
0x1690   :  { %v2778_v37 = vpop.f32.mrb[108].mxu0 }
0x1691   :  { %v2785_v38 = vsel %vm2784_vm9, %v2778_v37, 0.0  ;;  %v3612_v20 = vpop.f32.mrb[109].mxu0 }
0x1692   :  { %2786 = vadd.xlane.f32.xlu0 %v2785_v38 }
0x171f   :  { %v2787_v12 = vpop.xlane.xlu0 %2786 }
0x1720   :  { %v2788_v59 = vmul.f32 0.03125, %v2787_v12 }
0x1722   :  { %v2789_v36 = vsub.f32 %v2778_v37, %v2788_v59 }
0x1724   :  { %v2790_v0 = vmul.f32 %v2789_v36, %v2789_v36 }
0x1726   :  { %v2791_v32 = vsel %vm2784_vm9, %v2790_v0, 0.0 }
0x1727   :  { %2792 = vadd.xlane.f32.xlu1 %v2791_v32 }
0x17b4   :  { %v2793_v48 = vpop.xlane.xlu1 %2792 }
0x17b5   :  { %v2794_v55 = vmul.f32 0.03125, %v2793_v48 }
0x17b7   :  { %v2795_v51 = vadd.f32 1e-05, %v2794_v55 }
0x17b9   :  { %3894 = vrsqrt.f32 %v2795_v51 }
0x17c3   :  { %v3895_v30 = vpop.eup %3894 }
0x17c4   :  { %v2797_v41 = vmul.f32 %v3895_v30, %v2789_v36 }
0x17c6   :  { %v2802_v61 = vmul.f32 %v3121_v54, %v2797_v41 }
0x17c8   :  { %v2807_v4 = vadd.f32 %v3122_v47, %v2802_v61 }
0x17ca   :  { %v2812_v62 = vpack.c.bf16 %v2807_v4, %v2807_v4 }
0x17cc   :  { %3618 = vmatmul.mubr.msk.bf16.vlgmr.msra.gmra.mrb[112].mxu0 %vm127_vm2, %v2812_v62 }
0x17cd   :  { %3623 = vmatprep.mubr.msk.bf16.mxu0 %vm3921_vm0, %v3920_v1  ;;  %3622 = vmatpush3.bf16.msra.mxu0 %v3687_v40 }
0x189f   :  { %v2862_v7 = vpop.f32.mrb[112].mxu0 }
0x18a0   :  { %v2870_v2 = vpack.c.bf16 %v2862_v7, %v2862_v7  ;;  %v3619_v45 = vpop.f32.mrb[113].mxu0 }
0x18a1   :  { %v2865_v60 = vpop.f32.mrb[114].mxu0 }
0x18a2   :  { %v3620_v52 = vpop.f32.mrb[115].mxu0  ;;  %3624 = vmatmul.mubr.msk.bf16.vlgmr.msra.gmra.mrb[116].mxu0 %vm514_vm3, %v2870_v2 }
0x1975   :  { %v2919_v46 = vpop.f32.mrb[116].mxu0 }
0x1976   :  { %v2920_v43 = vadd.f32 %v3126_v22, %v2919_v46  ;;  %v3625_v26 = vpop.f32.mrb[117].mxu0 }
0x1977   :  { %v2922_v1 = vpop.f32.mrb[118].mxu0 }
0x1978   :  { %v2925_v6 = vmax.f32 %v2920_v43, 0.0  ;;  %v3626_v11 = vpop.f32.mrb[119].mxu0 }
0x197a   :  { %v2930_v15 = vpack.c.bf16 %v2925_v6, %v2925_v6 }
0x197c   :  { %3632 = vmatmul.mubr.msk.bf16.vlgmr.msra.gmra.mrb[120].mxu1 %vm127_vm2, %v2930_v15 }
0x1a4f   :  { %v2985_v53 = vpop.f32.mrb[120].mxu1 }
0x1a50   :  { %v2986_v28 = vadd.f32 %v3129_v14, %v2985_v53  ;;  %v3633_v29 = vpop.f32.mrb[121].mxu1 }
0x1a51   :  { %v2988_v3 = vpop.f32.mrb[122].mxu1 }
0x1a52   :  { %v3634_v19 = vpop.f32.mrb[123].mxu1  ;;  %2992 = vst.msk [vmem:[#allocation2] sm:$0x3] %vm2991_vm10, %v2986_v28 }
0x1a53   :  { %3907 = shalt.err (!%p3904_p4)
}
0x1a54   :  { %s3908_s2 = scalar_lea.hbm %s4937_s4, 32 }
0x1a55   :  { %p3909_p5 = scmp.ne.s32.totalorder %s4937_s4, %s3908_s2  ;;  %p3912_p6 = scmp.lt.u32.totalorder %s3908_s2, %s4937_s4 }
0x1a57   :  { %p3914_p7 = pnand %p3912_p6, %p3909_p5 }
0x1a59   :  { %3917 = shalt.err (!%p3914_p7)
}
0x1a5a   :  { %3002 = dma.vmem_to_hbm [thread:$0]  %s3000_s3, 32, %s4937_s4, [#allocation3]  }
0x1a5b   :  { %3918 = dma.done.wait [#allocation3], 32  }
0x1a5c   :  { %3919 = vsyncadd [#allocation3], 4294967264 }
0x1a5d   :  { %3006 = vsyncpa [#allocation3], 1 }

</bundles_post_ra>
